<compile_context>
chip_gen: v5e
topology: v5e:2x2
jax: 0.10.0
libtpu: 0.0.40
codegen_flags: <defaults>
</compile_context>

<pallas_src>
import functools
import math

import jax
import jax.numpy as jnp
from jax.experimental import pallas as pl
from jax.experimental.pallas import tpu as pltpu

BN_EPS = 1e-5
PAD = 2      # spatial zero-pad ring: covers k=3 convs with dilation up to 2
LANE = 128

_CPARAMS = pltpu.CompilerParams(
    dimension_semantics=("parallel",),
    vmem_limit_bytes=32 * 1024 * 1024,
)


def _round_up(x, m):
    return (x + m - 1) // m * m


# ----------------------------- geometry helpers -----------------------------

def make_geometry(H, W):
    Hp, Wp = H + 2 * PAD, W + 2 * PAD
    L = Hp * Wp
    G = _round_up(2 * Wp, LANE)                   # lane-aligned left guard
    Lg = _round_up(G + L + 2 * Wp, LANE)          # lane-aligned total length
    return dict(H=H, W=W, Hp=Hp, Wp=Wp, L=L, G=G, Lg=Lg)


def to_pf(x_bchw, geo, dtype):
    """NCHW -> padded-flat [B, C, Lg]."""
    B, C, _, _ = x_bchw.shape
    xp = jnp.pad(x_bchw, ((0, 0), (0, 0), (PAD, PAD), (PAD, PAD)))
    xf = xp.reshape(B, C, geo["L"])
    xf = jnp.pad(xf, ((0, 0), (0, 0),
                      (geo["G"], geo["Lg"] - geo["G"] - geo["L"])))
    return xf.astype(dtype)


def from_pf(x_pf, geo):
    """padded-flat [B, C, Lg] -> NCHW."""
    B, C, _ = x_pf.shape
    H, W, Hp, Wp, G, L = (geo[k] for k in ("H", "W", "Hp", "Wp", "G", "L"))
    xs = x_pf[:, :, G:G + L].reshape(B, C, Hp, Wp)
    return xs[:, :, PAD:PAD + H, PAD:PAD + W]


def make_masks(geo):
    """(full [1,Lg], center [1,L]) f32 masks: 1 on valid H x W positions."""
    Hp, Wp, G, L, Lg = (geo[k] for k in ("Hp", "Wp", "G", "L", "Lg"))
    m = jnp.zeros((Hp, Wp), jnp.float32).at[PAD:Hp - PAD, PAD:Wp - PAD].set(1.0)
    mc = m.reshape(1, L)
    mf = jnp.pad(mc, ((0, 0), (G, Lg - G - L)))
    return mf, mc


def _pf_spec(C, Lg):
    return pl.BlockSpec((1, C, Lg), lambda b: (b, 0, 0))


def _bcast_spec(shape):
    n = len(shape)
    return pl.BlockSpec(shape, lambda b: (0,) * n)


# ------------------------------- Pallas kernels ------------------------------

def _cv1_kernel(x_ref, w0_ref, w1_ref, s0_ref, h0_ref, s1_ref, h1_ref,
                mask_ref, y0_ref, y1_ref):
    # 1x1 Conv + BN + SiLU emitting the two channel halves y0 / y1 directly.
    x = x_ref[0]                                  # [Cin, Lg] bf16
    mask = mask_ref[...]

    def branch(w_ref, sc_ref, sh_ref, o_ref):
        y = jnp.dot(w_ref[...], x, preferred_element_type=jnp.float32)
        y = y * sc_ref[...] + sh_ref[...]
        y = y * jax.nn.sigmoid(y)
        o_ref[0] = (y * mask).astype(o_ref.dtype)

    branch(w0_ref, s0_ref, h0_ref, y0_ref)
    branch(w1_ref, s1_ref, h1_ref, y1_ref)


def _conv3x3_kernel(x_ref, w_ref, scale_ref, shift_ref, maskc_ref, o_ref, *,
                    G, L, Wp):
    # 3x3 conv + BN + SiLU: 9 taps are static lane slices of the padded input,
    # accumulated via chained dots (v7x MRB accumulates in place).
    # TODO(synk): for small Cin pack the taps into one [9*Cin, L] slab and do a
    #             single K=9*Cin matmul against the prepacked weight.
    shifts = tuple(di * Wp + dj for di in (-1, 0, 1) for dj in (-1, 0, 1))
    acc = None
    for k, s in enumerate(shifts):
        tap = jnp.dot(w_ref[k], x_ref[0, :, G + s:G + s + L],
                      preferred_element_type=jnp.float32)
        acc = tap if acc is None else acc + tap
    y = acc * scale_ref[...] + shift_ref[...]
    y = y * jax.nn.sigmoid(y)
    y = y * maskc_ref[...]
    cout = o_ref.shape[1]
    lg = o_ref.shape[2]
    o_ref[0, :, :G] = jnp.zeros((cout, G), o_ref.dtype)
    o_ref[0, :, G + L:] = jnp.zeros((cout, lg - G - L), o_ref.dtype)
    o_ref[0, :, G:G + L] = y.astype(o_ref.dtype)


def _cv2_pool_kernel(y0_ref, y1_ref, y2_ref, wa_ref, wb_ref, wc_ref,
                     scale_ref, shift_ref, mask_ref, o_ref, pool_ref):
    # cv2 over cat([y0, y1, y2]) as three partial matmuls (no concat in HBM),
    # plus the ECA global-average-pool partial sum while the tile is in VMEM.
    v = jnp.dot(wa_ref[...], y0_ref[0], preferred_element_type=jnp.float32)
    v = v + jnp.dot(wb_ref[...], y1_ref[0], preferred_element_type=jnp.float32)
    v = v + jnp.dot(wc_ref[...], y2_ref[0], preferred_element_type=jnp.float32)
    v = v * scale_ref[...] + shift_ref[...]
    v = v * jax.nn.sigmoid(v)
    v = v * mask_ref[...]                         # zero ring + guards (pool relies on it)
    o_ref[0] = v.astype(o_ref.dtype)
    pool_ref[0] = jnp.sum(v, axis=-1, keepdims=True)


def _lca_fused_kernel(x_ref, sig_ref, dw_ref, red_ref, exp_ref,
                      w1r_ref, w1e_ref, s1_ref, b1_ref,
                      w2r_ref, w2e_ref, s2_ref, b2_ref, maskc_ref,
                      o_ref, u_scr, attn_scr, *, G, L, stage_shifts):
    # Entire LCA chain fused: u = x^2*sigmoid(att); 4x (depthwise 3-tap ->
    # rank-1 reduce (MXU) -> expand); conv1/norm1/relu; conv2/norm2/sigmoid;
    # out = u * attn.  u and the running attn live only in VMEM scratch.
    C, Lg = u_scr.shape
    x = x_ref[0].astype(jnp.float32)              # [C, Lg]
    u_scr[...] = x * x * sig_ref[0]               # x * eca(x) = x^2 * sigmoid(att)
    attn_scr[:, :G] = jnp.zeros((C, G), jnp.float32)
    attn_scr[:, G + L:] = jnp.zeros((C, Lg - G - L), jnp.float32)
    maskc = maskc_ref[...]                        # [1, L]

    src = u_scr
    for st, shifts in enumerate(stage_shifts):
        dw = dw_ref[st]                           # [C, 3]
        acc = (src[:, G + shifts[0]:G + shifts[0] + L] * dw[:, 0:1]
               + src[:, G + shifts[1]:G + shifts[1] + L] * dw[:, 1:2]
               + src[:, G + shifts[2]:G + shifts[2] + L] * dw[:, 2:3])
        mid = jnp.dot(red_ref[st], acc, preferred_element_type=jnp.float32)  # [1, L]
        attn_scr[:, G:G + L] = (exp_ref[st] * mid) * maskc
        src = attn_scr

    a = attn_scr[:, G:G + L]                                                 # [C, L]
    mid1 = jnp.dot(w1r_ref[...], a, preferred_element_type=jnp.float32)      # [1, L]
    h = jnp.maximum((w1e_ref[...] * mid1) * s1_ref[...] + b1_ref[...], 0.0)  # [cr, L]
    mid2 = jnp.dot(w2r_ref[...], h, preferred_element_type=jnp.float32)      # [1, L]
    g = jax.nn.sigmoid((w2e_ref[...] * mid2) * s2_ref[...] + b2_ref[...])    # [C, L]
    out_c = u_scr[:, G:G + L] * g
    o_ref[0, :, :G] = jnp.zeros((C, G), o_ref.dtype)
    o_ref[0, :, G + L:] = jnp.zeros((C, Lg - G - L), o_ref.dtype)
    o_ref[0, :, G:G + L] = out_c.astype(o_ref.dtype)


# ------------------------------- kernel wrappers -----------------------------

def conv_cv1(x_pf, w, bn, mask_full, c, out_dtype):
    B, Cin, Lg = x_pf.shape
    scale, shift = bn
    w0 = w[:c].astype(jnp.bfloat16)
    w1 = w[c:].astype(jnp.bfloat16)
    return pl.pallas_call(
        _cv1_kernel,
        out_shape=(jax.ShapeDtypeStruct((B, c, Lg), out_dtype),
                   jax.ShapeDtypeStruct((B, c, Lg), out_dtype)),
        grid=(B,),
        in_specs=[_pf_spec(Cin, Lg),
                  _bcast_spec((c, Cin)), _bcast_spec((c, Cin)),
                  _bcast_spec((c, 1)), _bcast_spec((c, 1)),
                  _bcast_spec((c, 1)), _bcast_spec((c, 1)),
                  _bcast_spec((1, Lg))],
        out_specs=(_pf_spec(c, Lg), _pf_spec(c, Lg)),
        compiler_params=_CPARAMS,
    )(x_pf, w0, w1,
      scale[:c].reshape(c, 1), shift[:c].reshape(c, 1),
      scale[c:].reshape(c, 1), shift[c:].reshape(c, 1), mask_full)


def conv3x3_bn_silu(x_pf, w_oihw, bn, mask_center, geo, out_dtype):
    B, Cin, Lg = x_pf.shape
    Cout = w_oihw.shape[0]
    w9 = jnp.transpose(w_oihw, (2, 3, 0, 1)).reshape(9, Cout, Cin)
    scale, shift = bn
    kern = functools.partial(_conv3x3_kernel, G=geo["G"], L=geo["L"],
                             Wp=geo["Wp"])
    return pl.pallas_call(
        kern,
        out_shape=jax.ShapeDtypeStruct((B, Cout, Lg), out_dtype),
        grid=(B,),
        in_specs=[_pf_spec(Cin, Lg),
                  _bcast_spec((9, Cout, Cin)),
                  _bcast_spec((Cout, 1)), _bcast_spec((Cout, 1)),
                  _bcast_spec((1, geo["L"]))],
        out_specs=_pf_spec(Cout, Lg),
        compiler_params=_CPARAMS,
    )(x_pf, w9.astype(jnp.bfloat16), scale.reshape(Cout, 1),
      shift.reshape(Cout, 1), mask_center)


def cv2_conv_pool(y0_pf, y1_pf, y2_pf, w, bn, mask_full, out_dtype):
    B, c, Lg = y0_pf.shape
    Cout = w.shape[0]
    wa = w[:, :c].astype(jnp.bfloat16)
    wb = w[:, c:2 * c].astype(jnp.bfloat16)
    wc = w[:, 2 * c:].astype(jnp.bfloat16)
    scale, shift = bn
    return pl.pallas_call(
        _cv2_pool_kernel,
        out_shape=(jax.ShapeDtypeStruct((B, Cout, Lg), out_dtype),
                   jax.ShapeDtypeStruct((B, Cout, 1), jnp.float32)),
        grid=(B,),
        in_specs=[_pf_spec(c, Lg), _pf_spec(c, Lg), _pf_spec(c, Lg),
                  _bcast_spec((Cout, c)), _bcast_spec((Cout, c)),
                  _bcast_spec((Cout, c)),
                  _bcast_spec((Cout, 1)), _bcast_spec((Cout, 1)),
                  _bcast_spec((1, Lg))],
        out_specs=(_pf_spec(Cout, Lg),
                   pl.BlockSpec((1, Cout, 1), lambda b: (b, 0, 0))),
        compiler_params=_CPARAMS,
    )(y0_pf, y1_pf, y2_pf, wa, wb, wc,
      scale.reshape(Cout, 1), shift.reshape(Cout, 1), mask_full)


def lca_fused(xl_pf, sig_bc1, lp, mask_center, geo):
    B, C, Lg = xl_pf.shape
    G, L, Wp = geo["G"], geo["L"], geo["Wp"]
    cr = lp["c1_exp"].shape[0]

    names = ("c0h", "c0v", "csh", "csv")
    dw_all = jnp.stack([lp["c0h_dw"][:, 0, 0, :], lp["c0v_dw"][:, 0, :, 0],
                        lp["csh_dw"][:, 0, 0, :], lp["csv_dw"][:, 0, :, 0]],
                       axis=0)                                        # (4, C, 3)
    red_all = jnp.stack([lp[n + "_red"][0, :, 0, 0] for n in names],
                        axis=0)[:, None, :]                           # (4, 1, C)
    exp_all = jnp.stack([lp[n + "_exp"][:, 0, 0, 0] for n in names],
                        axis=0)[:, :, None]                           # (4, C, 1)

    w1r = lp["c1_red"][0, :, 0, 0][None, :]                           # (1, C)
    w1e = lp["c1_exp"][:, 0, 0, 0][:, None]                           # (cr, 1)
    s1, b1 = (v.reshape(cr, 1) for v in lp["norm1"])
    w2r = lp["c2_red"][0, :, 0, 0][None, :]                           # (1, cr)
    w2e = lp["c2_exp"][:, 0, 0, 0][:, None]                           # (C, 1)
    s2, b2 = (v.reshape(C, 1) for v in lp["norm2"])

    stage_shifts = ((-1, 0, 1), (-Wp, 0, Wp), (-2, 0, 2), (-2 * Wp, 0, 2 * Wp))
    kern = functools.partial(_lca_fused_kernel, G=G, L=L,
                             stage_shifts=stage_shifts)
    return pl.pallas_call(
        kern,
        out_shape=jax.ShapeDtypeStruct((B, C, Lg), jnp.float32),
        grid=(B,),
        in_specs=[_pf_spec(C, Lg),
                  pl.BlockSpec((1, C, 1), lambda b: (b, 0, 0)),
                  _bcast_spec((4, C, 3)), _bcast_spec((4, 1, C)),
                  _bcast_spec((4, C, 1)),
                  _bcast_spec((1, C)), _bcast_spec((cr, 1)),
                  _bcast_spec((cr, 1)), _bcast_spec((cr, 1)),
                  _bcast_spec((1, cr)), _bcast_spec((C, 1)),
                  _bcast_spec((C, 1)), _bcast_spec((C, 1)),
                  _bcast_spec((1, L))],
        out_specs=_pf_spec(C, Lg),
        scratch_shapes=[pltpu.VMEM((C, Lg), jnp.float32),
                        pltpu.VMEM((C, Lg), jnp.float32)],
        compiler_params=_CPARAMS,
    )(xl_pf, sig_bc1, dw_all, red_all, exp_all,
      w1r, w1e, s1, b1, w2r, w2e, s2, b2, mask_center)


# ------------------------------- forward (glue) ------------------------------

def c2f_lca3_forward(x_nchw, p):
    B, c1, H, W = x_nchw.shape
    c = p["cv1_w"].shape[0] // 2
    c2 = p["cv2_w"].shape[0]

    geo = make_geometry(H, W)
    mask_full, mask_center = make_masks(geo)

    x_pf = to_pf(x_nchw.astype(jnp.float32), geo, jnp.bfloat16)     # [B, c1, Lg]

    # cv1 (1x1 Conv+BN+SiLU) emitting y0 / y1 halves directly (no HBM slice).
    y0_pf, y1_pf = conv_cv1(x_pf, p["cv1_w"][:, :, 0, 0], p["cv1_bn"],
                            mask_full, c, jnp.bfloat16)

    # Bottleneck (shortcut=False): two 3x3 Conv+BN+SiLU on y1.
    b1_pf = conv3x3_bn_silu(y1_pf, p["m_cv1_w"], p["m_cv1_bn"], mask_center,
                            geo, jnp.bfloat16)
    y2_pf = conv3x3_bn_silu(b1_pf, p["m_cv2_w"], p["m_cv2_bn"], mask_center,
                            geo, jnp.bfloat16)

    # cv2 over cat([y0, y1, y2]) + fused global-average-pool partial sum.
    xl_pf, pool = cv2_conv_pool(y0_pf, y1_pf, y2_pf, p["cv2_w"][:, :, 0, 0],
                                p["cv2_bn"], mask_full, jnp.bfloat16)

    # ECA 1-D conv over channels + sigmoid: tiny [B, c2] math, plain JAX.
    lp = p["lca"]
    pooled = pool[:, :, 0] / float(H * W)                            # [B, c2]
    w_eca = lp["eca_w"][0, 0]
    k = w_eca.shape[0]
    pp = jnp.pad(pooled, ((0, 0), ((k - 1) // 2, (k - 1) // 2)))
    att = sum(w_eca[i] * pp[:, i:i + c2] for i in range(k))
    sig = jax.nn.sigmoid(att)[:, :, None]                            # [B, c2, 1]

    # Fused LCA chain (ECA multiply + 4x separable low-rank + tail).
    out_pf = lca_fused(xl_pf, sig, lp, mask_center, geo)             # [B, c2, Lg]
    return from_pf(out_pf, geo)                                      # NCHW


# ------------------------- deterministic parameters --------------------------

def make_w(key, shape):
    return (0.3 * jax.random.normal(key, shape)).astype(jnp.float32)


def make_bn(key, n):
    k1, k2, k3, k4 = jax.random.split(key, 4)
    gamma = 1.0 + 0.1 * jax.random.normal(k1, (n,))
    beta = 0.1 * jax.random.normal(k2, (n,))
    mean = 0.1 * jax.random.normal(k3, (n,))
    var = 1.0 + 0.1 * jax.random.uniform(k4, (n,))
    scale = gamma / jnp.sqrt(var + BN_EPS)
    shift = beta - mean * scale
    return scale.astype(jnp.float32), shift.astype(jnp.float32)


def init_params(key, c1, c2, n=1):
    assert n == 1, "this synthetic script instantiates n=1 bottleneck"
    c = int(c2 * 0.5)
    keys = iter(jax.random.split(key, 40))
    p = {}
    p["cv1_w"] = make_w(next(keys), (2 * c, c1, 1, 1))
    p["cv1_bn"] = make_bn(next(keys), 2 * c)
    p["m_cv1_w"] = make_w(next(keys), (c, c, 3, 3))
    p["m_cv1_bn"] = make_bn(next(keys), c)
    p["m_cv2_w"] = make_w(next(keys), (c, c, 3, 3))
    p["m_cv2_bn"] = make_bn(next(keys), c)
    p["cv2_w"] = make_w(next(keys), (c2, (2 + n) * c, 1, 1))
    p["cv2_bn"] = make_bn(next(keys), c2)

    rate = 4
    cr = c2 // rate
    t = int(abs((math.log2(c2) + 1) / 2))
    ksz = t if t % 2 else t + 1
    lca = {"eca_w": make_w(next(keys), (1, 1, ksz))}
    for name in ("c0h", "csh"):      # depthwise (1,3)
        lca[name + "_dw"] = make_w(next(keys), (c2, 1, 1, 3))
        lca[name + "_red"] = make_w(next(keys), (1, c2, 1, 1))
        lca[name + "_exp"] = make_w(next(keys), (c2, 1, 1, 1))
    for name in ("c0v", "csv"):      # depthwise (3,1)
        lca[name + "_dw"] = make_w(next(keys), (c2, 1, 3, 1))
        lca[name + "_red"] = make_w(next(keys), (1, c2, 1, 1))
        lca[name + "_exp"] = make_w(next(keys), (c2, 1, 1, 1))
    lca["c1_red"] = make_w(next(keys), (1, c2, 1, 1))
    lca["c1_exp"] = make_w(next(keys), (cr, 1, 1, 1))
    lca["c2_red"] = make_w(next(keys), (1, cr, 1, 1))
    lca["c2_exp"] = make_w(next(keys), (c2, 1, 1, 1))
    lca["norm1"] = make_bn(next(keys), cr)
    lca["norm2"] = make_bn(next(keys), c2)
    p["lca"] = lca
    return p


# ------------------------------------ main ------------------------------------

if __name__ == "__main__":
    c1, c2, n = 4, 8, 1
    B, H, W = 2, 16, 16

    key = jax.random.PRNGKey(0)
    kx, kp = jax.random.split(key)
    x = jax.random.normal(kx, (B, c1, H, W), dtype=jnp.float32)
    params = init_params(kp, c1, c2, n)

    fwd = jax.jit(c2f_lca3_forward)
    out = jax.block_until_ready(fwd(x, params))
    assert out.shape == (B, c2, H, W), out.shape
    assert bool(jnp.all(jnp.isfinite(out)))
    print("KERNEL_OK")
</pallas_src>

<mosaic_0001>
module attributes {stable_mosaic.version = 11 : i64} {
  func.func @_conv3x3_kernel(%arg0: i32, %arg1: memref<1x4x640xbf16, #tpu.memory_space<vmem>>, %arg2: memref<9x4x4xbf16, #tpu.memory_space<vmem>>, %arg3: memref<4x1xf32, #tpu.memory_space<vmem>>, %arg4: memref<4x1xf32, #tpu.memory_space<vmem>>, %arg5: memref<1x400xf32, #tpu.memory_space<vmem>>, %arg6: memref<1x4x640xbf16, #tpu.memory_space<vmem>>) attributes {dimension_semantics = [#tpu.dimension_semantics<parallel>], iteration_bounds = array<i64: 2>, scalar_prefetch = 0 : i64, scratch_operands = 0 : i64, tpu.core_type = #tpu.core_type<tc>, window_params = [{transform_indices = @transform_0, window_bounds = array<i64: 1, 4, 640>}, {pipeline_mode = #tpu.pipeline_mode<synchronous>, transform_indices = @transform_1, window_bounds = array<i64: 9, 4, 4>}, {pipeline_mode = #tpu.pipeline_mode<synchronous>, transform_indices = @transform_2, window_bounds = array<i64: 4, 1>}, {pipeline_mode = #tpu.pipeline_mode<synchronous>, transform_indices = @transform_3, window_bounds = array<i64: 4, 1>}, {pipeline_mode = #tpu.pipeline_mode<synchronous>, transform_indices = @transform_4, window_bounds = array<i64: 1, 400>}, {transform_indices = @transform_5, window_bounds = array<i64: 1, 4, 640>}]} {
    %c0 = arith.constant 0 : index
    %c0_0 = arith.constant 0 : index
    %c0_1 = arith.constant 0 : index
    %0 = vector.load %arg2[%c0, %c0_0, %c0_1] : memref<9x4x4xbf16, #tpu.memory_space<vmem>>, vector<1x4x4xbf16>
    %1 = vector.shape_cast %0 : vector<1x4x4xbf16> to vector<4x4xbf16>
    %c0_2 = arith.constant 0 : index
    %c0_3 = arith.constant 0 : index
    %c107 = arith.constant 107 : index
    %2 = vector.load %arg1[%c0_2, %c0_3, %c107] : memref<1x4x640xbf16, #tpu.memory_space<vmem>>, vector<1x4x400xbf16>
    %3 = vector.shape_cast %2 : vector<1x4x400xbf16> to vector<4x400xbf16>
    %cst = arith.constant dense<0.000000e+00> : vector<4x400xf32>
    %4 = tpu.matmul %1, %3, %cst {dimension_numbers = #tpu.dot_dimension_numbers<[1], [0], [0], [1], [0, 0, 1, 1], [], []>} : vector<4x4xbf16>, vector<4x400xbf16>, vector<4x400xf32> -> vector<4x400xf32>
    %c1 = arith.constant 1 : index
    %c0_4 = arith.constant 0 : index
    %c0_5 = arith.constant 0 : index
    %5 = vector.load %arg2[%c1, %c0_4, %c0_5] : memref<9x4x4xbf16, #tpu.memory_space<vmem>>, vector<1x4x4xbf16>
    %6 = vector.shape_cast %5 : vector<1x4x4xbf16> to vector<4x4xbf16>
    %c0_6 = arith.constant 0 : index
    %c0_7 = arith.constant 0 : index
    %c108 = arith.constant 108 : index
    %7 = vector.load %arg1[%c0_6, %c0_7, %c108] : memref<1x4x640xbf16, #tpu.memory_space<vmem>>, vector<1x4x400xbf16>
    %8 = vector.shape_cast %7 : vector<1x4x400xbf16> to vector<4x400xbf16>
    %cst_8 = arith.constant dense<0.000000e+00> : vector<4x400xf32>
    %9 = tpu.matmul %6, %8, %cst_8 {dimension_numbers = #tpu.dot_dimension_numbers<[1], [0], [0], [1], [0, 0, 1, 1], [], []>} : vector<4x4xbf16>, vector<4x400xbf16>, vector<4x400xf32> -> vector<4x400xf32>
    %10 = arith.addf %4, %9 : vector<4x400xf32>
    %c2 = arith.constant 2 : index
    %c0_9 = arith.constant 0 : index
    %c0_10 = arith.constant 0 : index
    %11 = vector.load %arg2[%c2, %c0_9, %c0_10] : memref<9x4x4xbf16, #tpu.memory_space<vmem>>, vector<1x4x4xbf16>
    %12 = vector.shape_cast %11 : vector<1x4x4xbf16> to vector<4x4xbf16>
    %c0_11 = arith.constant 0 : index
    %c0_12 = arith.constant 0 : index
    %c109 = arith.constant 109 : index
    %13 = vector.load %arg1[%c0_11, %c0_12, %c109] : memref<1x4x640xbf16, #tpu.memory_space<vmem>>, vector<1x4x400xbf16>
    %14 = vector.shape_cast %13 : vector<1x4x400xbf16> to vector<4x400xbf16>
    %cst_13 = arith.constant dense<0.000000e+00> : vector<4x400xf32>
    %15 = tpu.matmul %12, %14, %cst_13 {dimension_numbers = #tpu.dot_dimension_numbers<[1], [0], [0], [1], [0, 0, 1, 1], [], []>} : vector<4x4xbf16>, vector<4x400xbf16>, vector<4x400xf32> -> vector<4x400xf32>
    %16 = arith.addf %10, %15 : vector<4x400xf32>
    %c3 = arith.constant 3 : index
    %c0_14 = arith.constant 0 : index
    %c0_15 = arith.constant 0 : index
    %17 = vector.load %arg2[%c3, %c0_14, %c0_15] : memref<9x4x4xbf16, #tpu.memory_space<vmem>>, vector<1x4x4xbf16>
    %18 = vector.shape_cast %17 : vector<1x4x4xbf16> to vector<4x4xbf16>
    %c0_16 = arith.constant 0 : index
    %c0_17 = arith.constant 0 : index
    %c127 = arith.constant 127 : index
    %19 = vector.load %arg1[%c0_16, %c0_17, %c127] : memref<1x4x640xbf16, #tpu.memory_space<vmem>>, vector<1x4x400xbf16>
    %20 = vector.shape_cast %19 : vector<1x4x400xbf16> to vector<4x400xbf16>
    %cst_18 = arith.constant dense<0.000000e+00> : vector<4x400xf32>
    %21 = tpu.matmul %18, %20, %cst_18 {dimension_numbers = #tpu.dot_dimension_numbers<[1], [0], [0], [1], [0, 0, 1, 1], [], []>} : vector<4x4xbf16>, vector<4x400xbf16>, vector<4x400xf32> -> vector<4x400xf32>
    %22 = arith.addf %16, %21 : vector<4x400xf32>
    %c4 = arith.constant 4 : index
    %c0_19 = arith.constant 0 : index
    %c0_20 = arith.constant 0 : index
    %23 = vector.load %arg2[%c4, %c0_19, %c0_20] : memref<9x4x4xbf16, #tpu.memory_space<vmem>>, vector<1x4x4xbf16>
    %24 = vector.shape_cast %23 : vector<1x4x4xbf16> to vector<4x4xbf16>
    %c0_21 = arith.constant 0 : index
    %c0_22 = arith.constant 0 : index
    %c128 = arith.constant 128 : index
    %25 = vector.load %arg1[%c0_21, %c0_22, %c128] : memref<1x4x640xbf16, #tpu.memory_space<vmem>>, vector<1x4x400xbf16>
    %26 = vector.shape_cast %25 : vector<1x4x400xbf16> to vector<4x400xbf16>
    %cst_23 = arith.constant dense<0.000000e+00> : vector<4x400xf32>
    %27 = tpu.matmul %24, %26, %cst_23 {dimension_numbers = #tpu.dot_dimension_numbers<[1], [0], [0], [1], [0, 0, 1, 1], [], []>} : vector<4x4xbf16>, vector<4x400xbf16>, vector<4x400xf32> -> vector<4x400xf32>
    %28 = arith.addf %22, %27 : vector<4x400xf32>
    %c5 = arith.constant 5 : index
    %c0_24 = arith.constant 0 : index
    %c0_25 = arith.constant 0 : index
    %29 = vector.load %arg2[%c5, %c0_24, %c0_25] : memref<9x4x4xbf16, #tpu.memory_space<vmem>>, vector<1x4x4xbf16>
    %30 = vector.shape_cast %29 : vector<1x4x4xbf16> to vector<4x4xbf16>
    %c0_26 = arith.constant 0 : index
    %c0_27 = arith.constant 0 : index
    %c129 = arith.constant 129 : index
    %31 = vector.load %arg1[%c0_26, %c0_27, %c129] : memref<1x4x640xbf16, #tpu.memory_space<vmem>>, vector<1x4x400xbf16>
    %32 = vector.shape_cast %31 : vector<1x4x400xbf16> to vector<4x400xbf16>
    %cst_28 = arith.constant dense<0.000000e+00> : vector<4x400xf32>
    %33 = tpu.matmul %30, %32, %cst_28 {dimension_numbers = #tpu.dot_dimension_numbers<[1], [0], [0], [1], [0, 0, 1, 1], [], []>} : vector<4x4xbf16>, vector<4x400xbf16>, vector<4x400xf32> -> vector<4x400xf32>
    %34 = arith.addf %28, %33 : vector<4x400xf32>
    %c6 = arith.constant 6 : index
    %c0_29 = arith.constant 0 : index
    %c0_30 = arith.constant 0 : index
    %35 = vector.load %arg2[%c6, %c0_29, %c0_30] : memref<9x4x4xbf16, #tpu.memory_space<vmem>>, vector<1x4x4xbf16>
    %36 = vector.shape_cast %35 : vector<1x4x4xbf16> to vector<4x4xbf16>
    %c0_31 = arith.constant 0 : index
    %c0_32 = arith.constant 0 : index
    %c147 = arith.constant 147 : index
    %37 = vector.load %arg1[%c0_31, %c0_32, %c147] : memref<1x4x640xbf16, #tpu.memory_space<vmem>>, vector<1x4x400xbf16>
    %38 = vector.shape_cast %37 : vector<1x4x400xbf16> to vector<4x400xbf16>
    %cst_33 = arith.constant dense<0.000000e+00> : vector<4x400xf32>
    %39 = tpu.matmul %36, %38, %cst_33 {dimension_numbers = #tpu.dot_dimension_numbers<[1], [0], [0], [1], [0, 0, 1, 1], [], []>} : vector<4x4xbf16>, vector<4x400xbf16>, vector<4x400xf32> -> vector<4x400xf32>
    %40 = arith.addf %34, %39 : vector<4x400xf32>
    %c7 = arith.constant 7 : index
    %c0_34 = arith.constant 0 : index
    %c0_35 = arith.constant 0 : index
    %41 = vector.load %arg2[%c7, %c0_34, %c0_35] : memref<9x4x4xbf16, #tpu.memory_space<vmem>>, vector<1x4x4xbf16>
    %42 = vector.shape_cast %41 : vector<1x4x4xbf16> to vector<4x4xbf16>
    %c0_36 = arith.constant 0 : index
    %c0_37 = arith.constant 0 : index
    %c148 = arith.constant 148 : index
    %43 = vector.load %arg1[%c0_36, %c0_37, %c148] : memref<1x4x640xbf16, #tpu.memory_space<vmem>>, vector<1x4x400xbf16>
    %44 = vector.shape_cast %43 : vector<1x4x400xbf16> to vector<4x400xbf16>
    %cst_38 = arith.constant dense<0.000000e+00> : vector<4x400xf32>
    %45 = tpu.matmul %42, %44, %cst_38 {dimension_numbers = #tpu.dot_dimension_numbers<[1], [0], [0], [1], [0, 0, 1, 1], [], []>} : vector<4x4xbf16>, vector<4x400xbf16>, vector<4x400xf32> -> vector<4x400xf32>
    %46 = arith.addf %40, %45 : vector<4x400xf32>
    %c8 = arith.constant 8 : index
    %c0_39 = arith.constant 0 : index
    %c0_40 = arith.constant 0 : index
    %47 = vector.load %arg2[%c8, %c0_39, %c0_40] : memref<9x4x4xbf16, #tpu.memory_space<vmem>>, vector<1x4x4xbf16>
    %48 = vector.shape_cast %47 : vector<1x4x4xbf16> to vector<4x4xbf16>
    %c0_41 = arith.constant 0 : index
    %c0_42 = arith.constant 0 : index
    %c149 = arith.constant 149 : index
    %49 = vector.load %arg1[%c0_41, %c0_42, %c149] : memref<1x4x640xbf16, #tpu.memory_space<vmem>>, vector<1x4x400xbf16>
    %50 = vector.shape_cast %49 : vector<1x4x400xbf16> to vector<4x400xbf16>
    %cst_43 = arith.constant dense<0.000000e+00> : vector<4x400xf32>
    %51 = tpu.matmul %48, %50, %cst_43 {dimension_numbers = #tpu.dot_dimension_numbers<[1], [0], [0], [1], [0, 0, 1, 1], [], []>} : vector<4x4xbf16>, vector<4x400xbf16>, vector<4x400xf32> -> vector<4x400xf32>
    %52 = arith.addf %46, %51 : vector<4x400xf32>
    %c0_44 = arith.constant 0 : index
    %c0_45 = arith.constant 0 : index
    %53 = vector.load %arg3[%c0_44, %c0_45] : memref<4x1xf32, #tpu.memory_space<vmem>>, vector<4x1xf32>
    %54 = vector.broadcast %53 : vector<4x1xf32> to vector<4x400xf32>
    %55 = arith.mulf %52, %54 : vector<4x400xf32>
    %c0_46 = arith.constant 0 : index
    %c0_47 = arith.constant 0 : index
    %56 = vector.load %arg4[%c0_46, %c0_47] : memref<4x1xf32, #tpu.memory_space<vmem>>, vector<4x1xf32>
    %57 = vector.broadcast %56 : vector<4x1xf32> to vector<4x400xf32>
    %58 = arith.addf %55, %57 : vector<4x400xf32>
    %59 = arith.negf %58 : vector<4x400xf32>
    %60 = math.exp %59 : vector<4x400xf32>
    %cst_48 = arith.constant 1.000000e+00 : f32
    %61 = vector.broadcast %cst_48 : f32 to vector<4x400xf32>
    %62 = arith.addf %61, %60 : vector<4x400xf32>
    %63 = arith.divf %61, %62 : vector<4x400xf32>
    %64 = arith.mulf %58, %63 : vector<4x400xf32>
    %c0_49 = arith.constant 0 : index
    %c0_50 = arith.constant 0 : index
    %65 = vector.load %arg5[%c0_49, %c0_50] : memref<1x400xf32, #tpu.memory_space<vmem>>, vector<1x400xf32>
    %66 = vector.broadcast %65 : vector<1x400xf32> to vector<4x400xf32>
    %67 = arith.mulf %64, %66 : vector<4x400xf32>
    %cst_51 = arith.constant 0.000000e+00 : bf16
    %68 = vector.broadcast %cst_51 : bf16 to vector<4x128xbf16>
    %c0_52 = arith.constant 0 : index
    %c0_53 = arith.constant 0 : index
    %c0_54 = arith.constant 0 : index
    %69 = vector.load %arg6[%c0_52, %c0_53, %c0_54] : memref<1x4x640xbf16, #tpu.memory_space<vmem>>, vector<1x4x128xbf16>
    %70 = vector.shape_cast %69 : vector<1x4x128xbf16> to vector<4x128xbf16>
    %71 = vector.shape_cast %68 : vector<4x128xbf16> to vector<1x4x128xbf16>
    tpu.vector_store %arg6[%c0_52, %c0_53, %c0_54], %71 {strides = array<i32>} : memref<1x4x640xbf16, #tpu.memory_space<vmem>>, vector<1x4x128xbf16>,
    %cst_55 = arith.constant 0.000000e+00 : bf16
    %72 = vector.broadcast %cst_55 : bf16 to vector<4x112xbf16>
    %c0_56 = arith.constant 0 : index
    %c0_57 = arith.constant 0 : index
    %c528 = arith.constant 528 : index
    %73 = vector.load %arg6[%c0_56, %c0_57, %c528] : memref<1x4x640xbf16, #tpu.memory_space<vmem>>, vector<1x4x112xbf16>
    %74 = vector.shape_cast %73 : vector<1x4x112xbf16> to vector<4x112xbf16>
    %75 = vector.shape_cast %72 : vector<4x112xbf16> to vector<1x4x112xbf16>
    tpu.vector_store %arg6[%c0_56, %c0_57, %c528], %75 {strides = array<i32>} : memref<1x4x640xbf16, #tpu.memory_space<vmem>>, vector<1x4x112xbf16>,
    %76 = arith.truncf %67 : vector<4x400xf32> to vector<4x400xbf16>
    %c0_58 = arith.constant 0 : index
    %c0_59 = arith.constant 0 : index
    %c128_60 = arith.constant 128 : index
    %77 = vector.load %arg6[%c0_58, %c0_59, %c128_60] : memref<1x4x640xbf16, #tpu.memory_space<vmem>>, vector<1x4x400xbf16>
    %78 = vector.shape_cast %77 : vector<1x4x400xbf16> to vector<4x400xbf16>
    %79 = vector.shape_cast %76 : vector<4x400xbf16> to vector<1x4x400xbf16>
    tpu.vector_store %arg6[%c0_58, %c0_59, %c128_60], %79 {strides = array<i32>} : memref<1x4x640xbf16, #tpu.memory_space<vmem>>, vector<1x4x400xbf16>,
    return
  }
  func.func @transform_0(%arg0: i32) -> (i32, i32, i32) {
    %c0_i32 = arith.constant 0 : i32
    %c0_i32_0 = arith.constant 0 : i32
    %c0_i32_1 = arith.constant 0 : i32
    return %arg0, %c0_i32, %c0_i32_0 : i32, i32, i32
  }
  func.func @transform_1(%arg0: i32) -> (i32, i32, i32) {
    %c0_i32 = arith.constant 0 : i32
    %c0_i32_0 = arith.constant 0 : i32
    %c0_i32_1 = arith.constant 0 : i32
    %c0_i32_2 = arith.constant 0 : i32
    return %c0_i32, %c0_i32_0, %c0_i32_1 : i32, i32, i32
  }
  func.func @transform_2(%arg0: i32) -> (i32, i32) {
    %c0_i32 = arith.constant 0 : i32
    %c0_i32_0 = arith.constant 0 : i32
    %c0_i32_1 = arith.constant 0 : i32
    return %c0_i32, %c0_i32_0 : i32, i32
  }
  func.func @transform_3(%arg0: i32) -> (i32, i32) {
    %c0_i32 = arith.constant 0 : i32
    %c0_i32_0 = arith.constant 0 : i32
    %c0_i32_1 = arith.constant 0 : i32
    return %c0_i32, %c0_i32_0 : i32, i32
  }
  func.func @transform_4(%arg0: i32) -> (i32, i32) {
    %c0_i32 = arith.constant 0 : i32
    %c0_i32_0 = arith.constant 0 : i32
    %c0_i32_1 = arith.constant 0 : i32
    return %c0_i32, %c0_i32_0 : i32, i32
  }
  func.func @transform_5(%arg0: i32) -> (i32, i32, i32) {
    %c0_i32 = arith.constant 0 : i32
    %c0_i32_0 = arith.constant 0 : i32
    %c0_i32_1 = arith.constant 0 : i32
    return %arg0, %c0_i32, %c0_i32_0 : i32, i32, i32
  }
}

module attributes {stable_mosaic.version = 11 : i64} {
  func.func @_cv1_kernel(%arg0: i32, %arg1: memref<1x4x640xbf16, #tpu.memory_space<vmem>>, %arg2: memref<4x4xbf16, #tpu.memory_space<vmem>>, %arg3: memref<4x4xbf16, #tpu.memory_space<vmem>>, %arg4: memref<4x1xf32, #tpu.memory_space<vmem>>, %arg5: memref<4x1xf32, #tpu.memory_space<vmem>>, %arg6: memref<4x1xf32, #tpu.memory_space<vmem>>, %arg7: memref<4x1xf32, #tpu.memory_space<vmem>>, %arg8: memref<1x640xf32, #tpu.memory_space<vmem>>, %arg9: memref<1x4x640xbf16, #tpu.memory_space<vmem>>, %arg10: memref<1x4x640xbf16, #tpu.memory_space<vmem>>) attributes {dimension_semantics = [#tpu.dimension_semantics<parallel>], iteration_bounds = array<i64: 2>, scalar_prefetch = 0 : i64, scratch_operands = 0 : i64, tpu.core_type = #tpu.core_type<tc>, window_params = [{transform_indices = @transform_0, window_bounds = array<i64: 1, 4, 640>}, {pipeline_mode = #tpu.pipeline_mode<synchronous>, transform_indices = @transform_1, window_bounds = array<i64: 4, 4>}, {pipeline_mode = #tpu.pipeline_mode<synchronous>, transform_indices = @transform_2, window_bounds = array<i64: 4, 4>}, {pipeline_mode = #tpu.pipeline_mode<synchronous>, transform_indices = @transform_3, window_bounds = array<i64: 4, 1>}, {pipeline_mode = #tpu.pipeline_mode<synchronous>, transform_indices = @transform_4, window_bounds = array<i64: 4, 1>}, {pipeline_mode = #tpu.pipeline_mode<synchronous>, transform_indices = @transform_5, window_bounds = array<i64: 4, 1>}, {pipeline_mode = #tpu.pipeline_mode<synchronous>, transform_indices = @transform_6, window_bounds = array<i64: 4, 1>}, {pipeline_mode = #tpu.pipeline_mode<synchronous>, transform_indices = @transform_7, window_bounds = array<i64: 1, 640>}, {transform_indices = @transform_8, window_bounds = array<i64: 1, 4, 640>}, {transform_indices = @transform_9, window_bounds = array<i64: 1, 4, 640>}]} {
    %c0 = arith.constant 0 : index
    %c0_0 = arith.constant 0 : index
    %c0_1 = arith.constant 0 : index
    %0 = vector.load %arg1[%c0, %c0_0, %c0_1] : memref<1x4x640xbf16, #tpu.memory_space<vmem>>, vector<1x4x640xbf16>
    %1 = vector.shape_cast %0 : vector<1x4x640xbf16> to vector<4x640xbf16>
    %c0_2 = arith.constant 0 : index
    %c0_3 = arith.constant 0 : index
    %2 = vector.load %arg8[%c0_2, %c0_3] : memref<1x640xf32, #tpu.memory_space<vmem>>, vector<1x640xf32>
    %c0_4 = arith.constant 0 : index
    %c0_5 = arith.constant 0 : index
    %3 = vector.load %arg2[%c0_4, %c0_5] : memref<4x4xbf16, #tpu.memory_space<vmem>>, vector<4x4xbf16>
    %cst = arith.constant dense<0.000000e+00> : vector<4x640xf32>
    %4 = tpu.matmul %3, %1, %cst {dimension_numbers = #tpu.dot_dimension_numbers<[1], [0], [0], [1], [0, 0, 1, 1], [], []>} : vector<4x4xbf16>, vector<4x640xbf16>, vector<4x640xf32> -> vector<4x640xf32>
    %c0_6 = arith.constant 0 : index
    %c0_7 = arith.constant 0 : index
    %5 = vector.load %arg4[%c0_6, %c0_7] : memref<4x1xf32, #tpu.memory_space<vmem>>, vector<4x1xf32>
    %6 = vector.broadcast %5 : vector<4x1xf32> to vector<4x640xf32>
    %7 = arith.mulf %4, %6 : vector<4x640xf32>
    %c0_8 = arith.constant 0 : index
    %c0_9 = arith.constant 0 : index
    %8 = vector.load %arg5[%c0_8, %c0_9] : memref<4x1xf32, #tpu.memory_space<vmem>>, vector<4x1xf32>
    %9 = vector.broadcast %8 : vector<4x1xf32> to vector<4x640xf32>
    %10 = arith.addf %7, %9 : vector<4x640xf32>
    %11 = arith.negf %10 : vector<4x640xf32>
    %12 = math.exp %11 : vector<4x640xf32>
    %cst_10 = arith.constant 1.000000e+00 : f32
    %13 = vector.broadcast %cst_10 : f32 to vector<4x640xf32>
    %14 = arith.addf %13, %12 : vector<4x640xf32>
    %15 = arith.divf %13, %14 : vector<4x640xf32>
    %16 = arith.mulf %10, %15 : vector<4x640xf32>
    %17 = vector.broadcast %2 : vector<1x640xf32> to vector<4x640xf32>
    %18 = arith.mulf %16, %17 : vector<4x640xf32>
    %19 = arith.truncf %18 : vector<4x640xf32> to vector<4x640xbf16>
    %c0_11 = arith.constant 0 : index
    %c0_12 = arith.constant 0 : index
    %c0_13 = arith.constant 0 : index
    %20 = vector.load %arg9[%c0_11, %c0_12, %c0_13] : memref<1x4x640xbf16, #tpu.memory_space<vmem>>, vector<1x4x640xbf16>
    %21 = vector.shape_cast %20 : vector<1x4x640xbf16> to vector<4x640xbf16>
    %22 = vector.shape_cast %19 : vector<4x640xbf16> to vector<1x4x640xbf16>
    tpu.vector_store %arg9[%c0_11, %c0_12, %c0_13], %22 {strides = array<i32>} : memref<1x4x640xbf16, #tpu.memory_space<vmem>>, vector<1x4x640xbf16>,
    %c0_14 = arith.constant 0 : index
    %c0_15 = arith.constant 0 : index
    %23 = vector.load %arg3[%c0_14, %c0_15] : memref<4x4xbf16, #tpu.memory_space<vmem>>, vector<4x4xbf16>
    %cst_16 = arith.constant dense<0.000000e+00> : vector<4x640xf32>
    %24 = tpu.matmul %23, %1, %cst_16 {dimension_numbers = #tpu.dot_dimension_numbers<[1], [0], [0], [1], [0, 0, 1, 1], [], []>} : vector<4x4xbf16>, vector<4x640xbf16>, vector<4x640xf32> -> vector<4x640xf32>
    %c0_17 = arith.constant 0 : index
    %c0_18 = arith.constant 0 : index
    %25 = vector.load %arg6[%c0_17, %c0_18] : memref<4x1xf32, #tpu.memory_space<vmem>>, vector<4x1xf32>
    %26 = vector.broadcast %25 : vector<4x1xf32> to vector<4x640xf32>
    %27 = arith.mulf %24, %26 : vector<4x640xf32>
    %c0_19 = arith.constant 0 : index
    %c0_20 = arith.constant 0 : index
    %28 = vector.load %arg7[%c0_19, %c0_20] : memref<4x1xf32, #tpu.memory_space<vmem>>, vector<4x1xf32>
    %29 = vector.broadcast %28 : vector<4x1xf32> to vector<4x640xf32>
    %30 = arith.addf %27, %29 : vector<4x640xf32>
    %31 = arith.negf %30 : vector<4x640xf32>
    %32 = math.exp %31 : vector<4x640xf32>
    %cst_21 = arith.constant 1.000000e+00 : f32
    %33 = vector.broadcast %cst_21 : f32 to vector<4x640xf32>
    %34 = arith.addf %33, %32 : vector<4x640xf32>
    %35 = arith.divf %33, %34 : vector<4x640xf32>
    %36 = arith.mulf %30, %35 : vector<4x640xf32>
    %37 = vector.broadcast %2 : vector<1x640xf32> to vector<4x640xf32>
    %38 = arith.mulf %36, %37 : vector<4x640xf32>
    %39 = arith.truncf %38 : vector<4x640xf32> to vector<4x640xbf16>
    %c0_22 = arith.constant 0 : index
    %c0_23 = arith.constant 0 : index
    %c0_24 = arith.constant 0 : index
    %40 = vector.load %arg10[%c0_22, %c0_23, %c0_24] : memref<1x4x640xbf16, #tpu.memory_space<vmem>>, vector<1x4x640xbf16>
    %41 = vector.shape_cast %40 : vector<1x4x640xbf16> to vector<4x640xbf16>
    %42 = vector.shape_cast %39 : vector<4x640xbf16> to vector<1x4x640xbf16>
    tpu.vector_store %arg10[%c0_22, %c0_23, %c0_24], %42 {strides = array<i32>} : memref<1x4x640xbf16, #tpu.memory_space<vmem>>, vector<1x4x640xbf16>,
    return
  }
  func.func @transform_0(%arg0: i32) -> (i32, i32, i32) {
    %c0_i32 = arith.constant 0 : i32
    %c0_i32_0 = arith.constant 0 : i32
    %c0_i32_1 = arith.constant 0 : i32
    return %arg0, %c0_i32, %c0_i32_0 : i32, i32, i32
  }
  func.func @transform_1(%arg0: i32) -> (i32, i32) {
    %c0_i32 = arith.constant 0 : i32
    %c0_i32_0 = arith.constant 0 : i32
    %c0_i32_1 = arith.constant 0 : i32
    return %c0_i32, %c0_i32_0 : i32, i32
  }
  func.func @transform_2(%arg0: i32) -> (i32, i32) {
    %c0_i32 = arith.constant 0 : i32
    %c0_i32_0 = arith.constant 0 : i32
    %c0_i32_1 = arith.constant 0 : i32
    return %c0_i32, %c0_i32_0 : i32, i32
  }
  func.func @transform_3(%arg0: i32) -> (i32, i32) {
    %c0_i32 = arith.constant 0 : i32
    %c0_i32_0 = arith.constant 0 : i32
    %c0_i32_1 = arith.constant 0 : i32
    return %c0_i32, %c0_i32_0 : i32, i32
  }
  func.func @transform_4(%arg0: i32) -> (i32, i32) {
    %c0_i32 = arith.constant 0 : i32
    %c0_i32_0 = arith.constant 0 : i32
    %c0_i32_1 = arith.constant 0 : i32
    return %c0_i32, %c0_i32_0 : i32, i32
  }
  func.func @transform_5(%arg0: i32) -> (i32, i32) {
    %c0_i32 = arith.constant 0 : i32
    %c0_i32_0 = arith.constant 0 : i32
    %c0_i32_1 = arith.constant 0 : i32
    return %c0_i32, %c0_i32_0 : i32, i32
  }
  func.func @transform_6(%arg0: i32) -> (i32, i32) {
    %c0_i32 = arith.constant 0 : i32
    %c0_i32_0 = arith.constant 0 : i32
    %c0_i32_1 = arith.constant 0 : i32
    return %c0_i32, %c0_i32_0 : i32, i32
  }
  func.func @transform_7(%arg0: i32) -> (i32, i32) {
    %c0_i32 = arith.constant 0 : i32
    %c0_i32_0 = arith.constant 0 : i32
    %c0_i32_1 = arith.constant 0 : i32
    return %c0_i32, %c0_i32_0 : i32, i32
  }
  func.func @transform_8(%arg0: i32) -> (i32, i32, i32) {
    %c0_i32 = arith.constant 0 : i32
    %c0_i32_0 = arith.constant 0 : i32
    %c0_i32_1 = arith.constant 0 : i32
    return %arg0, %c0_i32, %c0_i32_0 : i32, i32, i32
  }
  func.func @transform_9(%arg0: i32) -> (i32, i32, i32) {
    %c0_i32 = arith.constant 0 : i32
    %c0_i32_0 = arith.constant 0 : i32
    %c0_i32_1 = arith.constant 0 : i32
    return %arg0, %c0_i32, %c0_i32_0 : i32, i32, i32
  }
}

module attributes {stable_mosaic.version = 11 : i64} {
  func.func @_cv2_pool_kernel(%arg0: i32, %arg1: memref<1x4x640xbf16, #tpu.memory_space<vmem>>, %arg2: memref<1x4x640xbf16, #tpu.memory_space<vmem>>, %arg3: memref<1x4x640xbf16, #tpu.memory_space<vmem>>, %arg4: memref<8x4xbf16, #tpu.memory_space<vmem>>, %arg5: memref<8x4xbf16, #tpu.memory_space<vmem>>, %arg6: memref<8x4xbf16, #tpu.memory_space<vmem>>, %arg7: memref<8x1xf32, #tpu.memory_space<vmem>>, %arg8: memref<8x1xf32, #tpu.memory_space<vmem>>, %arg9: memref<1x640xf32, #tpu.memory_space<vmem>>, %arg10: memref<1x8x640xbf16, #tpu.memory_space<vmem>>, %arg11: memref<1x8x1xf32, #tpu.memory_space<vmem>>) attributes {dimension_semantics = [#tpu.dimension_semantics<parallel>], iteration_bounds = array<i64: 2>, scalar_prefetch = 0 : i64, scratch_operands = 0 : i64, tpu.core_type = #tpu.core_type<tc>, window_params = [{transform_indices = @transform_0, window_bounds = array<i64: 1, 4, 640>}, {transform_indices = @transform_1, window_bounds = array<i64: 1, 4, 640>}, {transform_indices = @transform_2, window_bounds = array<i64: 1, 4, 640>}, {pipeline_mode = #tpu.pipeline_mode<synchronous>, transform_indices = @transform_3, window_bounds = array<i64: 8, 4>}, {pipeline_mode = #tpu.pipeline_mode<synchronous>, transform_indices = @transform_4, window_bounds = array<i64: 8, 4>}, {pipeline_mode = #tpu.pipeline_mode<synchronous>, transform_indices = @transform_5, window_bounds = array<i64: 8, 4>}, {pipeline_mode = #tpu.pipeline_mode<synchronous>, transform_indices = @transform_6, window_bounds = array<i64: 8, 1>}, {pipeline_mode = #tpu.pipeline_mode<synchronous>, transform_indices = @transform_7, window_bounds = array<i64: 8, 1>}, {pipeline_mode = #tpu.pipeline_mode<synchronous>, transform_indices = @transform_8, window_bounds = array<i64: 1, 640>}, {transform_indices = @transform_9, window_bounds = array<i64: 1, 8, 640>}, {transform_indices = @transform_10, window_bounds = array<i64: 1, 8, 1>}]} {
    %c0 = arith.constant 0 : index
    %c0_0 = arith.constant 0 : index
    %0 = vector.load %arg4[%c0, %c0_0] : memref<8x4xbf16, #tpu.memory_space<vmem>>, vector<8x4xbf16>
    %c0_1 = arith.constant 0 : index
    %c0_2 = arith.constant 0 : index
    %c0_3 = arith.constant 0 : index
    %1 = vector.load %arg1[%c0_1, %c0_2, %c0_3] : memref<1x4x640xbf16, #tpu.memory_space<vmem>>, vector<1x4x640xbf16>
    %2 = vector.shape_cast %1 : vector<1x4x640xbf16> to vector<4x640xbf16>
    %cst = arith.constant dense<0.000000e+00> : vector<8x640xf32>
    %3 = tpu.matmul %0, %2, %cst {dimension_numbers = #tpu.dot_dimension_numbers<[1], [0], [0], [1], [0, 0, 1, 1], [], []>} : vector<8x4xbf16>, vector<4x640xbf16>, vector<8x640xf32> -> vector<8x640xf32>
    %c0_4 = arith.constant 0 : index
    %c0_5 = arith.constant 0 : index
    %4 = vector.load %arg5[%c0_4, %c0_5] : memref<8x4xbf16, #tpu.memory_space<vmem>>, vector<8x4xbf16>
    %c0_6 = arith.constant 0 : index
    %c0_7 = arith.constant 0 : index
    %c0_8 = arith.constant 0 : index
    %5 = vector.load %arg2[%c0_6, %c0_7, %c0_8] : memref<1x4x640xbf16, #tpu.memory_space<vmem>>, vector<1x4x640xbf16>
    %6 = vector.shape_cast %5 : vector<1x4x640xbf16> to vector<4x640xbf16>
    %cst_9 = arith.constant dense<0.000000e+00> : vector<8x640xf32>
    %7 = tpu.matmul %4, %6, %cst_9 {dimension_numbers = #tpu.dot_dimension_numbers<[1], [0], [0], [1], [0, 0, 1, 1], [], []>} : vector<8x4xbf16>, vector<4x640xbf16>, vector<8x640xf32> -> vector<8x640xf32>
    %8 = arith.addf %3, %7 : vector<8x640xf32>
    %c0_10 = arith.constant 0 : index
    %c0_11 = arith.constant 0 : index
    %9 = vector.load %arg6[%c0_10, %c0_11] : memref<8x4xbf16, #tpu.memory_space<vmem>>, vector<8x4xbf16>
    %c0_12 = arith.constant 0 : index
    %c0_13 = arith.constant 0 : index
    %c0_14 = arith.constant 0 : index
    %10 = vector.load %arg3[%c0_12, %c0_13, %c0_14] : memref<1x4x640xbf16, #tpu.memory_space<vmem>>, vector<1x4x640xbf16>
    %11 = vector.shape_cast %10 : vector<1x4x640xbf16> to vector<4x640xbf16>
    %cst_15 = arith.constant dense<0.000000e+00> : vector<8x640xf32>
    %12 = tpu.matmul %9, %11, %cst_15 {dimension_numbers = #tpu.dot_dimension_numbers<[1], [0], [0], [1], [0, 0, 1, 1], [], []>} : vector<8x4xbf16>, vector<4x640xbf16>, vector<8x640xf32> -> vector<8x640xf32>
    %13 = arith.addf %8, %12 : vector<8x640xf32>
    %c0_16 = arith.constant 0 : index
    %c0_17 = arith.constant 0 : index
    %14 = vector.load %arg7[%c0_16, %c0_17] : memref<8x1xf32, #tpu.memory_space<vmem>>, vector<8x1xf32>
    %15 = vector.broadcast %14 : vector<8x1xf32> to vector<8x640xf32>
    %16 = arith.mulf %13, %15 : vector<8x640xf32>
    %c0_18 = arith.constant 0 : index
    %c0_19 = arith.constant 0 : index
    %17 = vector.load %arg8[%c0_18, %c0_19] : memref<8x1xf32, #tpu.memory_space<vmem>>, vector<8x1xf32>
    %18 = vector.broadcast %17 : vector<8x1xf32> to vector<8x640xf32>
    %19 = arith.addf %16, %18 : vector<8x640xf32>
    %20 = arith.negf %19 : vector<8x640xf32>
    %21 = math.exp %20 : vector<8x640xf32>
    %cst_20 = arith.constant 1.000000e+00 : f32
    %22 = vector.broadcast %cst_20 : f32 to vector<8x640xf32>
    %23 = arith.addf %22, %21 : vector<8x640xf32>
    %24 = arith.divf %22, %23 : vector<8x640xf32>
    %25 = arith.mulf %19, %24 : vector<8x640xf32>
    %c0_21 = arith.constant 0 : index
    %c0_22 = arith.constant 0 : index
    %26 = vector.load %arg9[%c0_21, %c0_22] : memref<1x640xf32, #tpu.memory_space<vmem>>, vector<1x640xf32>
    %27 = vector.broadcast %26 : vector<1x640xf32> to vector<8x640xf32>
    %28 = arith.mulf %25, %27 : vector<8x640xf32>
    %29 = arith.truncf %28 : vector<8x640xf32> to vector<8x640xbf16>
    %c0_23 = arith.constant 0 : index
    %c0_24 = arith.constant 0 : index
    %c0_25 = arith.constant 0 : index
    %30 = vector.load %arg10[%c0_23, %c0_24, %c0_25] : memref<1x8x640xbf16, #tpu.memory_space<vmem>>, vector<1x8x640xbf16>
    %31 = vector.shape_cast %30 : vector<1x8x640xbf16> to vector<8x640xbf16>
    %32 = vector.shape_cast %29 : vector<8x640xbf16> to vector<1x8x640xbf16>
    tpu.vector_store %arg10[%c0_23, %c0_24, %c0_25], %32 {strides = array<i32>} : memref<1x8x640xbf16, #tpu.memory_space<vmem>>, vector<1x8x640xbf16>,
    %cst_26 = arith.constant dense<0.000000e+00> : vector<8xf32>
    %33 = vector.multi_reduction <add>, %28, %cst_26 [1] : vector<8x640xf32> to vector<8xf32>
    %34 = vector.shape_cast %33 : vector<8xf32> to vector<8x1xf32>
    %c0_27 = arith.constant 0 : index
    %c0_28 = arith.constant 0 : index
    %c0_29 = arith.constant 0 : index
    %35 = vector.load %arg11[%c0_27, %c0_28, %c0_29] : memref<1x8x1xf32, #tpu.memory_space<vmem>>, vector<1x8x1xf32>
    %36 = vector.shape_cast %35 : vector<1x8x1xf32> to vector<8x1xf32>
    %37 = vector.shape_cast %34 : vector<8x1xf32> to vector<1x8x1xf32>
    tpu.vector_store %arg11[%c0_27, %c0_28, %c0_29], %37 {strides = array<i32>} : memref<1x8x1xf32, #tpu.memory_space<vmem>>, vector<1x8x1xf32>,
    return
  }
  func.func @transform_0(%arg0: i32) -> (i32, i32, i32) {
    %c0_i32 = arith.constant 0 : i32
    %c0_i32_0 = arith.constant 0 : i32
    %c0_i32_1 = arith.constant 0 : i32
    return %arg0, %c0_i32, %c0_i32_0 : i32, i32, i32
  }
  func.func @transform_1(%arg0: i32) -> (i32, i32, i32) {
    %c0_i32 = arith.constant 0 : i32
    %c0_i32_0 = arith.constant 0 : i32
    %c0_i32_1 = arith.constant 0 : i32
    return %arg0, %c0_i32, %c0_i32_0 : i32, i32, i32
  }
  func.func @transform_2(%arg0: i32) -> (i32, i32, i32) {
    %c0_i32 = arith.constant 0 : i32
    %c0_i32_0 = arith.constant 0 : i32
    %c0_i32_1 = arith.constant 0 : i32
    return %arg0, %c0_i32, %c0_i32_0 : i32, i32, i32
  }
  func.func @transform_3(%arg0: i32) -> (i32, i32) {
    %c0_i32 = arith.constant 0 : i32
    %c0_i32_0 = arith.constant 0 : i32
    %c0_i32_1 = arith.constant 0 : i32
    return %c0_i32, %c0_i32_0 : i32, i32
  }
  func.func @transform_4(%arg0: i32) -> (i32, i32) {
    %c0_i32 = arith.constant 0 : i32
    %c0_i32_0 = arith.constant 0 : i32
    %c0_i32_1 = arith.constant 0 : i32
    return %c0_i32, %c0_i32_0 : i32, i32
  }
  func.func @transform_5(%arg0: i32) -> (i32, i32) {
    %c0_i32 = arith.constant 0 : i32
    %c0_i32_0 = arith.constant 0 : i32
    %c0_i32_1 = arith.constant 0 : i32
    return %c0_i32, %c0_i32_0 : i32, i32
  }
  func.func @transform_6(%arg0: i32) -> (i32, i32) {
    %c0_i32 = arith.constant 0 : i32
    %c0_i32_0 = arith.constant 0 : i32
    %c0_i32_1 = arith.constant 0 : i32
    return %c0_i32, %c0_i32_0 : i32, i32
  }
  func.func @transform_7(%arg0: i32) -> (i32, i32) {
    %c0_i32 = arith.constant 0 : i32
    %c0_i32_0 = arith.constant 0 : i32
    %c0_i32_1 = arith.constant 0 : i32
    return %c0_i32, %c0_i32_0 : i32, i32
  }
  func.func @transform_8(%arg0: i32) -> (i32, i32) {
    %c0_i32 = arith.constant 0 : i32
    %c0_i32_0 = arith.constant 0 : i32
    %c0_i32_1 = arith.constant 0 : i32
    return %c0_i32, %c0_i32_0 : i32, i32
  }
  func.func @transform_9(%arg0: i32) -> (i32, i32, i32) {
    %c0_i32 = arith.constant 0 : i32
    %c0_i32_0 = arith.constant 0 : i32
    %c0_i32_1 = arith.constant 0 : i32
    return %arg0, %c0_i32, %c0_i32_0 : i32, i32, i32
  }
  func.func @transform_10(%arg0: i32) -> (i32, i32, i32) {
    %c0_i32 = arith.constant 0 : i32
    %c0_i32_0 = arith.constant 0 : i32
    %c0_i32_1 = arith.constant 0 : i32
    return %arg0, %c0_i32, %c0_i32_0 : i32, i32, i32
  }
}

module attributes {stable_mosaic.version = 11 : i64} {
  func.func @_lca_fused_kernel(%arg0: i32, %arg1: memref<1x8x640xbf16, #tpu.memory_space<vmem>>, %arg2: memref<1x8x1xf32, #tpu.memory_space<vmem>>, %arg3: memref<4x8x3xf32, #tpu.memory_space<vmem>>, %arg4: memref<4x1x8xf32, #tpu.memory_space<vmem>>, %arg5: memref<4x8x1xf32, #tpu.memory_space<vmem>>, %arg6: memref<1x8xf32, #tpu.memory_space<vmem>>, %arg7: memref<2x1xf32, #tpu.memory_space<vmem>>, %arg8: memref<2x1xf32, #tpu.memory_space<vmem>>, %arg9: memref<2x1xf32, #tpu.memory_space<vmem>>, %arg10: memref<1x2xf32, #tpu.memory_space<vmem>>, %arg11: memref<8x1xf32, #tpu.memory_space<vmem>>, %arg12: memref<8x1xf32, #tpu.memory_space<vmem>>, %arg13: memref<8x1xf32, #tpu.memory_space<vmem>>, %arg14: memref<1x400xf32, #tpu.memory_space<vmem>>, %arg15: memref<1x8x640xf32, #tpu.memory_space<vmem>>, %arg16: memref<8x640xf32, #tpu.memory_space<vmem>>, %arg17: memref<8x640xf32, #tpu.memory_space<vmem>>) attributes {dimension_semantics = [#tpu.dimension_semantics<parallel>], iteration_bounds = array<i64: 2>, scalar_prefetch = 0 : i64, scratch_operands = 2 : i64, tpu.core_type = #tpu.core_type<tc>, window_params = [{transform_indices = @transform_0, window_bounds = array<i64: 1, 8, 640>}, {transform_indices = @transform_1, window_bounds = array<i64: 1, 8, 1>}, {pipeline_mode = #tpu.pipeline_mode<synchronous>, transform_indices = @transform_2, window_bounds = array<i64: 4, 8, 3>}, {pipeline_mode = #tpu.pipeline_mode<synchronous>, transform_indices = @transform_3, window_bounds = array<i64: 4, 1, 8>}, {pipeline_mode = #tpu.pipeline_mode<synchronous>, transform_indices = @transform_4, window_bounds = array<i64: 4, 8, 1>}, {pipeline_mode = #tpu.pipeline_mode<synchronous>, transform_indices = @transform_5, window_bounds = array<i64: 1, 8>}, {pipeline_mode = #tpu.pipeline_mode<synchronous>, transform_indices = @transform_6, window_bounds = array<i64: 2, 1>}, {pipeline_mode = #tpu.pipeline_mode<synchronous>, transform_indices = @transform_7, window_bounds = array<i64: 2, 1>}, {pipeline_mode = #tpu.pipeline_mode<synchronous>, transform_indices = @transform_8, window_bounds = array<i64: 2, 1>}, {pipeline_mode = #tpu.pipeline_mode<synchronous>, transform_indices = @transform_9, window_bounds = array<i64: 1, 2>}, {pipeline_mode = #tpu.pipeline_mode<synchronous>, transform_indices = @transform_10, window_bounds = array<i64: 8, 1>}, {pipeline_mode = #tpu.pipeline_mode<synchronous>, transform_indices = @transform_11, window_bounds = array<i64: 8, 1>}, {pipeline_mode = #tpu.pipeline_mode<synchronous>, transform_indices = @transform_12, window_bounds = array<i64: 8, 1>}, {pipeline_mode = #tpu.pipeline_mode<synchronous>, transform_indices = @transform_13, window_bounds = array<i64: 1, 400>}, {transform_indices = @transform_14, window_bounds = array<i64: 1, 8, 640>}]} {
    %c0 = arith.constant 0 : index
    %c0_0 = arith.constant 0 : index
    %c0_1 = arith.constant 0 : index
    %0 = vector.load %arg1[%c0, %c0_0, %c0_1] : memref<1x8x640xbf16, #tpu.memory_space<vmem>>, vector<1x8x640xbf16>
    %1 = vector.shape_cast %0 : vector<1x8x640xbf16> to vector<8x640xbf16>
    %2 = arith.extf %1 : vector<8x640xbf16> to vector<8x640xf32>
    %3 = arith.mulf %2, %2 : vector<8x640xf32>
    %c0_2 = arith.constant 0 : index
    %c0_3 = arith.constant 0 : index
    %c0_4 = arith.constant 0 : index
    %4 = vector.load %arg2[%c0_2, %c0_3, %c0_4] : memref<1x8x1xf32, #tpu.memory_space<vmem>>, vector<1x8x1xf32>
    %5 = vector.shape_cast %4 : vector<1x8x1xf32> to vector<8x1xf32>
    %6 = vector.broadcast %5 : vector<8x1xf32> to vector<8x640xf32>
    %7 = arith.mulf %3, %6 : vector<8x640xf32>
    %c0_5 = arith.constant 0 : index
    %c0_6 = arith.constant 0 : index
    %8 = vector.load %arg16[%c0_5, %c0_6] : memref<8x640xf32, #tpu.memory_space<vmem>>, vector<8x640xf32>
    tpu.vector_store %arg16[%c0_5, %c0_6], %7 {strides = array<i32>} : memref<8x640xf32, #tpu.memory_space<vmem>>, vector<8x640xf32>,
    %cst = arith.constant 0.000000e+00 : f32
    %9 = vector.broadcast %cst : f32 to vector<8x128xf32>
    %c0_7 = arith.constant 0 : index
    %c0_8 = arith.constant 0 : index
    %10 = vector.load %arg17[%c0_7, %c0_8] : memref<8x640xf32, #tpu.memory_space<vmem>>, vector<8x128xf32>
    tpu.vector_store %arg17[%c0_7, %c0_8], %9 {strides = array<i32>} : memref<8x640xf32, #tpu.memory_space<vmem>>, vector<8x128xf32>,
    %cst_9 = arith.constant 0.000000e+00 : f32
    %11 = vector.broadcast %cst_9 : f32 to vector<8x112xf32>
    %c0_10 = arith.constant 0 : index
    %c528 = arith.constant 528 : index
    %12 = vector.load %arg17[%c0_10, %c528] : memref<8x640xf32, #tpu.memory_space<vmem>>, vector<8x112xf32>
    tpu.vector_store %arg17[%c0_10, %c528], %11 {strides = array<i32>} : memref<8x640xf32, #tpu.memory_space<vmem>>, vector<8x112xf32>,
    %c0_11 = arith.constant 0 : index
    %c0_12 = arith.constant 0 : index
    %13 = vector.load %arg14[%c0_11, %c0_12] : memref<1x400xf32, #tpu.memory_space<vmem>>, vector<1x400xf32>
    %c0_13 = arith.constant 0 : index
    %c0_14 = arith.constant 0 : index
    %c0_15 = arith.constant 0 : index
    %14 = vector.load %arg3[%c0_13, %c0_14, %c0_15] : memref<4x8x3xf32, #tpu.memory_space<vmem>>, vector<1x8x3xf32>
    %15 = vector.shape_cast %14 : vector<1x8x3xf32> to vector<8x3xf32>
    %c0_16 = arith.constant 0 : index
    %c127 = arith.constant 127 : index
    %16 = vector.load %arg16[%c0_16, %c127] : memref<8x640xf32, #tpu.memory_space<vmem>>, vector<8x400xf32>
    %17 = vector.extract_strided_slice %15 {offsets = [0, 0], sizes = [8, 1], strides = [1, 1]} : vector<8x3xf32> to vector<8x1xf32>
    %18 = vector.broadcast %17 : vector<8x1xf32> to vector<8x400xf32>
    %19 = arith.mulf %16, %18 : vector<8x400xf32>
    %c0_17 = arith.constant 0 : index
    %c128 = arith.constant 128 : index
    %20 = vector.load %arg16[%c0_17, %c128] : memref<8x640xf32, #tpu.memory_space<vmem>>, vector<8x400xf32>
    %21 = vector.extract_strided_slice %15 {offsets = [0, 1], sizes = [8, 1], strides = [1, 1]} : vector<8x3xf32> to vector<8x1xf32>
    %22 = vector.broadcast %21 : vector<8x1xf32> to vector<8x400xf32>
    %23 = arith.mulf %20, %22 : vector<8x400xf32>
    %24 = arith.addf %19, %23 : vector<8x400xf32>
    %c0_18 = arith.constant 0 : index
    %c129 = arith.constant 129 : index
    %25 = vector.load %arg16[%c0_18, %c129] : memref<8x640xf32, #tpu.memory_space<vmem>>, vector<8x400xf32>
    %26 = vector.extract_strided_slice %15 {offsets = [0, 2], sizes = [8, 1], strides = [1, 1]} : vector<8x3xf32> to vector<8x1xf32>
    %27 = vector.broadcast %26 : vector<8x1xf32> to vector<8x400xf32>
    %28 = arith.mulf %25, %27 : vector<8x400xf32>
    %29 = arith.addf %24, %28 : vector<8x400xf32>
    %c0_19 = arith.constant 0 : index
    %c0_20 = arith.constant 0 : index
    %c0_21 = arith.constant 0 : index
    %30 = vector.load %arg4[%c0_19, %c0_20, %c0_21] : memref<4x1x8xf32, #tpu.memory_space<vmem>>, vector<1x1x8xf32>
    %31 = vector.shape_cast %30 : vector<1x1x8xf32> to vector<1x8xf32>
    %cst_22 = arith.constant dense<0.000000e+00> : vector<1x400xf32>
    %32 = tpu.matmul %31, %29, %cst_22 {dimension_numbers = #tpu.dot_dimension_numbers<[1], [0], [0], [1], [0, 0, 1, 1], [], []>} : vector<1x8xf32>, vector<8x400xf32>, vector<1x400xf32> -> vector<1x400xf32>
    %c0_23 = arith.constant 0 : index
    %c0_24 = arith.constant 0 : index
    %c0_25 = arith.constant 0 : index
    %33 = vector.load %arg5[%c0_23, %c0_24, %c0_25] : memref<4x8x1xf32, #tpu.memory_space<vmem>>, vector<1x8x1xf32>
    %34 = vector.shape_cast %33 : vector<1x8x1xf32> to vector<8x1xf32>
    %35 = vector.broadcast %34 : vector<8x1xf32> to vector<8x400xf32>
    %36 = vector.broadcast %32 : vector<1x400xf32> to vector<8x400xf32>
    %37 = arith.mulf %35, %36 : vector<8x400xf32>
    %38 = vector.broadcast %13 : vector<1x400xf32> to vector<8x400xf32>
    %39 = arith.mulf %37, %38 : vector<8x400xf32>
    %c0_26 = arith.constant 0 : index
    %c128_27 = arith.constant 128 : index
    %40 = vector.load %arg17[%c0_26, %c128_27] : memref<8x640xf32, #tpu.memory_space<vmem>>, vector<8x400xf32>
    tpu.vector_store %arg17[%c0_26, %c128_27], %39 {strides = array<i32>} : memref<8x640xf32, #tpu.memory_space<vmem>>, vector<8x400xf32>,
    %c1 = arith.constant 1 : index
    %c0_28 = arith.constant 0 : index
    %c0_29 = arith.constant 0 : index
    %41 = vector.load %arg3[%c1, %c0_28, %c0_29] : memref<4x8x3xf32, #tpu.memory_space<vmem>>, vector<1x8x3xf32>
    %42 = vector.shape_cast %41 : vector<1x8x3xf32> to vector<8x3xf32>
    %c0_30 = arith.constant 0 : index
    %c108 = arith.constant 108 : index
    %43 = vector.load %arg17[%c0_30, %c108] : memref<8x640xf32, #tpu.memory_space<vmem>>, vector<8x400xf32>
    %44 = vector.extract_strided_slice %42 {offsets = [0, 0], sizes = [8, 1], strides = [1, 1]} : vector<8x3xf32> to vector<8x1xf32>
    %45 = vector.broadcast %44 : vector<8x1xf32> to vector<8x400xf32>
    %46 = arith.mulf %43, %45 : vector<8x400xf32>
    %c0_31 = arith.constant 0 : index
    %c128_32 = arith.constant 128 : index
    %47 = vector.load %arg17[%c0_31, %c128_32] : memref<8x640xf32, #tpu.memory_space<vmem>>, vector<8x400xf32>
    %48 = vector.extract_strided_slice %42 {offsets = [0, 1], sizes = [8, 1], strides = [1, 1]} : vector<8x3xf32> to vector<8x1xf32>
    %49 = vector.broadcast %48 : vector<8x1xf32> to vector<8x400xf32>
    %50 = arith.mulf %47, %49 : vector<8x400xf32>
    %51 = arith.addf %46, %50 : vector<8x400xf32>
    %c0_33 = arith.constant 0 : index
    %c148 = arith.constant 148 : index
    %52 = vector.load %arg17[%c0_33, %c148] : memref<8x640xf32, #tpu.memory_space<vmem>>, vector<8x400xf32>
    %53 = vector.extract_strided_slice %42 {offsets = [0, 2], sizes = [8, 1], strides = [1, 1]} : vector<8x3xf32> to vector<8x1xf32>
    %54 = vector.broadcast %53 : vector<8x1xf32> to vector<8x400xf32>
    %55 = arith.mulf %52, %54 : vector<8x400xf32>
    %56 = arith.addf %51, %55 : vector<8x400xf32>
    %c1_34 = arith.constant 1 : index
    %c0_35 = arith.constant 0 : index
    %c0_36 = arith.constant 0 : index
    %57 = vector.load %arg4[%c1_34, %c0_35, %c0_36] : memref<4x1x8xf32, #tpu.memory_space<vmem>>, vector<1x1x8xf32>
    %58 = vector.shape_cast %57 : vector<1x1x8xf32> to vector<1x8xf32>
    %cst_37 = arith.constant dense<0.000000e+00> : vector<1x400xf32>
    %59 = tpu.matmul %58, %56, %cst_37 {dimension_numbers = #tpu.dot_dimension_numbers<[1], [0], [0], [1], [0, 0, 1, 1], [], []>} : vector<1x8xf32>, vector<8x400xf32>, vector<1x400xf32> -> vector<1x400xf32>
    %c1_38 = arith.constant 1 : index
    %c0_39 = arith.constant 0 : index
    %c0_40 = arith.constant 0 : index
    %60 = vector.load %arg5[%c1_38, %c0_39, %c0_40] : memref<4x8x1xf32, #tpu.memory_space<vmem>>, vector<1x8x1xf32>
    %61 = vector.shape_cast %60 : vector<1x8x1xf32> to vector<8x1xf32>
    %62 = vector.broadcast %61 : vector<8x1xf32> to vector<8x400xf32>
    %63 = vector.broadcast %59 : vector<1x400xf32> to vector<8x400xf32>
    %64 = arith.mulf %62, %63 : vector<8x400xf32>
    %65 = vector.broadcast %13 : vector<1x400xf32> to vector<8x400xf32>
    %66 = arith.mulf %64, %65 : vector<8x400xf32>
    %c0_41 = arith.constant 0 : index
    %c128_42 = arith.constant 128 : index
    %67 = vector.load %arg17[%c0_41, %c128_42] : memref<8x640xf32, #tpu.memory_space<vmem>>, vector<8x400xf32>
    tpu.vector_store %arg17[%c0_41, %c128_42], %66 {strides = array<i32>} : memref<8x640xf32, #tpu.memory_space<vmem>>, vector<8x400xf32>,
    %c2 = arith.constant 2 : index
    %c0_43 = arith.constant 0 : index
    %c0_44 = arith.constant 0 : index
    %68 = vector.load %arg3[%c2, %c0_43, %c0_44] : memref<4x8x3xf32, #tpu.memory_space<vmem>>, vector<1x8x3xf32>
    %69 = vector.shape_cast %68 : vector<1x8x3xf32> to vector<8x3xf32>
    %c0_45 = arith.constant 0 : index
    %c126 = arith.constant 126 : index
    %70 = vector.load %arg17[%c0_45, %c126] : memref<8x640xf32, #tpu.memory_space<vmem>>, vector<8x400xf32>
    %71 = vector.extract_strided_slice %69 {offsets = [0, 0], sizes = [8, 1], strides = [1, 1]} : vector<8x3xf32> to vector<8x1xf32>
    %72 = vector.broadcast %71 : vector<8x1xf32> to vector<8x400xf32>
    %73 = arith.mulf %70, %72 : vector<8x400xf32>
    %c0_46 = arith.constant 0 : index
    %c128_47 = arith.constant 128 : index
    %74 = vector.load %arg17[%c0_46, %c128_47] : memref<8x640xf32, #tpu.memory_space<vmem>>, vector<8x400xf32>
    %75 = vector.extract_strided_slice %69 {offsets = [0, 1], sizes = [8, 1], strides = [1, 1]} : vector<8x3xf32> to vector<8x1xf32>
    %76 = vector.broadcast %75 : vector<8x1xf32> to vector<8x400xf32>
    %77 = arith.mulf %74, %76 : vector<8x400xf32>
    %78 = arith.addf %73, %77 : vector<8x400xf32>
    %c0_48 = arith.constant 0 : index
    %c130 = arith.constant 130 : index
    %79 = vector.load %arg17[%c0_48, %c130] : memref<8x640xf32, #tpu.memory_space<vmem>>, vector<8x400xf32>
    %80 = vector.extract_strided_slice %69 {offsets = [0, 2], sizes = [8, 1], strides = [1, 1]} : vector<8x3xf32> to vector<8x1xf32>
    %81 = vector.broadcast %80 : vector<8x1xf32> to vector<8x400xf32>
    %82 = arith.mulf %79, %81 : vector<8x400xf32>
    %83 = arith.addf %78, %82 : vector<8x400xf32>
    %c2_49 = arith.constant 2 : index
    %c0_50 = arith.constant 0 : index
    %c0_51 = arith.constant 0 : index
    %84 = vector.load %arg4[%c2_49, %c0_50, %c0_51] : memref<4x1x8xf32, #tpu.memory_space<vmem>>, vector<1x1x8xf32>
    %85 = vector.shape_cast %84 : vector<1x1x8xf32> to vector<1x8xf32>
    %cst_52 = arith.constant dense<0.000000e+00> : vector<1x400xf32>
    %86 = tpu.matmul %85, %83, %cst_52 {dimension_numbers = #tpu.dot_dimension_numbers<[1], [0], [0], [1], [0, 0, 1, 1], [], []>} : vector<1x8xf32>, vector<8x400xf32>, vector<1x400xf32> -> vector<1x400xf32>
    %c2_53 = arith.constant 2 : index
    %c0_54 = arith.constant 0 : index
    %c0_55 = arith.constant 0 : index
    %87 = vector.load %arg5[%c2_53, %c0_54, %c0_55] : memref<4x8x1xf32, #tpu.memory_space<vmem>>, vector<1x8x1xf32>
    %88 = vector.shape_cast %87 : vector<1x8x1xf32> to vector<8x1xf32>
    %89 = vector.broadcast %88 : vector<8x1xf32> to vector<8x400xf32>
    %90 = vector.broadcast %86 : vector<1x400xf32> to vector<8x400xf32>
    %91 = arith.mulf %89, %90 : vector<8x400xf32>
    %92 = vector.broadcast %13 : vector<1x400xf32> to vector<8x400xf32>
    %93 = arith.mulf %91, %92 : vector<8x400xf32>
    %c0_56 = arith.constant 0 : index
    %c128_57 = arith.constant 128 : index
    %94 = vector.load %arg17[%c0_56, %c128_57] : memref<8x640xf32, #tpu.memory_space<vmem>>, vector<8x400xf32>
    tpu.vector_store %arg17[%c0_56, %c128_57], %93 {strides = array<i32>} : memref<8x640xf32, #tpu.memory_space<vmem>>, vector<8x400xf32>,
    %c3 = arith.constant 3 : index
    %c0_58 = arith.constant 0 : index
    %c0_59 = arith.constant 0 : index
    %95 = vector.load %arg3[%c3, %c0_58, %c0_59] : memref<4x8x3xf32, #tpu.memory_space<vmem>>, vector<1x8x3xf32>
    %96 = vector.shape_cast %95 : vector<1x8x3xf32> to vector<8x3xf32>
    %c0_60 = arith.constant 0 : index
    %c88 = arith.constant 88 : index
    %97 = vector.load %arg17[%c0_60, %c88] : memref<8x640xf32, #tpu.memory_space<vmem>>, vector<8x400xf32>
    %98 = vector.extract_strided_slice %96 {offsets = [0, 0], sizes = [8, 1], strides = [1, 1]} : vector<8x3xf32> to vector<8x1xf32>
    %99 = vector.broadcast %98 : vector<8x1xf32> to vector<8x400xf32>
    %100 = arith.mulf %97, %99 : vector<8x400xf32>
    %c0_61 = arith.constant 0 : index
    %c128_62 = arith.constant 128 : index
    %101 = vector.load %arg17[%c0_61, %c128_62] : memref<8x640xf32, #tpu.memory_space<vmem>>, vector<8x400xf32>
    %102 = vector.extract_strided_slice %96 {offsets = [0, 1], sizes = [8, 1], strides = [1, 1]} : vector<8x3xf32> to vector<8x1xf32>
    %103 = vector.broadcast %102 : vector<8x1xf32> to vector<8x400xf32>
    %104 = arith.mulf %101, %103 : vector<8x400xf32>
    %105 = arith.addf %100, %104 : vector<8x400xf32>
    %c0_63 = arith.constant 0 : index
    %c168 = arith.constant 168 : index
    %106 = vector.load %arg17[%c0_63, %c168] : memref<8x640xf32, #tpu.memory_space<vmem>>, vector<8x400xf32>
    %107 = vector.extract_strided_slice %96 {offsets = [0, 2], sizes = [8, 1], strides = [1, 1]} : vector<8x3xf32> to vector<8x1xf32>
    %108 = vector.broadcast %107 : vector<8x1xf32> to vector<8x400xf32>
    %109 = arith.mulf %106, %108 : vector<8x400xf32>
    %110 = arith.addf %105, %109 : vector<8x400xf32>
    %c3_64 = arith.constant 3 : index
    %c0_65 = arith.constant 0 : index
    %c0_66 = arith.constant 0 : index
    %111 = vector.load %arg4[%c3_64, %c0_65, %c0_66] : memref<4x1x8xf32, #tpu.memory_space<vmem>>, vector<1x1x8xf32>
    %112 = vector.shape_cast %111 : vector<1x1x8xf32> to vector<1x8xf32>
    %cst_67 = arith.constant dense<0.000000e+00> : vector<1x400xf32>
    %113 = tpu.matmul %112, %110, %cst_67 {dimension_numbers = #tpu.dot_dimension_numbers<[1], [0], [0], [1], [0, 0, 1, 1], [], []>} : vector<1x8xf32>, vector<8x400xf32>, vector<1x400xf32> -> vector<1x400xf32>
    %c3_68 = arith.constant 3 : index
    %c0_69 = arith.constant 0 : index
    %c0_70 = arith.constant 0 : index
    %114 = vector.load %arg5[%c3_68, %c0_69, %c0_70] : memref<4x8x1xf32, #tpu.memory_space<vmem>>, vector<1x8x1xf32>
    %115 = vector.shape_cast %114 : vector<1x8x1xf32> to vector<8x1xf32>
    %116 = vector.broadcast %115 : vector<8x1xf32> to vector<8x400xf32>
    %117 = vector.broadcast %113 : vector<1x400xf32> to vector<8x400xf32>
    %118 = arith.mulf %116, %117 : vector<8x400xf32>
    %119 = vector.broadcast %13 : vector<1x400xf32> to vector<8x400xf32>
    %120 = arith.mulf %118, %119 : vector<8x400xf32>
    %c0_71 = arith.constant 0 : index
    %c128_72 = arith.constant 128 : index
    %121 = vector.load %arg17[%c0_71, %c128_72] : memref<8x640xf32, #tpu.memory_space<vmem>>, vector<8x400xf32>
    tpu.vector_store %arg17[%c0_71, %c128_72], %120 {strides = array<i32>} : memref<8x640xf32, #tpu.memory_space<vmem>>, vector<8x400xf32>,
    %c0_73 = arith.constant 0 : index
    %c128_74 = arith.constant 128 : index
    %122 = vector.load %arg17[%c0_73, %c128_74] : memref<8x640xf32, #tpu.memory_space<vmem>>, vector<8x400xf32>
    %c0_75 = arith.constant 0 : index
    %c0_76 = arith.constant 0 : index
    %123 = vector.load %arg6[%c0_75, %c0_76] : memref<1x8xf32, #tpu.memory_space<vmem>>, vector<1x8xf32>
    %cst_77 = arith.constant dense<0.000000e+00> : vector<1x400xf32>
    %124 = tpu.matmul %123, %122, %cst_77 {dimension_numbers = #tpu.dot_dimension_numbers<[1], [0], [0], [1], [0, 0, 1, 1], [], []>} : vector<1x8xf32>, vector<8x400xf32>, vector<1x400xf32> -> vector<1x400xf32>
    %c0_78 = arith.constant 0 : index
    %c0_79 = arith.constant 0 : index
    %125 = vector.load %arg7[%c0_78, %c0_79] : memref<2x1xf32, #tpu.memory_space<vmem>>, vector<2x1xf32>
    %126 = vector.broadcast %125 : vector<2x1xf32> to vector<2x400xf32>
    %127 = vector.broadcast %124 : vector<1x400xf32> to vector<2x400xf32>
    %128 = arith.mulf %126, %127 : vector<2x400xf32>
    %c0_80 = arith.constant 0 : index
    %c0_81 = arith.constant 0 : index
    %129 = vector.load %arg8[%c0_80, %c0_81] : memref<2x1xf32, #tpu.memory_space<vmem>>, vector<2x1xf32>
    %130 = vector.broadcast %129 : vector<2x1xf32> to vector<2x400xf32>
    %131 = arith.mulf %128, %130 : vector<2x400xf32>
    %c0_82 = arith.constant 0 : index
    %c0_83 = arith.constant 0 : index
    %132 = vector.load %arg9[%c0_82, %c0_83] : memref<2x1xf32, #tpu.memory_space<vmem>>, vector<2x1xf32>
    %133 = vector.broadcast %132 : vector<2x1xf32> to vector<2x400xf32>
    %134 = arith.addf %131, %133 : vector<2x400xf32>
    %cst_84 = arith.constant 0.000000e+00 : f32
    %135 = vector.broadcast %cst_84 : f32 to vector<2x400xf32>
    %136 = arith.maximumf %134, %135 : vector<2x400xf32>
    %c0_85 = arith.constant 0 : index
    %c0_86 = arith.constant 0 : index
    %137 = vector.load %arg10[%c0_85, %c0_86] : memref<1x2xf32, #tpu.memory_space<vmem>>, vector<1x2xf32>
    %cst_87 = arith.constant dense<0.000000e+00> : vector<1x400xf32>
    %138 = tpu.matmul %137, %136, %cst_87 {dimension_numbers = #tpu.dot_dimension_numbers<[1], [0], [0], [1], [0, 0, 1, 1], [], []>} : vector<1x2xf32>, vector<2x400xf32>, vector<1x400xf32> -> vector<1x400xf32>
    %c0_88 = arith.constant 0 : index
    %c0_89 = arith.constant 0 : index
    %139 = vector.load %arg11[%c0_88, %c0_89] : memref<8x1xf32, #tpu.memory_space<vmem>>, vector<8x1xf32>
    %140 = vector.broadcast %139 : vector<8x1xf32> to vector<8x400xf32>
    %141 = vector.broadcast %138 : vector<1x400xf32> to vector<8x400xf32>
    %142 = arith.mulf %140, %141 : vector<8x400xf32>
    %c0_90 = arith.constant 0 : index
    %c0_91 = arith.constant 0 : index
    %143 = vector.load %arg12[%c0_90, %c0_91] : memref<8x1xf32, #tpu.memory_space<vmem>>, vector<8x1xf32>
    %144 = vector.broadcast %143 : vector<8x1xf32> to vector<8x400xf32>
    %145 = arith.mulf %142, %144 : vector<8x400xf32>
    %c0_92 = arith.constant 0 : index
    %c0_93 = arith.constant 0 : index
    %146 = vector.load %arg13[%c0_92, %c0_93] : memref<8x1xf32, #tpu.memory_space<vmem>>, vector<8x1xf32>
    %147 = vector.broadcast %146 : vector<8x1xf32> to vector<8x400xf32>
    %148 = arith.addf %145, %147 : vector<8x400xf32>
    %149 = arith.negf %148 : vector<8x400xf32>
    %150 = math.exp %149 : vector<8x400xf32>
    %cst_94 = arith.constant 1.000000e+00 : f32
    %151 = vector.broadcast %cst_94 : f32 to vector<8x400xf32>
    %152 = arith.addf %151, %150 : vector<8x400xf32>
    %153 = arith.divf %151, %152 : vector<8x400xf32>
    %c0_95 = arith.constant 0 : index
    %c128_96 = arith.constant 128 : index
    %154 = vector.load %arg16[%c0_95, %c128_96] : memref<8x640xf32, #tpu.memory_space<vmem>>, vector<8x400xf32>
    %155 = arith.mulf %154, %153 : vector<8x400xf32>
    %cst_97 = arith.constant 0.000000e+00 : f32
    %156 = vector.broadcast %cst_97 : f32 to vector<8x128xf32>
    %c0_98 = arith.constant 0 : index
    %c0_99 = arith.constant 0 : index
    %c0_100 = arith.constant 0 : index
    %157 = vector.load %arg15[%c0_98, %c0_99, %c0_100] : memref<1x8x640xf32, #tpu.memory_space<vmem>>, vector<1x8x128xf32>
    %158 = vector.shape_cast %157 : vector<1x8x128xf32> to vector<8x128xf32>
    %159 = vector.shape_cast %156 : vector<8x128xf32> to vector<1x8x128xf32>
    tpu.vector_store %arg15[%c0_98, %c0_99, %c0_100], %159 {strides = array<i32>} : memref<1x8x640xf32, #tpu.memory_space<vmem>>, vector<1x8x128xf32>,
    %cst_101 = arith.constant 0.000000e+00 : f32
    %160 = vector.broadcast %cst_101 : f32 to vector<8x112xf32>
    %c0_102 = arith.constant 0 : index
    %c0_103 = arith.constant 0 : index
    %c528_104 = arith.constant 528 : index
    %161 = vector.load %arg15[%c0_102, %c0_103, %c528_104] : memref<1x8x640xf32, #tpu.memory_space<vmem>>, vector<1x8x112xf32>
    %162 = vector.shape_cast %161 : vector<1x8x112xf32> to vector<8x112xf32>
    %163 = vector.shape_cast %160 : vector<8x112xf32> to vector<1x8x112xf32>
    tpu.vector_store %arg15[%c0_102, %c0_103, %c528_104], %163 {strides = array<i32>} : memref<1x8x640xf32, #tpu.memory_space<vmem>>, vector<1x8x112xf32>,
    %c0_105 = arith.constant 0 : index
    %c0_106 = arith.constant 0 : index
    %c128_107 = arith.constant 128 : index
    %164 = vector.load %arg15[%c0_105, %c0_106, %c128_107] : memref<1x8x640xf32, #tpu.memory_space<vmem>>, vector<1x8x400xf32>
    %165 = vector.shape_cast %164 : vector<1x8x400xf32> to vector<8x400xf32>
    %166 = vector.shape_cast %155 : vector<8x400xf32> to vector<1x8x400xf32>
    tpu.vector_store %arg15[%c0_105, %c0_106, %c128_107], %166 {strides = array<i32>} : memref<1x8x640xf32, #tpu.memory_space<vmem>>, vector<1x8x400xf32>,
    return
  }
  func.func @transform_0(%arg0: i32) -> (i32, i32, i32) {
    %c0_i32 = arith.constant 0 : i32
    %c0_i32_0 = arith.constant 0 : i32
    %c0_i32_1 = arith.constant 0 : i32
    return %arg0, %c0_i32, %c0_i32_0 : i32, i32, i32
  }
  func.func @transform_1(%arg0: i32) -> (i32, i32, i32) {
    %c0_i32 = arith.constant 0 : i32
    %c0_i32_0 = arith.constant 0 : i32
    %c0_i32_1 = arith.constant 0 : i32
    return %arg0, %c0_i32, %c0_i32_0 : i32, i32, i32
  }
  func.func @transform_2(%arg0: i32) -> (i32, i32, i32) {
    %c0_i32 = arith.constant 0 : i32
    %c0_i32_0 = arith.constant 0 : i32
    %c0_i32_1 = arith.constant 0 : i32
    %c0_i32_2 = arith.constant 0 : i32
    return %c0_i32, %c0_i32_0, %c0_i32_1 : i32, i32, i32
  }
  func.func @transform_3(%arg0: i32) -> (i32, i32, i32) {
    %c0_i32 = arith.constant 0 : i32
    %c0_i32_0 = arith.constant 0 : i32
    %c0_i32_1 = arith.constant 0 : i32
    %c0_i32_2 = arith.constant 0 : i32
    return %c0_i32, %c0_i32_0, %c0_i32_1 : i32, i32, i32
  }
  func.func @transform_4(%arg0: i32) -> (i32, i32, i32) {
    %c0_i32 = arith.constant 0 : i32
    %c0_i32_0 = arith.constant 0 : i32
    %c0_i32_1 = arith.constant 0 : i32
    %c0_i32_2 = arith.constant 0 : i32
    return %c0_i32, %c0_i32_0, %c0_i32_1 : i32, i32, i32
  }
  func.func @transform_5(%arg0: i32) -> (i32, i32) {
    %c0_i32 = arith.constant 0 : i32
    %c0_i32_0 = arith.constant 0 : i32
    %c0_i32_1 = arith.constant 0 : i32
    return %c0_i32, %c0_i32_0 : i32, i32
  }
  func.func @transform_6(%arg0: i32) -> (i32, i32) {
    %c0_i32 = arith.constant 0 : i32
    %c0_i32_0 = arith.constant 0 : i32
    %c0_i32_1 = arith.constant 0 : i32
    return %c0_i32, %c0_i32_0 : i32, i32
  }
  func.func @transform_7(%arg0: i32) -> (i32, i32) {
    %c0_i32 = arith.constant 0 : i32
    %c0_i32_0 = arith.constant 0 : i32
    %c0_i32_1 = arith.constant 0 : i32
    return %c0_i32, %c0_i32_0 : i32, i32
  }
  func.func @transform_8(%arg0: i32) -> (i32, i32) {
    %c0_i32 = arith.constant 0 : i32
    %c0_i32_0 = arith.constant 0 : i32
    %c0_i32_1 = arith.constant 0 : i32
    return %c0_i32, %c0_i32_0 : i32, i32
  }
  func.func @transform_9(%arg0: i32) -> (i32, i32) {
    %c0_i32 = arith.constant 0 : i32
    %c0_i32_0 = arith.constant 0 : i32
    %c0_i32_1 = arith.constant 0 : i32
    return %c0_i32, %c0_i32_0 : i32, i32
  }
  func.func @transform_10(%arg0: i32) -> (i32, i32) {
    %c0_i32 = arith.constant 0 : i32
    %c0_i32_0 = arith.constant 0 : i32
    %c0_i32_1 = arith.constant 0 : i32
    return %c0_i32, %c0_i32_0 : i32, i32
  }
  func.func @transform_11(%arg0: i32) -> (i32, i32) {
    %c0_i32 = arith.constant 0 : i32
    %c0_i32_0 = arith.constant 0 : i32
    %c0_i32_1 = arith.constant 0 : i32
    return %c0_i32, %c0_i32_0 : i32, i32
  }
  func.func @transform_12(%arg0: i32) -> (i32, i32) {
    %c0_i32 = arith.constant 0 : i32
    %c0_i32_0 = arith.constant 0 : i32
    %c0_i32_1 = arith.constant 0 : i32
    return %c0_i32, %c0_i32_0 : i32, i32
  }
  func.func @transform_13(%arg0: i32) -> (i32, i32) {
    %c0_i32 = arith.constant 0 : i32
    %c0_i32_0 = arith.constant 0 : i32
    %c0_i32_1 = arith.constant 0 : i32
    return %c0_i32, %c0_i32_0 : i32, i32
  }
  func.func @transform_14(%arg0: i32) -> (i32, i32, i32) {
    %c0_i32 = arith.constant 0 : i32
    %c0_i32_0 = arith.constant 0 : i32
    %c0_i32_1 = arith.constant 0 : i32
    return %arg0, %c0_i32, %c0_i32_0 : i32, i32, i32
  }
}

</mosaic_0001>

<bundles_post_ra>
// kernel: c2f_lca3_forward.5
= control target key start
LH: loop header
LB: loop body
LE: loop exit
PB: predicated region body
PF: predicated region fallthrough
CT: control target
= control target key end

     0   :  { %s1072_s30 = smov 0   ;;  %s1329_s0 = inlined_call_operand.vmem [shape: bf16[2,4,640], index: 0, kind: input, shape index: {}]   ;;  %s1330_s1 = inlined_call_operand.vmem [shape: bf16[4,4], index: 1, kind: input, shape index: {}]   ;;  %s1331_s2 = inlined_call_operand.vmem [shape: bf16[4,4], index: 2, kind: input, shape index: {}]   ;;  %s1332_s3 = inlined_call_operand.vmem [shape: f32[4,1], index: 3, kind: input, shape index: {}]   ;;  %s1333_s4 = inlined_call_operand.vmem [shape: f32[4,1], index: 4, kind: input, shape index: {}]   ;;  %s1334_s5 = inlined_call_operand.vmem [shape: f32[4,1], index: 5, kind: input, shape index: {}]   ;;  %s1335_s6 = inlined_call_operand.vmem [shape: f32[4,1], index: 6, kind: input, shape index: {}]   ;;  %s1336_s7 = inlined_call_operand.vmem [shape: f32[1,640], index: 7, kind: input, shape index: {}]   ;;  %s1337_s8 = inlined_call_operand.vmem [shape: bf16[2,4,640], index: 8, kind: output, shape index: {0}]   ;;  %s1338_s9 = inlined_call_operand.vmem [shape: bf16[2,4,640], index: 9, kind: output, shape index: {1}]  }
   0x1 LB: > { %s931_s10 = sadd.s32 4294967295, %s1019_s30   ;;  %p935_p0 = scmp.ge.s32.totalorder %s1019_s30, 1  ;;  %s1019_s30 = sphi %s1072_s30, %s20_s30  }
   0x2   : > { %p290_p1 = scmp.lt.s32.totalorder %s1019_s30, 3 }
   0x4   : > { %p291_p2 = pnand %p935_p0, %p290_p1 }
   0x5   : > { %p331_p3 = scmp.lt.s32.totalorder (!%p291_p2), %s931_s10, 1 }
   0x6   : > { %294 = sbr.rel (%p291_p2) target bundleno = 237 (0xed), region = 52 }
   0xb   : > { %v1021_v0 = vmov 0   ;;  %v441_v1 = vld [vmem:[%s1332_s3] sm:$0xf]  ;;  %s1350_s10 = smov (!%p331_p3, %s931_s10), 1  ;;  %vm365_vm0 = vcmask 1041408   ;;  %vm361_vm1 = vcmask 31744  }
   0xc   : > { %971 = vset.pattern.permute.xlu0 %v1021_v0  ;;  %972 = vset.pattern.permute.xlu1 %v1021_v0  ;;  %v452_v2 = vld [vmem:[%s1333_s4] sm:$0xf]  ;;  %s1086_s15 = smul.u32 10, %s1350_s10 }
   0xd   : > { %444 = vperm.xlu0 %971, %v441_v1   ;;  %455 = vperm.xlu1 %972, %v452_v2   ;;  %v692_v3 = vld [vmem:[%s1334_s5] sm:$0xf] }
   0xe   : > { %s335_s18 = scalar_lea.vmem %s1329_s0, %s1086_s15  ;;  %v703_v6 = vld [vmem:[%s1335_s6] sm:$0xf]  ;;  %s1258_s11 = scalar_lea.vmem %s1337_s8, %s1086_s15 }
   0xf   : > { %v347_v4 = vld [vmem:[%s335_s18] sm:$0xff]  ;;  %v348_v5 = vld [vmem:[%s335_s18 + $0x8] sm:$0x3]  ;;  %s345_s14 = scalar_lea.vmem %s1338_s9, %s1086_s15 }
  0x10   : > { %352 = vst [vmem:[#allocation1] ss:$4 sm:$0xff] %v347_v4  ;;  %v350_v9 = vld [vmem:[%s1330_s1] sm:$0x3] }
  0x11   : > { %355 = vst [vmem:[#allocation1 + $0x20] ss:$4 sm:$0xff] %v348_v5  ;;  %v605_v28 = vld [vmem:[%s1331_s2] sm:$0x3] }
  0x12   : > { %v1144_v58 = vld [vmem:[%s1336_s7] sm:$0x1f] }
  0x15   : > { %695 = vperm.xlu0 %971, %v692_v3   ;;  %706 = vperm.xlu1 %972, %v703_v6   ;;  %v564_v3 = vperm.slane %v1144_v58, 0 }
  0x17   : > { %v356_v7 = vld.sshfl [vmem:[#allocation1] sm:$0xff pattern:$0x73625140]  ;;  %v357_v8 = vld.sshfl [vmem:[#allocation1 + $0x8] sm:$0xff pattern:$0x73625140] }
  0x18   : > { %v366_v10 = vsel %vm365_vm0, %v356_v7, 0  ;;  %v368_v11 = vsel %vm365_vm0, %v357_v8, 0  ;;  %v358_v12 = vld.sshfl [vmem:[#allocation1 + $0x10] sm:$0xff pattern:$0x73625140] }
  0x19   : > { %383 = vmatpush.bf16.msra.mxu0 %v366_v10  ;;  %396 = vmatpush.bf16.msra.mxu1 %v368_v11  ;;  %v370_v13 = vsel %vm365_vm0, %v358_v12, 0  ;;  %v359_v14 = vld.sshfl [vmem:[#allocation1 + $0x18] sm:$0xff pattern:$0x73625140] }
  0x1a   : > { %409 = vmatpush.bf16.msra.mxu2 %v370_v13  ;;  %v372_v15 = vsel %vm365_vm0, %v359_v14, 0  ;;  %606 = vst [vmem:[#allocation1] ss:$4 sm:$0xff] %v347_v4  ;;  %v360_v16 = vld.sshfl [vmem:[#allocation1 + $0x20] sm:$0xff pattern:$0x73625140] }
  0x1b   : > { %422 = vmatpush.bf16.msra.mxu3 %v372_v15  ;;  %v374_v17 = vsel %vm365_vm0, %v360_v16, 0  ;;  %608 = vst [vmem:[#allocation1 + $0x20] ss:$4 sm:$0xff] %v348_v5  ;;  %v566_v15 = vperm.slane %v1144_v58, 2  ;;  %v565_v16 = vperm.slane %v1144_v58, 1 }
  0x1c   : > { %939 = vmatmul.msk.bf16.vlgmr.msra.gmra.mxu0 %vm361_vm1, %v350_v9  ;;  %940 = vmatmul.msk.bf16.vlgmr.msra.gmra.mxu1 %vm361_vm1, %v350_v9 }
  0x1d   : > { %941 = vmatmul.msk.bf16.vlgmr.msra.gmra.mxu2 %vm361_vm1, %v350_v9  ;;  %435 = vmatpush.bf16.msrb.mxu0 %v374_v17 }
  0x1e   : > { %942 = vmatmul.msk.bf16.vlgmr.msra.gmra.mxu3 %vm361_vm1, %v350_v9 }
  0x21   : > { %v609_v18 = vld.sshfl [vmem:[#allocation1] sm:$0xff pattern:$0x73625140]  ;;  %v610_v19 = vld.sshfl [vmem:[#allocation1 + $0x8] sm:$0xff pattern:$0x73625140] }
  0x22   : > { %v617_v20 = vsel %vm365_vm0, %v609_v18, 0  ;;  %v619_v21 = vsel %vm365_vm0, %v610_v19, 0  ;;  %v611_v22 = vld.sshfl [vmem:[#allocation1 + $0x10] sm:$0xff pattern:$0x73625140] }
  0x23   : > { %634 = vmatpush.bf16.msrb.mxu1 %v617_v20  ;;  %647 = vmatpush.bf16.msrb.mxu2 %v619_v21  ;;  %v621_v23 = vsel %vm365_vm0, %v611_v22, 0  ;;  %v612_v24 = vld.sshfl [vmem:[#allocation1 + $0x18] sm:$0xff pattern:$0x73625140] }
  0x24   : > { %660 = vmatpush.bf16.msrb.mxu3 %v621_v23  ;;  %v623_v25 = vsel %vm365_vm0, %v612_v24, 0  ;;  %v613_v26 = vld.sshfl [vmem:[#allocation1 + $0x20] sm:$0xff pattern:$0x73625140] }
  0x25   : > { %673 = vmatpush.bf16.msra.mxu0 %v623_v25  ;;  %v625_v27 = vsel %vm365_vm0, %v613_v26, 0 }
  0x27   : > { %686 = vmatpush.bf16.msra.mxu1 %v625_v27 }
  0x2c   : > { %943 = vmatmul.msk.bf16.vlgmr.msrb.gmra.mxu0 %vm361_vm1, %v350_v9  ;;  %949 = vmatmul.msk.bf16.vlgmr.msrb.gmra.mxu1 %vm361_vm1, %v605_v28 }
  0x2d   : > { %950 = vmatmul.msk.bf16.vlgmr.msrb.gmra.mxu2 %vm361_vm1, %v605_v28 }
  0x2e   : > { %951 = vmatmul.msk.bf16.vlgmr.msrb.gmra.mxu3 %vm361_vm1, %v605_v28 }
  0x3c   : > { %952 = vmatmul.msk.bf16.vlgmr.msra.gmra.mxu0 %vm361_vm1, %v605_v28  ;;  %953 = vmatmul.msk.bf16.vlgmr.msra.gmra.mxu1 %vm361_vm1, %v605_v28 }
  0x7f   : > { %v445_v29 = vpop.permute.xlu0 %444  ;;  %v456_v30 = vpop.permute.xlu1 %455 }
  0x87   : > { %v1138_v54 = vpop.permute.xlu0 %695  ;;  %v1149_v63 = vpop.permute.xlu1 %706 }
  0x99   : > { %v385_v31 = vpop.f32.mrf.mxu0  ;;  %v398_v32 = vpop.f32.mrf.mxu1 }
  0x9a   : > { %v447_v33 = vmul.f32 %v445_v29, %v385_v31  ;;  %v448_v34 = vmul.f32 %v445_v29, %v398_v32 }
  0x9c   : > { %v1124_v35 = vadd.f32 %v456_v30, %v447_v33  ;;  %v1126_v36 = vadd.f32 %v456_v30, %v448_v34 }
  0x9e   : > { %v944_v37 = vmul.f32 -1.442695, %v1124_v35  ;;  %v945_v38 = vmul.f32 -1.442695, %v1126_v36 }
  0xa0   : > { %973 = vpow2.f32 %v944_v37  ;;  %v411_v39 = vpop.f32.mrf.mxu2 }
  0xa1   : > { %975 = vpow2.f32 %v945_v38  ;;  %v449_v40 = vmul.f32 %v445_v29, %v411_v39  ;;  %v424_v41 = vpop.f32.mrf.mxu3  ;;  %v387_v42 = vpop.f32.mrf.mxu0 }
  0xa2   : > { %v450_v43 = vmul.f32 %v445_v29, %v424_v41  ;;  %v400_v44 = vpop.f32.mrf.mxu1 }
  0xa3   : > { %v1130_v45 = vadd.f32 %v456_v30, %v449_v40 }
  0xa4   : > { %v1132_v46 = vadd.f32 %v456_v30, %v450_v43 }
  0xa5   : > { %v946_v47 = vmul.f32 -1.442695, %v1130_v45 }
  0xa6   : > { %v974_v48 = vpop.eup %973  ;;  %v947_v49 = vmul.f32 -1.442695, %v1132_v46 }
  0xa7   : > { %v976_v50 = vpop.eup %975  ;;  %v478_v51 = vadd.f32 1.0, %v974_v48  ;;  %977 = vpow2.f32 %v946_v47 }
  0xa8   : > { %v1136_v52 = vadd.f32 1.0, %v976_v50  ;;  %979 = vpow2.f32 %v947_v49  ;;  %v413_v53 = vpop.f32.mrf.mxu2 }
  0xa9   : > { %981 = vrcp.f32 %v478_v51  ;;  %v426_v55 = vpop.f32.mrf.mxu3  ;;  %v437_v56 = vpop.f32.mrf.mxu0  ;;  %v492_v1 = vand.u32 2147483647, %v478_v51  ;;  %v494_v5 = vand.u32 2147483648, %v478_v51  ;;  %vm488_vm2 = vweird.f32 %v478_v51 }
  0xaa   : > { %983 = vrcp.f32 %v1136_v52  ;;  %v636_v57 = vpop.f32.mrf.mxu1  ;;  %v451_v59 = vmul.f32 %v445_v29, %v437_v56  ;;  %v507_v6 = vand.u32 2147483647, %v1136_v52  ;;  %v509_v7 = vand.u32 2147483648, %v1136_v52 }
  0xab   : > { %v698_v60 = vmul.f32 %v1138_v54, %v636_v57  ;;  %vm1166_vm3 = vcmp.eq.f32.partialorder %v492_v1, 8.507059e+37  ;;  %vm503_vm4 = vweird.f32 %v1136_v52  ;;  %v495_v22 = vor.u32 1.1754944e-38, %v494_v5 }
  0xac   : > { %v1147_v62 = vadd.f32 %v456_v30, %v451_v59  ;;  %vm1172_vm5 = vcmp.eq.f32.partialorder %v507_v6, 8.507059e+37  ;;  %v510_v25 = vor.u32 1.1754944e-38, %v509_v7 }
  0xad   : > { %v978_v61 = vpop.eup %977  ;;  %v1161_v12 = vadd.f32 %v1149_v63, %v698_v60 }
  0xae   : > { %v980_v0 = vpop.eup %979  ;;  %v1151_v2 = vadd.f32 1.0, %v978_v61  ;;  %v948_v11 = vmul.f32 -1.442695, %v1147_v62 }
  0xaf   : > { %v982_v4 = vpop.eup %981  ;;  %v1156_v8 = vadd.f32 1.0, %v980_v0  ;;  %v954_v27 = vmul.f32 -1.442695, %v1161_v12 }
  0xb0   : > { %v984_v9 = vpop.eup %983  ;;  %v484_v10 = vmul.f32 %v982_v4, %v478_v51  ;;  %985 = vrcp.f32 %v1151_v2  ;;  %v649_v13 = vpop.f32.mrf.mxu2  ;;  %vm489_vm6 = vweird.f32 %v982_v4  ;;  %vm518_vm8 = vweird.f32 %v1151_v2 }
  0xb1   : > { %v499_v14 = vmul.f32 %v984_v9, %v1136_v52  ;;  %v662_v17 = vpop.f32.mrf.mxu3  ;;  %v439_v18 = vpop.f32.mrf.mxu0  ;;  %987 = vrcp.f32 %v1156_v8  ;;  %vm504_vm7 = vweird.f32 %v984_v9  ;;  %v699_v29 = vmul.f32 %v1138_v54, %v649_v13  ;;  %vm490_vm9 = vmor %vm488_vm2, %vm489_vm6 }
  0xb2   : > { %v485_v19 = vsub.f32 1.0, %v484_v10  ;;  %v638_v21 = vpop.f32.mrf.mxu1  ;;  %989 = vpow2.f32 %v948_v11  ;;  %v522_v32 = vand.u32 2147483647, %v1151_v2  ;;  %v700_v33 = vmul.f32 %v1138_v54, %v662_v17  ;;  %vm505_vm10 = vmor %vm503_vm4, %vm504_vm7 }
  0xb3   : > { %v500_v23 = vsub.f32 1.0, %v499_v14  ;;  %991 = vpow2.f32 %v954_v27  ;;  %v524_v38 = vand.u32 2147483648, %v1151_v2  ;;  %v1185_v39 = vadd.f32 %v1149_v63, %v699_v29 }
  0xb4   : > { %v486_v26 = vmul.f32 %v982_v4, %v485_v19  ;;  %vm533_vm11 = vweird.f32 %v1156_v8  ;;  %v537_v42 = vand.u32 2147483647, %v1156_v8  ;;  %v1193_v43 = vadd.f32 %v1149_v63, %v700_v33 }
  0xb5   : > { %v501_v28 = vmul.f32 %v984_v9, %v500_v23  ;;  %v955_v57 = vmul.f32 -1.442695, %v1185_v39  ;;  %vm1207_vm13 = vcmp.eq.f32.partialorder %v522_v32, 8.507059e+37  ;;  %v539_v6 = vand.u32 2147483648, %v1156_v8 }
  0xb6   : > { %v986_v30 = vpop.eup %985  ;;  %v487_v31 = vadd.f32 %v982_v4, %v486_v26  ;;  %vm538_vm2 = vcmp.eq.f32.partialorder %v537_v42, 8.507059e+37 }
  0xb7   : > { %v502_v34 = vadd.f32 %v984_v9, %v501_v28  ;;  %v514_v37 = vmul.f32 %v986_v30, %v1151_v2  ;;  %v988_v40 = vpop.eup %987  ;;  %vm519_vm12 = vweird.f32 %v986_v30  ;;  %993 = vpow2.f32 %v955_v57 }
  0xb8   : > { %v491_v41 = vsel %vm490_vm9, %v982_v4, %v487_v31  ;;  %v651_v44 = vpop.f32.mrf.mxu2  ;;  %v529_v50 = vmul.f32 %v988_v40, %v1156_v8  ;;  %v990_v55 = vpop.eup %989  ;;  %vm534_vm14 = vweird.f32 %v988_v40  ;;  %vm520_vm15 = vmor %vm518_vm8, %vm519_vm12  ;;  %v540_v2 = vor.u32 1.1754944e-38, %v539_v6 }
  0xb9   : > { %v496_v47 = vsel %vm1166_vm3, %v495_v22, %v491_v41  ;;  %v506_v48 = vsel %vm505_vm10, %v984_v9, %v502_v34  ;;  %v515_v49 = vsub.f32 1.0, %v514_v37  ;;  %v675_v51 = vpop.f32.mrf.mxu0  ;;  %v664_v53 = vpop.f32.mrf.mxu3  ;;  %v1205_v1 = vadd.f32 1.0, %v990_v55  ;;  %vm535_vm1 = vmor %vm533_vm11, %vm534_vm14 }
  0xba   : > { %v511_v52 = vsel %vm1172_vm5, %v510_v25, %v506_v48  ;;  %v558_v56 = vmul.f32 %v496_v47, %v1124_v35  ;;  %v1202_v59 = vpop.f32.mrf.mxu1  ;;  %v530_v0 = vsub.f32 1.0, %v529_v50  ;;  %v992_v4 = vpop.eup %991  ;;  %v956_v35 = vmul.f32 -1.442695, %v1193_v43 }
  0xbb   : > { %v559_v60 = vmul.f32 %v511_v52, %v1126_v36  ;;  %v516_v61 = vmul.f32 %v986_v30, %v515_v49  ;;  %995 = vrcp.f32 %v1205_v1  ;;  %v525_v36 = vor.u32 1.1754944e-38, %v524_v38 }
  0xbc   : > { %v531_v9 = vmul.f32 %v988_v40, %v530_v0  ;;  %v574_v10 = vmul.f32 %v564_v3, %v558_v56  ;;  %v1219_v11 = vadd.f32 1.0, %v992_v4  ;;  %v701_v13 = vmul.f32 %v1138_v54, %v675_v51 }
  0xbd   : > { %v517_v7 = vadd.f32 %v986_v30, %v516_v61  ;;  %v575_v18 = vmul.f32 %v565_v16, %v559_v60  ;;  %997 = vpow2.f32 %v956_v35  ;;  %v567_v22 = vperm.slane %v1144_v58, 3  ;;  %v994_v24 = vpop.eup %993 }
  0xbe   : > { %v532_v17 = vadd.f32 %v988_v40, %v531_v9  ;;  %999 = vrcp.f32 %v1219_v11  ;;  %v1232_v26 = vadd.f32 %v1149_v63, %v701_v13  ;;  %v1237_v31 = vadd.f32 1.0, %v994_v24 }
  0xbf   : > { %v521_v14 = vsel %vm520_vm15, %v986_v30, %v517_v7  ;;  %v579_v30 = vpack.c.bf16 %v575_v18, %v574_v10  ;;  %vm592_vm3 = vcmask 1045508   ;;  %v552_v41 = vand.u32 2147483647, %v1205_v1 }
  0xc0   : > { %v526_v19 = vsel %vm1207_vm13, %v525_v36, %v521_v14  ;;  %v536_v21 = vsel %vm535_vm1, %v988_v40, %v532_v17  ;;  %1001 = vrcp.f32 %v1237_v31  ;;  %v554_v42 = vand.u32 2147483648, %v1205_v1 }
  0xc1   : > { %v560_v20 = vmul.f32 %v526_v19, %v1130_v45  ;;  %v677_v23 = vpop.f32.mrf.mxu0  ;;  %v541_v25 = vsel %vm538_vm2, %v540_v2, %v536_v21  ;;  %v996_v28 = vpop.eup %995  ;;  %v585_v44 = vrot.slane %v579_v30, 2  ;;  %v568_v51 = vperm.slane %v1144_v58, 4 }
  0xc2   : > { %v690_v27 = vpop.f32.mrf.mxu1  ;;  %v561_v29 = vmul.f32 %v541_v25, %v1132_v46  ;;  %v544_v45 = vmul.f32 %v996_v28, %v1205_v1  ;;  %v957_v46 = vmul.f32 -1.442695, %v1232_v26  ;;  %vm549_vm4 = vweird.f32 %v996_v28 }
  0xc3   : > { %v576_v8 = vmul.f32 %v566_v15, %v560_v20  ;;  %v998_v32 = vpop.eup %997  ;;  %vm596_vm5 = vcmask 1043456   ;;  %vm548_vm6 = vweird.f32 %v1205_v1  ;;  %v702_v55 = vmul.f32 %v1138_v54, %v1202_v59 }
  0xc4   : > { %v577_v33 = vmul.f32 %v567_v22, %v561_v29  ;;  %v1243_v34 = vpop.eup %999  ;;  %v545_v37 = vsub.f32 1.0, %v544_v45  ;;  %v1245_v38 = vadd.f32 1.0, %v998_v32  ;;  %vm550_vm7 = vmor %vm548_vm6, %vm549_vm4  ;;  %vm553_vm8 = vcmp.eq.f32.partialorder %v552_v41, 8.507059e+37 }
  0xc5   : > { %v735_v48 = vmul.f32 %v1243_v34, %v1219_v11  ;;  %v555_v57 = vor.u32 1.1754944e-38, %v554_v42  ;;  %v591_v60 = vsel %vm365_vm0, %v579_v30, %v585_v44  ;;  %v1269_v1 = vadd.f32 %v1149_v63, %v702_v55 }
  0xc6   : > { %v580_v40 = vpack.c.bf16 %v577_v33, %v576_v8  ;;  %v546_v47 = vmul.f32 %v996_v28, %v545_v37  ;;  %1003 = vrcp.f32 %v1245_v38  ;;  %v1002_v52 = vpop.eup %1001  ;;  %vm754_vm10 = vweird.f32 %v1237_v31 }
  0xc7   : > { %1005 = vpow2.f32 %v957_v46  ;;  %v736_v0 = vsub.f32 1.0, %v735_v48  ;;  %v750_v5 = vmul.f32 %v1002_v52, %v1237_v31  ;;  %v958_v9 = vmul.f32 -1.442695, %v1269_v1 }
  0xc8   : > { %v586_v49 = vrot.slane %v580_v40, 4  ;;  %v587_v50 = vrot.slane %v580_v40, 6  ;;  %v547_v53 = vadd.f32 %v996_v28, %v546_v47  ;;  %vm755_vm9 = vweird.f32 %v1002_v52 }
  0xc9   : > { %v751_v35 = vsub.f32 1.0, %v750_v5  ;;  %v737_v13 = vmul.f32 %v1243_v34, %v736_v0  ;;  %1007 = vpow2.f32 %v958_v9  ;;  %v760_v2 = vand.u32 2147483648, %v1237_v31  ;;  %vm1283_vm12 = vmor %vm754_vm10, %vm755_vm9 }
  0xca   : > { %v595_v56 = vsel %vm592_vm3, %v586_v49, %v587_v50  ;;  %v551_v61 = vsel %vm550_vm7, %v996_v28, %v547_v53  ;;  %vm740_vm11 = vweird.f32 %v1243_v34  ;;  %v745_v24 = vand.u32 2147483648, %v1219_v11 }
  0xcb   : > { %v597_v4 = vsel %vm596_vm5, %v591_v60, %v595_v56  ;;  %v556_v6 = vsel %vm553_vm8, %v555_v57, %v551_v61  ;;  %v752_v14 = vmul.f32 %v1002_v52, %v751_v35  ;;  %v738_v21 = vadd.f32 %v1243_v34, %v737_v13 }
  0xcc   : > { %603 = vst [vmem:[%s1258_s11] sm:$0xff] %v597_v4  ;;  %v1004_v54 = vpop.eup %1003  ;;  %v562_v59 = vmul.f32 %v556_v6, %v1147_v62  ;;  %v758_v62 = vand.u32 2147483647, %v1237_v31  ;;  %vm739_vm13 = vweird.f32 %v1219_v11  ;;  %v743_v28 = vand.u32 2147483647, %v1219_v11 }
  0xcd   : > { %v765_v7 = vmul.f32 %v1004_v54, %v1245_v38  ;;  %v1006_v36 = vpop.eup %1005  ;;  %v753_v19 = vadd.f32 %v1002_v52, %v752_v14  ;;  %vm1293_vm14 = vmor %vm739_vm13, %vm740_vm11  ;;  %v761_v31 = vor.u32 1.1754944e-38, %v760_v2  ;;  %vm770_vm1 = vweird.f32 %v1004_v54 }
  0xce   : > { %v578_v10 = vmul.f32 %v568_v51, %v562_v59  ;;  %v732_v18 = vadd.f32 1.0, %v1006_v36  ;;  %vm759_vm15 = vcmp.eq.f32.partialorder %v758_v62, 8.507059e+37  ;;  %v742_v45 = vsel %vm1293_vm14, %v1243_v34, %v738_v21 }
  0xcf   : > { %v766_v17 = vsub.f32 1.0, %v765_v7  ;;  %v757_v8 = vsel %vm1283_vm12, %v1002_v52, %v753_v19  ;;  %v1008_v29 = vpop.eup %1007  ;;  %v746_v11 = vor.u32 1.1754944e-38, %v745_v24  ;;  %v773_v40 = vand.u32 2147483647, %v1245_v38 }
  0xd0   : > { %v581_v63 = vpack.c.bf16 %v578_v10, %v578_v10  ;;  %1009 = vrcp.f32 %v732_v18  ;;  %v733_v33 = vadd.f32 1.0, %v1008_v29  ;;  %v762_v46 = vsel %vm759_vm15, %v761_v31, %v757_v8 }
  0xd1   : > { %v767_v23 = vmul.f32 %v1004_v54, %v766_v17  ;;  %v775_v41 = vand.u32 2147483648, %v1245_v38  ;;  %vm744_vm2 = vcmp.eq.f32.partialorder %v743_v28, 8.507059e+37  ;;  %vm769_vm4 = vweird.f32 %v1245_v38 }
  0xd2   : > { %v588_v20 = vrot.slane %v581_v63, 2  ;;  %1011 = vrcp.f32 %v733_v33  ;;  %v747_v44 = vsel %vm744_vm2, %v746_v11, %v742_v45  ;;  %vm771_vm6 = vmor %vm769_vm4, %vm770_vm1  ;;  %v810_v47 = vmul.f32 %v762_v46, %v1185_v39 }
  0xd3   : > { %v768_v32 = vadd.f32 %v1004_v54, %v767_v23  ;;  %vm774_vm7 = vcmp.eq.f32.partialorder %v773_v40, 8.507059e+37  ;;  %v776_v49 = vor.u32 1.1754944e-38, %v775_v41  ;;  %v790_v50 = vand.u32 2147483648, %v732_v18 }
  0xd4   : > { %v600_v27 = vsel %vm365_vm0, %v581_v63, %v588_v20  ;;  %v809_v53 = vmul.f32 %v747_v44, %v1161_v12  ;;  %v788_v52 = vand.u32 2147483647, %v732_v18  ;;  %v815_v38 = vmul.f32 %v810_v47, %v565_v16 }
  0xd5   : > { %604 = vst [vmem:[%s1258_s11 + $0x8] sm:$0x3] %v600_v27  ;;  %v772_v34 = vsel %vm771_vm6, %v1004_v54, %v768_v32  ;;  %vm784_vm9 = vweird.f32 %v732_v18  ;;  %v791_v61 = vor.u32 1.1754944e-38, %v790_v50  ;;  %v805_v35 = vand.u32 2147483648, %v733_v33 }
  0xd6   : > { %v1010_v37 = vpop.eup %1009  ;;  %v777_v56 = vsel %vm774_vm7, %v776_v49, %v772_v34  ;;  %v814_v0 = vmul.f32 %v809_v53, %v564_v3  ;;  %vm789_vm11 = vcmp.eq.f32.partialorder %v788_v52, 8.507059e+37  ;;  %v803_v16 = vand.u32 2147483647, %v733_v33 }
  0xd7   : > { %v780_v42 = vmul.f32 %v1010_v37, %v732_v18  ;;  %vm785_vm8 = vweird.f32 %v1010_v37  ;;  %v811_v4 = vmul.f32 %v777_v56, %v1193_v43  ;;  %vm799_vm13 = vweird.f32 %v733_v33 }
  0xd8   : > { %v1012_v57 = vpop.eup %1011  ;;  %vm786_vm10 = vmor %vm784_vm9, %vm785_vm8  ;;  %v819_v54 = vpack.c.bf16 %v815_v38, %v814_v0  ;;  %v806_v13 = vor.u32 1.1754944e-38, %v805_v35  ;;  %vm804_vm15 = vcmp.eq.f32.partialorder %v803_v16, 8.507059e+37 }
  0xd9   : > { %v781_v48 = vsub.f32 1.0, %v780_v42  ;;  %v795_v39 = vmul.f32 %v1012_v57, %v733_v33  ;;  %vm800_vm12 = vweird.f32 %v1012_v57  ;;  %v816_v9 = vmul.f32 %v811_v4, %v566_v15 }
  0xda   : > { %v825_v43 = vrot.slane %v819_v54, 2  ;;  %vm801_vm14 = vmor %vm799_vm13, %vm800_vm12 }
  0xdb   : > { %v782_v55 = vmul.f32 %v1010_v37, %v781_v48  ;;  %v796_v6 = vsub.f32 1.0, %v795_v39 }
  0xdc   : > { %v831_v63 = vsel %vm365_vm0, %v819_v54, %v825_v43 }
  0xdd   : > { %v783_v60 = vadd.f32 %v1010_v37, %v782_v55  ;;  %v797_v7 = vmul.f32 %v1012_v57, %v796_v6 }
  0xdf   : > { %v787_v5 = vsel %vm786_vm10, %v1010_v37, %v783_v60  ;;  %v798_v36 = vadd.f32 %v1012_v57, %v797_v7 }
  0xe0   : > { %v792_v12 = vsel %vm789_vm11, %v791_v61, %v787_v5 }
  0xe1   : > { %v812_v59 = vmul.f32 %v792_v12, %v1232_v26  ;;  %v802_v14 = vsel %vm801_vm14, %v1012_v57, %v798_v36 }
  0xe2   : > { %v807_v18 = vsel %vm804_vm15, %v806_v13, %v802_v14 }
  0xe3   : > { %v817_v3 = vmul.f32 %v812_v59, %v567_v22  ;;  %v813_v15 = vmul.f32 %v807_v18, %v1269_v1 }
  0xe5   : > { %v820_v10 = vpack.c.bf16 %v817_v3, %v816_v9  ;;  %v818_v19 = vmul.f32 %v813_v15, %v568_v51 }
  0xe7   : > { %v826_v26 = vrot.slane %v820_v10, 4  ;;  %v827_v17 = vrot.slane %v820_v10, 6  ;;  %v821_v2 = vpack.c.bf16 %v818_v19, %v818_v19 }
  0xe9   : > { %v834_v22 = vsel %vm592_vm3, %v826_v26, %v827_v17  ;;  %v828_v20 = vrot.slane %v821_v2, 2 }
  0xea   : > { %v835_v62 = vsel %vm596_vm5, %v831_v63, %v834_v22 }
  0xeb   : > { %841 = vst [vmem:[%s345_s14] sm:$0xff] %v835_v62  ;;  %v838_v21 = vsel %vm365_vm0, %v821_v2, %v828_v20 }
  0xec   : > { %842 = vst [vmem:[%s345_s14 + $0x8] sm:$0x3] %v838_v21 }
  0xed PF: > { %s20_s30 = sadd.s32 1, %s1019_s30  }
  0xee   : > { %p17_p4 = scmp.ge.s32.totalorder %s20_s30, 4  }
  0xf0   :  { %19 = sbr.rel (!%p17_p4) target bundleno = 1 (0x1), region = 96 }

// kernel: c2f_lca3_forward.8
= control target key start
LH: loop header
LB: loop body
LE: loop exit
PB: predicated region body
PF: predicated region fallthrough
CT: control target
= control target key end

     0   :  { %s1083_s13 = smov 0   ;;  %s1220_s0 = inlined_call_operand.vmem [shape: bf16[2,4,640], index: 0, kind: input, shape index: {}]   ;;  %s1221_s1 = inlined_call_operand.vmem [shape: bf16[2,4,640], index: 1, kind: input, shape index: {}]   ;;  %s1222_s2 = inlined_call_operand.vmem [shape: bf16[2,4,640], index: 2, kind: input, shape index: {}]   ;;  %s1223_s3 = inlined_call_operand.vmem [shape: bf16[8,4], index: 3, kind: input, shape index: {}]   ;;  %s1224_s4 = inlined_call_operand.vmem [shape: bf16[8,4], index: 4, kind: input, shape index: {}]   ;;  %s1225_s5 = inlined_call_operand.vmem [shape: bf16[8,4], index: 5, kind: input, shape index: {}]   ;;  %s1226_s6 = inlined_call_operand.vmem [shape: f32[8,1], index: 6, kind: input, shape index: {}]   ;;  %s1227_s7 = inlined_call_operand.vmem [shape: f32[8,1], index: 7, kind: input, shape index: {}]   ;;  %s1228_s8 = inlined_call_operand.vmem [shape: f32[1,640], index: 8, kind: input, shape index: {}]   ;;  %s1229_s9 = inlined_call_operand.vmem [shape: bf16[2,8,640], index: 9, kind: output, shape index: {0}]   ;;  %s1230_s10 = inlined_call_operand.vmem [shape: f32[2,8,1], index: 10, kind: output, shape index: {1}]  }
   0x1 LB: > { %s955_s14 = sadd.s32 4294967295, %s1025_s13   ;;  %p959_p0 = scmp.ge.s32.totalorder %s1025_s13, 1  ;;  %s1025_s13 = sphi %s1083_s13, %s21_s13  }
   0x2   : > { %p335_p1 = scmp.lt.s32.totalorder %s1025_s13, 3 }
   0x4   : > { %p336_p2 = pnand %p959_p0, %p335_p1 }
   0x5   : > { %p387_p3 = scmp.lt.s32.totalorder (!%p336_p2), %s955_s14, 1 }
   0x6   : > { %339 = sbr.rel (%p336_p2) target bundleno = 366 (0x16e), region = 56 }
   0xb   : > { %s1232_s14 = smov (!%p387_p3, %s955_s14), 1  ;;  %vm432_vm0 = vcmask 1041408   ;;  %v415_v6 = vld [vmem:[%s1224_s4] sm:$0xf]  ;;  %vm428_vm1 = vcmask 31744   ;;  %v1027_v16 = vmov 0  }
   0xc   : > { %s1094_s15 = smul.u32 10, %s1232_s14  ;;  %v692_v15 = vld [vmem:[%s1226_s6] sm:$0xff]  ;;  %998 = vset.pattern.permute.xlu0 %v1027_v16  ;;  %s964_s23 = sshll.u32 %s1232_s14, 3 }
   0xd   : > { %695 = vperm.xlu0 %998, %v692_v15   ;;  %v412_v29 = vld [vmem:[%s1223_s3] sm:$0xf]  ;;  %s988_s19 = smul.u32 20, %s1232_s14 }
   0xe   : > { %s396_s18 = scalar_lea.vmem %s1221_s1, %s1094_s15  ;;  %s391_s21 = scalar_lea.vmem %s1220_s0, %s1094_s15  ;;  %v703_v37 = vld [vmem:[%s1227_s7] sm:$0xff] }
   0xf   : > { %v416_v0 = vld [vmem:[%s396_s18] sm:$0xff]  ;;  %v417_v1 = vld [vmem:[%s396_s18 + $0x8] sm:$0x3]  ;;  %s401_s26 = scalar_lea.vmem %s1222_s2, %s1094_s15  ;;  %s1194_s22 = scalar_lea.vmem %s1229_s9, %s988_s19 }
  0x10   : > { %419 = vst [vmem:[#allocation1] ss:$4 sm:$0xff] %v416_v0  ;;  %v413_v2 = vld [vmem:[%s391_s21] sm:$0xff]  ;;  %v414_v3 = vld [vmem:[%s391_s21 + $0x8] sm:$0x3] }
  0x11   : > { %422 = vst [vmem:[#allocation1 + $0x20] ss:$4 sm:$0xff] %v417_v1  ;;  %v597_v17 = vld [vmem:[%s401_s26] sm:$0xff]  ;;  %v598_v18 = vld [vmem:[%s401_s26 + $0x8] sm:$0x3]  ;;  %s410_s26 = scalar_lea.vmem %s1230_s10, %s964_s23 }
  0x12   : > { %v596_v41 = vld [vmem:[%s1225_s5] sm:$0xf] }
  0x15   : > { %706 = vperm.xlu0 %998, %v703_v37  }
  0x17   : > { %v423_v4 = vld.sshfl [vmem:[#allocation1] sm:$0xff pattern:$0x73625140]  ;;  %v424_v5 = vld.sshfl [vmem:[#allocation1 + $0x8] sm:$0xff pattern:$0x73625140] }
  0x18   : > { %v433_v7 = vsel %vm432_vm0, %v423_v4, 0  ;;  %v435_v8 = vsel %vm432_vm0, %v424_v5, 0  ;;  %v425_v9 = vld.sshfl [vmem:[#allocation1 + $0x10] sm:$0xff pattern:$0x73625140] }
  0x19   : > { %450 = vmatpush.bf16.msra.mxu0 %v433_v7  ;;  %463 = vmatpush.bf16.msra.mxu1 %v435_v8  ;;  %v437_v10 = vsel %vm432_vm0, %v425_v9, 0  ;;  %v426_v11 = vld.sshfl [vmem:[#allocation1 + $0x18] sm:$0xff pattern:$0x73625140] }
  0x1a   : > { %476 = vmatpush.bf16.msra.mxu2 %v437_v10  ;;  %v439_v12 = vsel %vm432_vm0, %v426_v11, 0  ;;  %509 = vst [vmem:[#allocation1] ss:$4 sm:$0xff] %v413_v2  ;;  %v427_v13 = vld.sshfl [vmem:[#allocation1 + $0x20] sm:$0xff pattern:$0x73625140] }
  0x1b   : > { %489 = vmatpush.bf16.msra.mxu3 %v439_v12  ;;  %v441_v14 = vsel %vm432_vm0, %v427_v13, 0  ;;  %512 = vst [vmem:[#allocation1 + $0x20] ss:$4 sm:$0xff] %v414_v3 }
  0x1c   : > { %965 = vmatmul.msk.bf16.vlgmr.msra.gmra.mxu0 %vm428_vm1, %v415_v6  ;;  %966 = vmatmul.msk.bf16.vlgmr.msra.gmra.mxu1 %vm428_vm1, %v415_v6 }
  0x1d   : > { %967 = vmatmul.msk.bf16.vlgmr.msra.gmra.mxu2 %vm428_vm1, %v415_v6  ;;  %502 = vmatpush.bf16.msrb.mxu0 %v441_v14 }
  0x1e   : > { %968 = vmatmul.msk.bf16.vlgmr.msra.gmra.mxu3 %vm428_vm1, %v415_v6 }
  0x21   : > { %v516_v19 = vld.sshfl [vmem:[#allocation1 + $0x18] sm:$0xff pattern:$0x73625140]  ;;  %v514_v20 = vld.sshfl [vmem:[#allocation1 + $0x8] sm:$0xff pattern:$0x73625140] }
  0x22   : > { %v523_v21 = vsel %vm432_vm0, %v514_v20, 0  ;;  %v513_v22 = vld.sshfl [vmem:[#allocation1] sm:$0xff pattern:$0x73625140]  ;;  %v527_v23 = vsel %vm432_vm0, %v516_v19, 0 }
  0x23   : > { %551 = vmatpush.bf16.msrb.mxu2 %v523_v21  ;;  %v521_v24 = vsel %vm432_vm0, %v513_v22, 0  ;;  %v515_v25 = vld.sshfl [vmem:[#allocation1 + $0x10] sm:$0xff pattern:$0x73625140]  ;;  %577 = vmatpush.bf16.msra.mxu0 %v527_v23 }
  0x24   : > { %538 = vmatpush.bf16.msrb.mxu1 %v521_v24  ;;  %v525_v26 = vsel %vm432_vm0, %v515_v25, 0  ;;  %600 = vst [vmem:[#allocation1] ss:$4 sm:$0xff] %v597_v17  ;;  %v517_v27 = vld.sshfl [vmem:[#allocation1 + $0x20] sm:$0xff pattern:$0x73625140] }
  0x25   : > { %564 = vmatpush.bf16.msrb.mxu3 %v525_v26  ;;  %v529_v28 = vsel %vm432_vm0, %v517_v27, 0  ;;  %603 = vst [vmem:[#allocation1 + $0x20] ss:$4 sm:$0xff] %v598_v18 }
  0x28   : > { %590 = vmatpush.bf16.msra.mxu1 %v529_v28 }
  0x2b   : > { %v604_v30 = vld.sshfl [vmem:[#allocation1] sm:$0xff pattern:$0x73625140]  ;;  %v605_v31 = vld.sshfl [vmem:[#allocation1 + $0x8] sm:$0xff pattern:$0x73625140] }
  0x2c   : > { %969 = vmatmul.msk.bf16.vlgmr.msrb.gmra.mxu0 %vm428_vm1, %v415_v6  ;;  %970 = vmatmul.msk.bf16.vlgmr.msrb.gmra.mxu1 %vm428_vm1, %v412_v29  ;;  %v612_v32 = vsel %vm432_vm0, %v604_v30, 0  ;;  %v614_v33 = vsel %vm432_vm0, %v605_v31, 0  ;;  %v608_v34 = vld.sshfl [vmem:[#allocation1 + $0x20] sm:$0xff pattern:$0x73625140] }
  0x2d   : > { %971 = vmatmul.msk.bf16.vlgmr.msrb.gmra.mxu2 %vm428_vm1, %v412_v29  ;;  %642 = vmatpush.bf16.msra.mxu3 %v614_v33  ;;  %v620_v35 = vsel %vm432_vm0, %v608_v34, 0  ;;  %v606_v36 = vld.sshfl [vmem:[#allocation1 + $0x10] sm:$0xff pattern:$0x73625140] }
  0x2e   : > { %972 = vmatmul.msk.bf16.vlgmr.msrb.gmra.mxu3 %vm428_vm1, %v412_v29  ;;  %629 = vmatpush.bf16.msra.mxu2 %v612_v32  ;;  %v616_v38 = vsel %vm432_vm0, %v606_v36, 0  ;;  %v607_v39 = vld.sshfl [vmem:[#allocation1 + $0x18] sm:$0xff pattern:$0x73625140] }
  0x2f   : > { %655 = vmatpush.bf16.msrb.mxu0 %v616_v38  ;;  %v618_v40 = vsel %vm432_vm0, %v607_v39, 0 }
  0x30   : > { %668 = vmatpush.bf16.msrb.mxu1 %v618_v40 }
  0x32   : > { %681 = vmatpush.bf16.msrb.mxu2 %v620_v35 }
  0x3c   : > { %973 = vmatmul.msk.bf16.vlgmr.msra.gmra.mxu0 %vm428_vm1, %v412_v29  ;;  %974 = vmatmul.msk.bf16.vlgmr.msra.gmra.mxu1 %vm428_vm1, %v412_v29 }
  0x3d   : > { %975 = vmatmul.msk.bf16.vlgmr.msra.gmra.mxu2 %vm428_vm1, %v596_v41 }
  0x3e   : > { %976 = vmatmul.msk.bf16.vlgmr.msra.gmra.mxu3 %vm428_vm1, %v596_v41 }
  0x4c   : > { %977 = vmatmul.msk.bf16.vlgmr.msrb.gmra.mxu0 %vm428_vm1, %v596_v41  ;;  %978 = vmatmul.msk.bf16.vlgmr.msrb.gmra.mxu1 %vm428_vm1, %v596_v41 }
  0x4d   : > { %979 = vmatmul.msk.bf16.vlgmr.msrb.gmra.mxu2 %vm428_vm1, %v596_v41 }
  0x7f   : > { %v696_v57 = vpop.permute.xlu0 %695 }
  0x87   : > { %v707_v5 = vpop.permute.xlu0 %706 }
  0x99   : > { %v452_v42 = vpop.f32.mrf.mxu0  ;;  %v465_v43 = vpop.f32.mrf.mxu1 }
  0xa0   : > { %v478_v44 = vpop.f32.mrf.mxu2 }
  0xa1   : > { %v491_v45 = vpop.f32.mrf.mxu3  ;;  %v454_v46 = vpop.f32.mrf.mxu0 }
  0xa2   : > { %v467_v47 = vpop.f32.mrf.mxu1 }
  0xa8   : > { %v480_v48 = vpop.f32.mrf.mxu2 }
  0xa9   : > { %v493_v49 = vpop.f32.mrf.mxu3  ;;  %v504_v50 = vpop.f32.mrf.mxu0 }
  0xaa   : > { %v540_v51 = vpop.f32.mrf.mxu1 }
  0xab   : > { %v541_v61 = vadd.f32 %v540_v51, %v452_v42 }
  0xb0   : > { %v553_v52 = vpop.f32.mrf.mxu2 }
  0xb1   : > { %v566_v53 = vpop.f32.mrf.mxu3  ;;  %v506_v54 = vpop.f32.mrf.mxu0  ;;  %v554_v62 = vadd.f32 %v553_v52, %v465_v43 }
  0xb2   : > { %v542_v55 = vpop.f32.mrf.mxu1  ;;  %v567_v11 = vadd.f32 %v566_v53, %v478_v44  ;;  %v1176_v53 = vld [vmem:[%s1228_s8] sm:$0x1f] }
  0xb8   : > { %v555_v56 = vpop.f32.mrf.mxu2 }
  0xb9   : > { %v568_v58 = vpop.f32.mrf.mxu3  ;;  %v579_v59 = vpop.f32.mrf.mxu0 }
  0xba   : > { %v592_v60 = vpop.f32.mrf.mxu1  ;;  %v580_v14 = vadd.f32 %v579_v59, %v491_v45 }
  0xbb   : > { %v593_v24 = vadd.f32 %v592_v60, %v504_v50  ;;  %v816_v60 = vperm.slane %v1176_v53, 0 }
  0xc0   : > { %v631_v63 = vpop.f32.mrf.mxu2 }
  0xc1   : > { %v687_v0 = vadd.f32 %v631_v63, %v541_v61  ;;  %v644_v1 = vpop.f32.mrf.mxu3  ;;  %v581_v2 = vpop.f32.mrf.mxu0 }
  0xc2   : > { %v688_v3 = vadd.f32 %v644_v1, %v554_v62  ;;  %v594_v4 = vpop.f32.mrf.mxu1  ;;  %v817_v2 = vperm.slane %v1176_v53, 1 }
  0xc3   : > { %v698_v6 = vmul.f32 %v696_v57, %v687_v0 }
  0xc4   : > { %v699_v7 = vmul.f32 %v696_v57, %v688_v3 }
  0xc5   : > { %v1153_v8 = vadd.f32 %v707_v5, %v698_v6 }
  0xc6   : > { %v1155_v9 = vadd.f32 %v707_v5, %v699_v7 }
  0xc7   : > { %v980_v10 = vmul.f32 -1.442695, %v1153_v8 }
  0xc8   : > { %v981_v12 = vmul.f32 -1.442695, %v1155_v9  ;;  %v633_v13 = vpop.f32.mrf.mxu2 }
  0xc9   : > { %999 = vpow2.f32 %v980_v10  ;;  %v657_v15 = vpop.f32.mrf.mxu0  ;;  %v646_v16 = vpop.f32.mrf.mxu3 }
  0xca   : > { %1001 = vpow2.f32 %v981_v12  ;;  %v689_v17 = vadd.f32 %v657_v15, %v567_v11  ;;  %v670_v18 = vpop.f32.mrf.mxu1 }
  0xcb   : > { %v690_v19 = vadd.f32 %v670_v18, %v580_v14 }
  0xcc   : > { %v700_v20 = vmul.f32 %v696_v57, %v689_v17 }
  0xcd   : > { %v701_v21 = vmul.f32 %v696_v57, %v690_v19 }
  0xce   : > { %v1159_v22 = vadd.f32 %v707_v5, %v700_v20 }
  0xcf   : > { %v1000_v23 = vpop.eup %999  ;;  %v1161_v25 = vadd.f32 %v707_v5, %v701_v21 }
  0xd0   : > { %v1002_v26 = vpop.eup %1001  ;;  %v729_v27 = vadd.f32 1.0, %v1000_v23  ;;  %v982_v28 = vmul.f32 -1.442695, %v1159_v22  ;;  %v683_v29 = vpop.f32.mrf.mxu2  ;;  %v818_v23 = vperm.slane %v1176_v53, 2 }
  0xd1   : > { %v730_v30 = vadd.f32 1.0, %v1002_v26  ;;  %v983_v31 = vmul.f32 -1.442695, %v1161_v25  ;;  %v691_v32 = vadd.f32 %v683_v29, %v593_v24  ;;  %v659_v33 = vpop.f32.mrf.mxu0 }
  0xd2   : > { %1003 = vrcp.f32 %v729_v27  ;;  %v672_v34 = vpop.f32.mrf.mxu1  ;;  %v743_v47 = vand.u32 2147483647, %v729_v27  ;;  %v745_v48 = vand.u32 2147483648, %v729_v27  ;;  %vm739_vm4 = vweird.f32 %v729_v27 }
  0xd3   : > { %1005 = vrcp.f32 %v730_v30  ;;  %v702_v35 = vmul.f32 %v696_v57, %v691_v32  ;;  %v760_v52 = vand.u32 2147483648, %v730_v30  ;;  %v758_v55 = vand.u32 2147483647, %v730_v30 }
  0xd4   : > { %1007 = vpow2.f32 %v982_v28  ;;  %v746_v58 = vor.u32 1.1754944e-38, %v745_v48  ;;  %vm754_vm6 = vweird.f32 %v730_v30  ;;  %vm744_vm7 = vcmp.eq.f32.partialorder %v743_v47, 8.507059e+37 }
  0xd5   : > { %1009 = vpow2.f32 %v983_v31  ;;  %v1165_v36 = vadd.f32 %v707_v5, %v702_v35  ;;  %v761_v62 = vor.u32 1.1754944e-38, %v760_v52  ;;  %vm759_vm9 = vcmp.eq.f32.partialorder %v758_v55, 8.507059e+37 }
  0xd7   : > { %v984_v38 = vmul.f32 -1.442695, %v1165_v36 }
  0xd8   : > { %v1004_v37 = vpop.eup %1003  ;;  %v685_v39 = vpop.f32.mrf.mxu2 }
  0xd9   : > { %v1006_v40 = vpop.eup %1005  ;;  %v735_v41 = vmul.f32 %v1004_v37, %v729_v27  ;;  %1011 = vpow2.f32 %v984_v38  ;;  %vm740_vm2 = vweird.f32 %v1004_v37  ;;  %v819_v27 = vperm.slane %v1176_v53, 3 }
  0xda   : > { %v1008_v42 = vpop.eup %1007  ;;  %v750_v43 = vmul.f32 %v1006_v40, %v730_v30  ;;  %vm755_vm3 = vweird.f32 %v1006_v40  ;;  %vm741_vm5 = vmor %vm739_vm4, %vm740_vm2 }
  0xdb   : > { %v1010_v44 = vpop.eup %1009  ;;  %v736_v45 = vsub.f32 1.0, %v735_v41  ;;  %v1168_v46 = vadd.f32 1.0, %v1008_v42  ;;  %vm756_vm8 = vmor %vm754_vm6, %vm755_vm3  ;;  %vm843_vm6 = vcmask 7168  }
  0xdc   : > { %v751_v49 = vsub.f32 1.0, %v750_v43  ;;  %v1170_v50 = vadd.f32 1.0, %v1010_v44 }
  0xdd   : > { %v737_v51 = vmul.f32 %v1004_v37, %v736_v45  ;;  %1013 = vrcp.f32 %v1168_v46  ;;  %v773_v15 = vand.u32 2147483647, %v1168_v46  ;;  %v775_v16 = vand.u32 2147483648, %v1168_v46 }
  0xde   : > { %v752_v54 = vmul.f32 %v1006_v40, %v751_v49  ;;  %1015 = vrcp.f32 %v1170_v50  ;;  %v790_v18 = vand.u32 2147483648, %v1170_v50  ;;  %vm769_vm12 = vweird.f32 %v1168_v46 }
  0xdf   : > { %v738_v56 = vadd.f32 %v1004_v37, %v737_v51  ;;  %v1012_v57 = vpop.eup %1011  ;;  %vm774_vm14 = vcmp.eq.f32.partialorder %v773_v15, 8.507059e+37  ;;  %v776_v28 = vor.u32 1.1754944e-38, %v775_v16  ;;  %vm784_vm15 = vweird.f32 %v1170_v50 }
  0xe0   : > { %v753_v59 = vadd.f32 %v1006_v40, %v752_v54  ;;  %v1180_v63 = vadd.f32 1.0, %v1012_v57  ;;  %v791_v31 = vor.u32 1.1754944e-38, %v790_v18 }
  0xe1   : > { %v742_v61 = vsel %vm741_vm5, %v1004_v37, %v738_v56 }
  0xe2   : > { %v747_v0 = vsel %vm744_vm7, %v746_v58, %v742_v61  ;;  %v757_v1 = vsel %vm756_vm8, %v1006_v40, %v753_v59  ;;  %1017 = vrcp.f32 %v1180_v63  ;;  %v803_v35 = vand.u32 2147483647, %v1180_v63 }
  0xe3   : > { %v1014_v3 = vpop.eup %1013  ;;  %v762_v4 = vsel %vm759_vm9, %v761_v62, %v757_v1  ;;  %v809_v5 = vmul.f32 %v747_v0, %v1153_v8  ;;  %v805_v37 = vand.u32 2147483648, %v1180_v63  ;;  %vm799_vm3 = vweird.f32 %v1180_v63 }
  0xe4   : > { %v1016_v6 = vpop.eup %1015  ;;  %v810_v7 = vmul.f32 %v762_v4, %v1155_v9  ;;  %v765_v10 = vmul.f32 %v1014_v3, %v1168_v46  ;;  %v788_v9 = vand.u32 2147483647, %v1170_v50  ;;  %vm770_vm10 = vweird.f32 %v1014_v3 }
  0xe5   : > { %v780_v11 = vmul.f32 %v1016_v6, %v1170_v50  ;;  %v826_v12 = vmul.f32 %v816_v60, %v809_v5  ;;  %vm785_vm11 = vweird.f32 %v1016_v6  ;;  %vm771_vm13 = vmor %vm769_vm12, %vm770_vm10  ;;  %v806_v45 = vor.u32 1.1754944e-38, %v805_v37 }
  0xe6   : > { %v766_v13 = vsub.f32 1.0, %v765_v10  ;;  %v827_v14 = vmul.f32 %v817_v2, %v810_v7  ;;  %vm786_vm0 = vmor %vm784_vm15, %vm785_vm11  ;;  %vm789_vm1 = vcmp.eq.f32.partialorder %v788_v9, 8.507059e+37  ;;  %vm804_vm5 = vcmp.eq.f32.partialorder %v803_v35, 8.507059e+37 }
  0xe7   : > { %v781_v8 = vsub.f32 1.0, %v780_v11 }
  0xe8   : > { %v767_v17 = vmul.f32 %v1014_v3, %v766_v13  ;;  %v831_v19 = vpack.c.bf16 %v827_v14, %v826_v12  ;;  %v1018_v20 = vpop.eup %1017  ;;  %v837_v44 = vadd.f32 %v827_v14, %v826_v12 }
  0xe9   : > { %v782_v21 = vmul.f32 %v1016_v6, %v781_v8  ;;  %v795_v26 = vmul.f32 %v1018_v20, %v1180_v63  ;;  %vm800_vm2 = vweird.f32 %v1018_v20 }
  0xea   : > { %v768_v24 = vadd.f32 %v1014_v3, %v767_v17  ;;  %834 = vst [vmem:[%s1194_s22] sm:$0xff] %v831_v19  ;;  %vm801_vm4 = vmor %vm799_vm3, %vm800_vm2 }
  0xeb   : > { %v783_v29 = vadd.f32 %v1016_v6, %v782_v21  ;;  %v796_v32 = vsub.f32 1.0, %v795_v26 }
  0xec   : > { %v772_v30 = vsel %vm771_vm13, %v1014_v3, %v768_v24 }
  0xed   : > { %v777_v33 = vsel %vm774_vm14, %v776_v28, %v772_v30  ;;  %v787_v34 = vsel %vm786_vm0, %v1016_v6, %v783_v29  ;;  %v797_v40 = vmul.f32 %v1018_v20, %v796_v32 }
  0xee   : > { %v811_v38 = vmul.f32 %v777_v33, %v1159_v22  ;;  %v792_v39 = vsel %vm789_vm1, %v791_v31, %v787_v34  ;;  %v820_v22 = vperm.slane %v1176_v53, 4 }
  0xef   : > { %v812_v41 = vmul.f32 %v792_v39, %v1161_v25  ;;  %v798_v42 = vadd.f32 %v1018_v20, %v797_v40 }
  0xf0   : > { %v828_v43 = vmul.f32 %v818_v23, %v811_v38 }
  0xf1   : > { %v829_v46 = vmul.f32 %v819_v27, %v812_v41  ;;  %v802_v47 = vsel %vm801_vm4, %v1018_v20, %v798_v42 }
  0xf2   : > { %v838_v48 = vadd.f32 %v837_v44, %v828_v43  ;;  %v807_v49 = vsel %vm804_vm5, %v806_v45, %v802_v47 }
  0xf3   : > { %v832_v50 = vpack.c.bf16 %v829_v46, %v828_v43  ;;  %v813_v51 = vmul.f32 %v807_v49, %v1165_v36 }
  0xf4   : > { %v839_v52 = vadd.f32 %v838_v48, %v829_v46 }
  0xf5   : > { %835 = vst [vmem:[%s1194_s22 + $0x8] sm:$0xff] %v832_v50  ;;  %v830_v25 = vmul.f32 %v820_v22, %v813_v51 }
  0xf7   : > { %v833_v54 = vpack.c.bf16 %v830_v25, %v830_v25  ;;  %v840_v55 = vadd.f32 %v839_v52, %v830_v25 }
  0xf9   : > { %836 = vst [vmem:[%s1194_s22 + $0x10] sm:$0xf] %v833_v54  ;;  %841 = vadd.xlane.f32.xlu1 %v840_v55 }
 0x16c   : > { %v842_v56 = vpop.xlane.xlu1 %841 }
 0x16d   : > { %844 = vst.msk [vmem:[%s410_s26] sm:$0xff] %vm843_vm6, %v842_v56 }
 0x16e PF: > { %s21_s13 = sadd.s32 1, %s1025_s13  }
 0x16f   : > { %p18_p4 = scmp.ge.s32.totalorder %s21_s13, 4  }
 0x171   :  { %20 = sbr.rel (!%p18_p4) target bundleno = 1 (0x1), region = 107 }

// kernel: c2f_lca3_forward.6
= control target key start
LH: loop header
LB: loop body
LE: loop exit
PB: predicated region body
PF: predicated region fallthrough
CT: control target
= control target key end

     0   :  { %s1405_s18 = smov 0   ;;  %s1596_s0 = inlined_call_operand.vmem [shape: bf16[2,4,640], index: 0, kind: input, shape index: {}]   ;;  %s1597_s1 = inlined_call_operand.vmem [shape: bf16[9,4,4], index: 1, kind: input, shape index: {}]   ;;  %s1598_s2 = inlined_call_operand.vmem [shape: f32[4,1], index: 2, kind: input, shape index: {}]   ;;  %s1599_s3 = inlined_call_operand.vmem [shape: f32[4,1], index: 3, kind: input, shape index: {}]   ;;  %s1600_s4 = inlined_call_operand.vmem [shape: f32[1,400], index: 4, kind: input, shape index: {}]   ;;  %s1601_s5 = inlined_call_operand.vmem [shape: bf16[2,4,640], index: 5, kind: output, shape index: {}]  }
   0x1 LB: > { %s1265_s19 = sadd.s32 4294967295, %s1364_s18   ;;  %p1269_p0 = scmp.ge.s32.totalorder %s1364_s18, 1  ;;  %s1364_s18 = sphi %s1405_s18, %s15_s18  }
   0x2   : > { %p187_p1 = scmp.lt.s32.totalorder %s1364_s18, 3 }
   0x4   : > { %p188_p2 = pnand %p1269_p0, %p187_p1 }
   0x5   : > { %p215_p3 = scmp.lt.s32.totalorder (!%p188_p2), %s1265_s19, 1  ;;  %s1366_s24 = smov (!%p188_p2), 20  }
   0x6   : > { %191 = sbr.rel (%p188_p2) target bundleno = 458 (0x1ca), region = 40  ;;  %s1367_s25 = smov (!%p188_p2), 21  }
   0x7   : > { %s1368_s26 = smov (!%p188_p2), 19   ;;  %s1369_s27 = smov (!%p188_p2), 1  }
   0x8   : > { %s1370_s28 = smov (!%p188_p2), 127   ;;  %s1371_s29 = smov (!%p188_p2), 109  }
   0x9   : > { %s1372_s30 = smov (!%p188_p2), 108   ;;  %s1373_s6 = smov (!%p188_p2), 107  }
   0xb   : > { %s1603_s19 = smov (!%p215_p3, %s1265_s19), 1  ;;  %vm338_vm0 = vcmask 171008   ;;  %vm256_vm1 = vcmask 1041408   ;;  %vm248_vm2 = vcmask 162816   ;;  %vm252_vm3 = vcmask 31744  }
   0xc   : > { %s1322_s20 = smul.u32 10, %s1603_s19  ;;  %v1272_v57 = vld [vmem:[%s1597_s1 + $0x2] sm:$0x3]  ;;  %vm430_vm4 = vcmask 154624   ;;  %vm534_vm5 = vcmask 7168   ;;  %vm707_vm6 = vcmask 1039360  }
   0xd   : > { %vm803_vm7 = vcmask 891904   ;;  %vm899_vm8 = vcmask 883712   ;;  %vm995_vm9 = vcmask 875520   ;;  %vm1185_vm10 = vcmask 1041536  }
   0xe   : > { %s1421_s23 = scalar_lea.vmem %s1596_s0, %s1322_s20 }
   0xf   : > { %v227_v0 = vld [vmem:[%s1421_s23] sm:$0xff]  ;;  %v508_v9 = vld [vmem:[%s1421_s23 + $0x8] sm:$0x3] }
  0x10   : > { %231 = vst [vmem:[#allocation1] ss:$4 sm:$0xff] %v227_v0  ;;  %v612_v14 = vld [vmem:[%s1421_s23 + $0x2] sm:$0xff] }
  0x11   : > { %513 = vst [vmem:[#allocation1 + $0x20] ss:$4 sm:$0xff] %v508_v9 }
  0x17   : > { %v236_v1 = vld.sshfl [vmem:[#allocation1 + $0x10] sm:$0xff pattern:$0x73625140]  ;;  %v232_v2 = vld.sshfl [vmem:[#allocation1] sm:$0xff pattern:$0x73625140] }
  0x18   : > { %244 = vrot.lane.b32.xlu0 %v236_v1, %s1366_s24  ;;  %240 = vrot.lane.b32.xlu1 %v232_v2, %s1366_s24  ;;  %v238_v3 = vld.sshfl [vmem:[#allocation1 + $0x18] sm:$0xff pattern:$0x73625140]  ;;  %v234_v4 = vld.sshfl [vmem:[#allocation1 + $0x8] sm:$0xff pattern:$0x73625140] }
  0x19   : > { %321 = vst [vmem:[#allocation1] ss:$4 sm:$0xff] %v227_v0  ;;  %v522_v23 = vld.sshfl [vmem:[#allocation1 + $0x20] sm:$0xff pattern:$0x73625140] }
  0x20   : > { %246 = vrot.lane.b32.xlu0 %v238_v3, %s1366_s24  ;;  %242 = vrot.lane.b32.xlu1 %v234_v4, %s1366_s24  ;;  %v324_v5 = vld.sshfl [vmem:[#allocation1 + $0x8] sm:$0xff pattern:$0x73625140]  ;;  %v322_v6 = vld.sshfl [vmem:[#allocation1] sm:$0xff pattern:$0x73625140] }
  0x21   : > { %v326_v7 = vld.sshfl [vmem:[#allocation1 + $0x10] sm:$0xff pattern:$0x73625140]  ;;  %v328_v8 = vld.sshfl [vmem:[#allocation1 + $0x18] sm:$0xff pattern:$0x73625140] }
  0x22   : > { %334 = vrot.lane.b32.xlu2 %v326_v7, %s1367_s25  ;;  %413 = vst [vmem:[#allocation1] ss:$4 sm:$0xff] %v227_v0 }
  0x28   : > { %332 = vrot.lane.b32.xlu1 %v324_v5, %s1367_s25  ;;  %330 = vrot.lane.b32.xlu0 %v322_v6, %s1367_s25 }
  0x29   : > { %v416_v10 = vld.sshfl [vmem:[#allocation1 + $0x8] sm:$0xff pattern:$0x73625140]  ;;  %v418_v11 = vld.sshfl [vmem:[#allocation1 + $0x10] sm:$0xff pattern:$0x73625140] }
  0x2a   : > { %v420_v12 = vld.sshfl [vmem:[#allocation1 + $0x18] sm:$0xff pattern:$0x73625140]  ;;  %v414_v13 = vld.sshfl [vmem:[#allocation1] sm:$0xff pattern:$0x73625140]  ;;  %336 = vrot.lane.b32.xlu2 %v328_v8, %s1367_s25 }
  0x2b   : > { %510 = vst [vmem:[#allocation1] ss:$4 sm:$0xff] %v227_v0 }
  0x30   : > { %428 = vrot.lane.b32.xlu0 %v420_v12, %s1368_s26  ;;  %422 = vrot.lane.b32.xlu1 %v414_v13, %s1368_s26 }
  0x32   : > { %v520_v15 = vld.sshfl [vmem:[#allocation1 + $0x18] sm:$0xff pattern:$0x73625140]  ;;  %426 = vrot.lane.b32.xlu2 %v418_v11, %s1368_s26  ;;  %v518_v16 = vld.sshfl [vmem:[#allocation1 + $0x10] sm:$0xff pattern:$0x73625140] }
  0x33   : > { %v516_v17 = vld.sshfl [vmem:[#allocation1 + $0x8] sm:$0xff pattern:$0x73625140]  ;;  %v514_v18 = vld.sshfl [vmem:[#allocation1] sm:$0xff pattern:$0x73625140] }
  0x34   : > { %614 = vst [vmem:[#allocation1] ss:$4 sm:$0xff] %v612_v14 }
  0x38   : > { %530 = vrot.lane.b32.xlu1 %v520_v15, %s1369_s27  ;;  %528 = vrot.lane.b32.xlu0 %v518_v16, %s1369_s27 }
  0x3a   : > { %424 = vrot.lane.b32.xlu2 %v416_v10, %s1368_s26  ;;  %v226_v10 = vld [vmem:[%s1597_s1] sm:$0x3]  ;;  %s1534_s26 = scalar_lea.vmem %s1601_s5, %s1322_s20 }
  0x3b   : > { %v1426_v19 = vld.sshfl [vmem:[#allocation1] sm:$0xff pattern:$0x73625140]  ;;  %v1428_v20 = vld.sshfl [vmem:[#allocation1 + $0x8] sm:$0xff pattern:$0x73625140] }
  0x3c   : > { %v1430_v21 = vld.sshfl [vmem:[#allocation1 + $0x10] sm:$0xff pattern:$0x73625140]  ;;  %v1432_v22 = vld.sshfl [vmem:[#allocation1 + $0x18] sm:$0xff pattern:$0x73625140] }
  0x3d   : > { %690 = vst [vmem:[#allocation1] ss:$4 sm:$0xff] %v612_v14 }
  0x40   : > { %526 = vrot.lane.b32.xlu1 %v516_v17, %s1369_s27  ;;  %524 = vrot.lane.b32.xlu0 %v514_v18, %s1369_s27 }
  0x42   : > { %532 = vrot.lane.b32.xlu2 %v522_v23, %s1369_s27 }
  0x44   : > { %v693_v24 = vld.sshfl [vmem:[#allocation1 + $0x8] sm:$0xff pattern:$0x73625140]  ;;  %v695_v25 = vld.sshfl [vmem:[#allocation1 + $0x10] sm:$0xff pattern:$0x73625140] }
  0x45   : > { %v697_v26 = vld.sshfl [vmem:[#allocation1 + $0x18] sm:$0xff pattern:$0x73625140]  ;;  %v691_v27 = vld.sshfl [vmem:[#allocation1] sm:$0xff pattern:$0x73625140] }
  0x46   : > { %786 = vst [vmem:[#allocation1] ss:$4 sm:$0xff] %v612_v14 }
  0x48   : > { %705 = vrot.lane.b32.xlu0 %v697_v26, %s1370_s28  ;;  %699 = vrot.lane.b32.xlu1 %v691_v27, %s1370_s28  ;;  %v1281_v27 = vld [vmem:[%s1597_s1 + $0x4] sm:$0x3] }
  0x4a   : > { %703 = vrot.lane.b32.xlu2 %v695_v25, %s1370_s28 }
  0x4d   : > { %v787_v28 = vld.sshfl [vmem:[#allocation1] sm:$0xff pattern:$0x73625140]  ;;  %v791_v29 = vld.sshfl [vmem:[#allocation1 + $0x10] sm:$0xff pattern:$0x73625140] }
  0x4e   : > { %v793_v30 = vld.sshfl [vmem:[#allocation1 + $0x18] sm:$0xff pattern:$0x73625140]  ;;  %v789_v31 = vld.sshfl [vmem:[#allocation1 + $0x8] sm:$0xff pattern:$0x73625140] }
  0x4f   : > { %882 = vst [vmem:[#allocation1] ss:$4 sm:$0xff] %v612_v14 }
  0x50   : > { %799 = vrot.lane.b32.xlu0 %v791_v29, %s1371_s29  ;;  %801 = vrot.lane.b32.xlu1 %v793_v30, %s1371_s29  ;;  %v628_v29 = vsel %vm256_vm1, %v1432_v22, 0 }
  0x52   : > { %701 = vrot.lane.b32.xlu2 %v693_v24, %s1370_s28 }
  0x56   : > { %v887_v32 = vld.sshfl [vmem:[#allocation1 + $0x10] sm:$0xff pattern:$0x73625140]  ;;  %v889_v33 = vld.sshfl [vmem:[#allocation1 + $0x18] sm:$0xff pattern:$0x73625140] }
  0x57   : > { %v885_v34 = vld.sshfl [vmem:[#allocation1 + $0x8] sm:$0xff pattern:$0x73625140]  ;;  %v883_v35 = vld.sshfl [vmem:[#allocation1] sm:$0xff pattern:$0x73625140] }
  0x58   : > { %797 = vrot.lane.b32.xlu0 %v789_v31, %s1371_s29  ;;  %895 = vrot.lane.b32.xlu1 %v887_v32, %s1372_s30  ;;  %978 = vst [vmem:[#allocation1] ss:$4 sm:$0xff] %v612_v14  ;;  %v626_v31 = vsel %vm256_vm1, %v1430_v21, 0  ;;  %v622_v32 = vsel %vm256_vm1, %v1426_v19, 0  ;;  %v1286_v19 = vld [vmem:[%s1597_s1 + $0x6] sm:$0x3] }
  0x5a   : > { %795 = vrot.lane.b32.xlu2 %v787_v28, %s1371_s29 }
  0x5f   : > { %v985_v36 = vld.sshfl [vmem:[#allocation1 + $0x18] sm:$0xff pattern:$0x73625140]  ;;  %v979_v37 = vld.sshfl [vmem:[#allocation1] sm:$0xff pattern:$0x73625140] }
  0x60   : > { %893 = vrot.lane.b32.xlu1 %v885_v34, %s1372_s30  ;;  %891 = vrot.lane.b32.xlu0 %v883_v35, %s1372_s30  ;;  %v983_v39 = vld.sshfl [vmem:[#allocation1 + $0x10] sm:$0xff pattern:$0x73625140]  ;;  %v981_v41 = vld.sshfl [vmem:[#allocation1 + $0x8] sm:$0xff pattern:$0x73625140] }
  0x62   : > { %897 = vrot.lane.b32.xlu2 %v889_v33, %s1372_s30  ;;  %v624_v33 = vsel %vm256_vm1, %v1428_v20, 0 }
  0x68   : > { %993 = vrot.lane.b32.xlu0 %v985_v36, %s1373_s6  ;;  %987 = vrot.lane.b32.xlu1 %v979_v37, %s1373_s6 }
  0x6a   : > { %991 = vrot.lane.b32.xlu2 %v983_v39, %s1373_s6 }
  0x72   : > { %989 = vrot.lane.b32.xlu2 %v981_v41, %s1373_s6 }
  0x7c   : > { %v335_v38 = vpop.permute.xlu2 %334 }
  0x84   : > { %v337_v40 = vpop.permute.xlu2 %336 }
  0x85   : > { %v341_v45 = vsel %vm338_vm0, %v335_v38, %v337_v40  ;;  %v355_v48 = vsel %vm256_vm1, %v337_v40, 0 }
  0x86   : > { %v352_v56 = vsel %vm256_vm1, %v341_v45, 0 }
  0x8a   : > { %v245_v42 = vpop.permute.xlu0 %244  ;;  %v241_v43 = vpop.permute.xlu1 %240 }
  0x8c   : > { %v427_v44 = vpop.permute.xlu2 %426 }
  0x92   : > { %v247_v46 = vpop.permute.xlu0 %246  ;;  %v243_v47 = vpop.permute.xlu1 %242 }
  0x93   : > { %v267_v49 = vsel %vm256_vm1, %v247_v46, 0  ;;  %v249_v50 = vsel %vm248_vm2, %v241_v43, %v243_v47  ;;  %v250_v51 = vsel %vm248_vm2, %v243_v47, %v245_v42  ;;  %v251_v52 = vsel %vm248_vm2, %v245_v42, %v247_v46  ;;  %v1291_v46 = vld [vmem:[%s1597_s1 + $0x8] sm:$0x3] }
  0x94   : > { %315 = vmatpush.bf16.msra.mxu3 %v267_v49  ;;  %v258_v53 = vsel %vm256_vm1, %v249_v50, 0  ;;  %v261_v54 = vsel %vm256_vm1, %v250_v51, 0  ;;  %v264_v55 = vsel %vm256_vm1, %v251_v52, 0  ;;  %v425_v58 = vpop.permute.xlu2 %424 }
  0x95   : > { %276 = vmatpush.bf16.msra.mxu0 %v258_v53  ;;  %289 = vmatpush.bf16.msra.mxu1 %v261_v54  ;;  %v432_v59 = vsel %vm430_vm4, %v425_v58, %v427_v44 }
  0x96   : > { %302 = vmatpush.bf16.msra.mxu2 %v264_v55  ;;  %v441_v0 = vsel %vm256_vm1, %v432_v59, 0 }
  0x97   : > { %1276 = vmatmul.msk.bf16.vlgmr.msra.gmra.mxu3 %vm252_vm3, %v1272_v57 }
  0x98   : > { %403 = vmatpush.bf16.msrb.mxu3 %v355_v48  ;;  %1273 = vmatmul.msk.bf16.vlgmr.msra.gmra.mxu0 %vm252_vm3, %v1272_v57 }
  0x99   : > { %1274 = vmatmul.msk.bf16.vlgmr.msra.gmra.mxu1 %vm252_vm3, %v1272_v57  ;;  %1275 = vmatmul.msk.bf16.vlgmr.msra.gmra.mxu2 %vm252_vm3, %v1272_v57 }
  0x9a   : > { %390 = vmatpush.bf16.msrb.mxu2 %v352_v56  ;;  %v333_v60 = vpop.permute.xlu1 %332  ;;  %v331_v61 = vpop.permute.xlu0 %330 }
  0x9b   : > { %v340_v62 = vsel %vm338_vm0, %v333_v60, %v335_v38  ;;  %v339_v63 = vsel %vm338_vm0, %v331_v61, %v333_v60 }
  0x9c   : > { %v349_v1 = vsel %vm256_vm1, %v340_v62, 0  ;;  %v346_v2 = vsel %vm256_vm1, %v339_v63, 0  ;;  %v533_v11 = vpop.permute.xlu2 %532 }
  0x9d   : > { %377 = vmatpush.bf16.msrb.mxu1 %v349_v1  ;;  %364 = vmatpush.bf16.msrb.mxu0 %v346_v2 }
  0xa1   : > { %469 = vmatpush.bf16.msra.mxu1 %v441_v0 }
  0xa2   : > { %v429_v3 = vpop.permute.xlu0 %428  ;;  %v423_v4 = vpop.permute.xlu1 %422 }
  0xa3   : > { %v433_v5 = vsel %vm430_vm4, %v427_v44, %v429_v3  ;;  %v447_v6 = vsel %vm256_vm1, %v429_v3, 0  ;;  %v431_v7 = vsel %vm430_vm4, %v423_v4, %v425_v58  ;;  %v1296_v58 = vld [vmem:[%s1597_s1 + $0xa] sm:$0x3] }
  0xa4   : > { %v444_v8 = vsel %vm256_vm1, %v433_v5, 0  ;;  %v438_v9 = vsel %vm256_vm1, %v431_v7, 0  ;;  %495 = vmatpush.bf16.msra.mxu3 %v447_v6  ;;  %v704_v30 = vpop.permute.xlu2 %703  ;;  %v1301_v6 = vld [vmem:[%s1597_s1 + $0xc] sm:$0x3] }
  0xa5   : > { %482 = vmatpush.bf16.msra.mxu2 %v444_v8  ;;  %456 = vmatpush.bf16.msra.mxu0 %v438_v9 }
  0xa7   : > { %1280 = vmatmul.msk.bf16.vlgmr.msrb.gmra.mxu3 %vm252_vm3, %v226_v10 }
  0xa8   : > { %1277 = vmatmul.msk.bf16.vlgmr.msrb.gmra.mxu0 %vm252_vm3, %v226_v10 }
  0xa9   : > { %1278 = vmatmul.msk.bf16.vlgmr.msrb.gmra.mxu1 %vm252_vm3, %v226_v10  ;;  %1279 = vmatmul.msk.bf16.vlgmr.msrb.gmra.mxu2 %vm252_vm3, %v226_v10 }
  0xaa   : > { %v531_v12 = vpop.permute.xlu1 %530  ;;  %v529_v13 = vpop.permute.xlu0 %528 }
  0xab   : > { %v538_v14 = vsel %vm534_vm5, %v531_v12, %v533_v11  ;;  %v537_v15 = vsel %vm534_vm5, %v529_v13, %v531_v12 }
  0xac   : > { %v552_v16 = vsel %vm256_vm1, %v538_v14, 0  ;;  %v549_v17 = vsel %vm256_vm1, %v537_v15, 0  ;;  %v702_v34 = vpop.permute.xlu2 %701  ;;  %v1374_v14 = vmov 0   ;;  %v1070_v15 = vld [vmem:[%s1598_s2] sm:$0xf] }
  0xad   : > { %587 = vmatpush.bf16.msrb.mxu2 %v549_v17  ;;  %600 = vmatpush.bf16.msrb.mxu3 %v552_v16  ;;  %v709_v35 = vsel %vm707_vm6, %v702_v34, %v704_v30  ;;  %1184 = vst [vmem:[%s1534_s26] sm:$0x3] %v1374_v14  ;;  %v1080_v16 = vld [vmem:[%s1599_s3] sm:$0xf]  ;;  %v1311_v17 = vld [vmem:[%s1597_s1 + $0x10] sm:$0x3] }
  0xae   : > { %v718_v38 = vsel %vm256_vm1, %v709_v35, 0  ;;  %1340 = vset.pattern.permute.xlu0 %v1374_v14  ;;  %1341 = vset.pattern.permute.xlu1 %v1374_v14  ;;  %1186 = vst.msk [vmem:[%s1534_s26 + $0x8] sm:$0x3] %vm1185_vm10, %v1374_v14 }
  0xaf   : > { %1073 = vperm.xlu0 %1340, %v1070_v15   ;;  %1083 = vperm.xlu1 %1341, %v1080_v16  }
  0xb2   : > { %v527_v18 = vpop.permute.xlu1 %526  ;;  %v525_v23 = vpop.permute.xlu0 %524 }
  0xb3   : > { %v536_v24 = vsel %vm534_vm5, %v527_v18, %v529_v13  ;;  %v535_v25 = vsel %vm534_vm5, %v525_v23, %v527_v18  ;;  %v1306_v13 = vld [vmem:[%s1597_s1 + $0xe] sm:$0x3] }
  0xb4   : > { %v546_v26 = vsel %vm256_vm1, %v536_v24, 0  ;;  %v543_v28 = vsel %vm256_vm1, %v535_v25, 0  ;;  %v796_v44 = vpop.permute.xlu2 %795 }
  0xb5   : > { %574 = vmatpush.bf16.msrb.mxu1 %v546_v26  ;;  %561 = vmatpush.bf16.msrb.mxu0 %v543_v28 }
  0xb7   : > { %1285 = vmatmul.msk.bf16.vlgmr.msra.gmra.mxu3 %vm252_vm3, %v1281_v27 }
  0xb8   : > { %1282 = vmatmul.msk.bf16.vlgmr.msra.gmra.mxu0 %vm252_vm3, %v1281_v27  ;;  %676 = vmatpush.bf16.msra.mxu3 %v628_v29 }
  0xb9   : > { %1283 = vmatmul.msk.bf16.vlgmr.msra.gmra.mxu1 %vm252_vm3, %v1281_v27  ;;  %1284 = vmatmul.msk.bf16.vlgmr.msra.gmra.mxu2 %vm252_vm3, %v1281_v27 }
  0xba   : > { %663 = vmatpush.bf16.msra.mxu2 %v626_v31  ;;  %637 = vmatpush.bf16.msra.mxu0 %v622_v32  ;;  %v706_v22 = vpop.permute.xlu0 %705  ;;  %v700_v21 = vpop.permute.xlu1 %699 }
  0xbb   : > { %650 = vmatpush.bf16.msra.mxu1 %v624_v33  ;;  %v710_v36 = vsel %vm707_vm6, %v704_v30, %v706_v22  ;;  %v708_v37 = vsel %vm707_vm6, %v700_v21, %v702_v34  ;;  %v724_v40 = vsel %vm256_vm1, %v706_v22, 0 }
  0xbc   : > { %v721_v39 = vsel %vm256_vm1, %v710_v36, 0  ;;  %v715_v41 = vsel %vm256_vm1, %v708_v37, 0  ;;  %v898_v54 = vpop.permute.xlu2 %897 }
  0xbd   : > { %v916_v0 = vsel %vm256_vm1, %v898_v54, 0 }
  0xc2   : > { %v800_v20 = vpop.permute.xlu0 %799  ;;  %v802_v42 = vpop.permute.xlu1 %801 }
  0xc3   : > { %v806_v47 = vsel %vm803_vm7, %v800_v20, %v802_v42  ;;  %v820_v52 = vsel %vm256_vm1, %v802_v42, 0 }
  0xc4   : > { %v817_v51 = vsel %vm256_vm1, %v806_v47, 0  ;;  %v992_v62 = vpop.permute.xlu2 %991 }
  0xc7   : > { %1290 = vmatmul.msk.bf16.vlgmr.msrb.gmra.mxu3 %vm252_vm3, %v1286_v19 }
  0xc8   : > { %1287 = vmatmul.msk.bf16.vlgmr.msrb.gmra.mxu0 %vm252_vm3, %v1286_v19  ;;  %772 = vmatpush.bf16.msrb.mxu3 %v724_v40 }
  0xc9   : > { %1288 = vmatmul.msk.bf16.vlgmr.msrb.gmra.mxu1 %vm252_vm3, %v1286_v19  ;;  %1289 = vmatmul.msk.bf16.vlgmr.msrb.gmra.mxu2 %vm252_vm3, %v1286_v19 }
  0xca   : > { %746 = vmatpush.bf16.msrb.mxu1 %v718_v38  ;;  %759 = vmatpush.bf16.msrb.mxu2 %v721_v39  ;;  %v798_v43 = vpop.permute.xlu0 %797  ;;  %v896_v50 = vpop.permute.xlu1 %895 }
  0xcb   : > { %733 = vmatpush.bf16.msrb.mxu0 %v715_v41  ;;  %v805_v45 = vsel %vm803_vm7, %v798_v43, %v800_v20  ;;  %v804_v48 = vsel %vm803_vm7, %v796_v44, %v798_v43  ;;  %v902_v59 = vsel %vm899_vm8, %v896_v50, %v898_v54 }
  0xcc   : > { %v814_v49 = vsel %vm256_vm1, %v805_v45, 0  ;;  %v811_v53 = vsel %vm256_vm1, %v804_v48, 0  ;;  %v913_v63 = vsel %vm256_vm1, %v902_v59, 0  ;;  %v990_v2 = vpop.permute.xlu2 %989 }
  0xcd   : > { %v997_v5 = vsel %vm995_vm9, %v990_v2, %v992_v62 }
  0xce   : > { %v1006_v9 = vsel %vm256_vm1, %v997_v5, 0 }
  0xd2   : > { %v894_v55 = vpop.permute.xlu1 %893  ;;  %v892_v56 = vpop.permute.xlu0 %891 }
  0xd3   : > { %v901_v57 = vsel %vm899_vm8, %v894_v55, %v896_v50  ;;  %v900_v60 = vsel %vm899_vm8, %v892_v56, %v894_v55 }
  0xd4   : > { %v910_v61 = vsel %vm256_vm1, %v901_v57, 0  ;;  %v907_v1 = vsel %vm256_vm1, %v900_v60, 0 }
  0xd7   : > { %1295 = vmatmul.msk.bf16.vlgmr.msra.gmra.mxu3 %vm252_vm3, %v1291_v46 }
  0xd8   : > { %1292 = vmatmul.msk.bf16.vlgmr.msra.gmra.mxu0 %vm252_vm3, %v1291_v46  ;;  %868 = vmatpush.bf16.msra.mxu3 %v820_v52 }
  0xd9   : > { %1293 = vmatmul.msk.bf16.vlgmr.msra.gmra.mxu1 %vm252_vm3, %v1291_v46  ;;  %1294 = vmatmul.msk.bf16.vlgmr.msra.gmra.mxu2 %vm252_vm3, %v1291_v46 }
  0xda   : > { %842 = vmatpush.bf16.msra.mxu1 %v814_v49  ;;  %855 = vmatpush.bf16.msra.mxu2 %v817_v51  ;;  %v994_v3 = vpop.permute.xlu0 %993  ;;  %v988_v4 = vpop.permute.xlu1 %987 }
  0xdb   : > { %829 = vmatpush.bf16.msra.mxu0 %v811_v53  ;;  %v998_v7 = vsel %vm995_vm9, %v992_v62, %v994_v3  ;;  %v996_v8 = vsel %vm995_vm9, %v988_v4, %v990_v2  ;;  %v1012_v11 = vsel %vm256_vm1, %v994_v3, 0 }
  0xdc   : > { %v1009_v10 = vsel %vm256_vm1, %v998_v7, 0  ;;  %v1003_v12 = vsel %vm256_vm1, %v996_v8, 0 }
  0xe7   : > { %1300 = vmatmul.msk.bf16.vlgmr.msrb.gmra.mxu3 %vm252_vm3, %v1296_v58 }
  0xe8   : > { %1297 = vmatmul.msk.bf16.vlgmr.msrb.gmra.mxu0 %vm252_vm3, %v1296_v58  ;;  %964 = vmatpush.bf16.msrb.mxu3 %v916_v0 }
  0xe9   : > { %1298 = vmatmul.msk.bf16.vlgmr.msrb.gmra.mxu1 %vm252_vm3, %v1296_v58  ;;  %1299 = vmatmul.msk.bf16.vlgmr.msrb.gmra.mxu2 %vm252_vm3, %v1296_v58 }
  0xea   : > { %938 = vmatpush.bf16.msrb.mxu1 %v910_v61  ;;  %951 = vmatpush.bf16.msrb.mxu2 %v913_v63 }
  0xeb   : > { %925 = vmatpush.bf16.msrb.mxu0 %v907_v1 }
  0xf7   : > { %1305 = vmatmul.msk.bf16.vlgmr.msra.gmra.mxu3 %vm252_vm3, %v1301_v6 }
  0xf8   : > { %1302 = vmatmul.msk.bf16.vlgmr.msra.gmra.mxu0 %vm252_vm3, %v1301_v6  ;;  %1060 = vmatpush.bf16.msra.mxu3 %v1012_v11 }
  0xf9   : > { %1303 = vmatmul.msk.bf16.vlgmr.msra.gmra.mxu1 %vm252_vm3, %v1301_v6  ;;  %1304 = vmatmul.msk.bf16.vlgmr.msra.gmra.mxu2 %vm252_vm3, %v1301_v6 }
  0xfa   : > { %1034 = vmatpush.bf16.msra.mxu1 %v1006_v9  ;;  %1047 = vmatpush.bf16.msra.mxu2 %v1009_v10 }
  0xfb   : > { %1021 = vmatpush.bf16.msra.mxu0 %v1003_v12 }
 0x107   : > { %1310 = vmatmul.msk.bf16.vlgmr.msrb.gmra.mxu3 %vm252_vm3, %v1306_v13 }
 0x108   : > { %1307 = vmatmul.msk.bf16.vlgmr.msrb.gmra.mxu0 %vm252_vm3, %v1306_v13 }
 0x109   : > { %1308 = vmatmul.msk.bf16.vlgmr.msrb.gmra.mxu1 %vm252_vm3, %v1306_v13  ;;  %1309 = vmatmul.msk.bf16.vlgmr.msrb.gmra.mxu2 %vm252_vm3, %v1306_v13 }
 0x115   : > { %v278_v18 = vpop.f32.mrf.mxu0 }
 0x116   : > { %v291_v23 = vpop.f32.mrf.mxu1 }
 0x117   : > { %1315 = vmatmul.msk.bf16.vlgmr.msra.gmra.mxu3 %vm252_vm3, %v1311_v17 }
 0x118   : > { %1312 = vmatmul.msk.bf16.vlgmr.msra.gmra.mxu0 %vm252_vm3, %v1311_v17 }
 0x119   : > { %1313 = vmatmul.msk.bf16.vlgmr.msra.gmra.mxu1 %vm252_vm3, %v1311_v17  ;;  %1314 = vmatmul.msk.bf16.vlgmr.msra.gmra.mxu2 %vm252_vm3, %v1311_v17 }
 0x11a   : > { %v317_v24 = vpop.f32.mrf.mxu3 }
 0x11c   : > { %v304_v25 = vpop.f32.mrf.mxu2 }
 0x11d   : > { %v280_v26 = vpop.f32.mrf.mxu0 }
 0x11e   : > { %v293_v27 = vpop.f32.mrf.mxu1 }
 0x122   : > { %v319_v28 = vpop.f32.mrf.mxu3 }
 0x124   : > { %v306_v29 = vpop.f32.mrf.mxu2 }
 0x125   : > { %v366_v30 = vpop.f32.mrf.mxu0 }
 0x126   : > { %v379_v31 = vpop.f32.mrf.mxu1  ;;  %v367_v32 = vadd.f32 %v366_v30, %v278_v18 }
 0x127   : > { %v380_v33 = vadd.f32 %v379_v31, %v291_v23 }
 0x12a   : > { %v405_v22 = vpop.f32.mrf.mxu3 }
 0x12b   : > { %v406_v34 = vadd.f32 %v405_v22, %v317_v24 }
 0x12c   : > { %v392_v21 = vpop.f32.mrf.mxu2 }
 0x12d   : > { %v393_v35 = vadd.f32 %v392_v21, %v304_v25  ;;  %v368_v19 = vpop.f32.mrf.mxu0 }
 0x12e   : > { %v381_v36 = vpop.f32.mrf.mxu1 }
 0x132   : > { %v407_v37 = vpop.f32.mrf.mxu3 }
 0x134   : > { %v394_v38 = vpop.f32.mrf.mxu2 }
 0x135   : > { %v458_v20 = vpop.f32.mrf.mxu0 }
 0x136   : > { %v471_v39 = vpop.f32.mrf.mxu1  ;;  %v501_v40 = vadd.f32 %v458_v20, %v367_v32 }
 0x137   : > { %v502_v41 = vadd.f32 %v471_v39, %v380_v33  ;;  %v1074_v39 = vpop.permute.xlu0 %1073 }
 0x13a   : > { %v497_v42 = vpop.f32.mrf.mxu3 }
 0x13b   : > { %v504_v43 = vadd.f32 %v497_v42, %v406_v34 }
 0x13c   : > { %v484_v44 = vpop.f32.mrf.mxu2 }
 0x13d   : > { %v503_v45 = vadd.f32 %v484_v44, %v393_v35  ;;  %v460_v46 = vpop.f32.mrf.mxu0 }
 0x13e   : > { %v473_v47 = vpop.f32.mrf.mxu1 }
 0x142   : > { %v499_v48 = vpop.f32.mrf.mxu3 }
 0x143   : > { %v1084_v48 = vpop.permute.xlu1 %1083 }
 0x144   : > { %v486_v49 = vpop.f32.mrf.mxu2 }
 0x145   : > { %v563_v50 = vpop.f32.mrf.mxu0 }
 0x146   : > { %v576_v51 = vpop.f32.mrf.mxu1  ;;  %v606_v52 = vadd.f32 %v563_v50, %v501_v40 }
 0x147   : > { %v607_v53 = vadd.f32 %v576_v51, %v502_v41 }
 0x14a   : > { %v602_v54 = vpop.f32.mrf.mxu3 }
 0x14b   : > { %v609_v55 = vadd.f32 %v602_v54, %v504_v43 }
 0x14c   : > { %v589_v56 = vpop.f32.mrf.mxu2 }
 0x14d   : > { %v608_v57 = vadd.f32 %v589_v56, %v503_v45  ;;  %v565_v58 = vpop.f32.mrf.mxu0 }
 0x14e   : > { %v578_v59 = vpop.f32.mrf.mxu1 }
 0x152   : > { %v604_v60 = vpop.f32.mrf.mxu3 }
 0x154   : > { %v591_v61 = vpop.f32.mrf.mxu2 }
 0x155   : > { %v639_v62 = vpop.f32.mrf.mxu0 }
 0x156   : > { %v652_v63 = vpop.f32.mrf.mxu1  ;;  %v682_v0 = vadd.f32 %v639_v62, %v606_v52 }
 0x157   : > { %v683_v1 = vadd.f32 %v652_v63, %v607_v53 }
 0x15a   : > { %v678_v2 = vpop.f32.mrf.mxu3 }
 0x15b   : > { %v685_v36 = vadd.f32 %v678_v2, %v609_v55 }
 0x15c   : > { %v665_v3 = vpop.f32.mrf.mxu2 }
 0x15d   : > { %v641_v4 = vpop.f32.mrf.mxu0  ;;  %v684_v40 = vadd.f32 %v665_v3, %v608_v57 }
 0x15e   : > { %v654_v5 = vpop.f32.mrf.mxu1 }
 0x162   : > { %v680_v6 = vpop.f32.mrf.mxu3 }
 0x164   : > { %v667_v7 = vpop.f32.mrf.mxu2 }
 0x165   : > { %v735_v8 = vpop.f32.mrf.mxu0 }
 0x166   : > { %v748_v9 = vpop.f32.mrf.mxu1  ;;  %v778_v22 = vadd.f32 %v735_v8, %v682_v0 }
 0x167   : > { %v779_v34 = vadd.f32 %v748_v9, %v683_v1 }
 0x16a   : > { %v774_v10 = vpop.f32.mrf.mxu3 }
 0x16b   : > { %v781_v41 = vadd.f32 %v774_v10, %v685_v36 }
 0x16c   : > { %v761_v11 = vpop.f32.mrf.mxu2 }
 0x16d   : > { %v737_v12 = vpop.f32.mrf.mxu0  ;;  %v780_v46 = vadd.f32 %v761_v11, %v684_v40 }
 0x16e   : > { %v750_v13 = vpop.f32.mrf.mxu1 }
 0x172   : > { %v776_v14 = vpop.f32.mrf.mxu3 }
 0x174   : > { %v763_v15 = vpop.f32.mrf.mxu2 }
 0x175   : > { %v831_v16 = vpop.f32.mrf.mxu0 }
 0x176   : > { %v844_v17 = vpop.f32.mrf.mxu1  ;;  %v874_v21 = vadd.f32 %v831_v16, %v778_v22 }
 0x177   : > { %v875_v35 = vadd.f32 %v844_v17, %v779_v34 }
 0x17a   : > { %v870_v18 = vpop.f32.mrf.mxu3 }
 0x17b   : > { %v877_v47 = vadd.f32 %v870_v18, %v781_v41  ;;  %v1575_v18 = vld [vmem:[%s1600_s4] sm:$0xf] }
 0x17c   : > { %v857_v23 = vpop.f32.mrf.mxu2 }
 0x17d   : > { %v833_v24 = vpop.f32.mrf.mxu0  ;;  %v876_v51 = vadd.f32 %v857_v23, %v780_v46 }
 0x17e   : > { %v846_v25 = vpop.f32.mrf.mxu1 }
 0x182   : > { %v872_v26 = vpop.f32.mrf.mxu3 }
 0x184   : > { %v859_v27 = vpop.f32.mrf.mxu2 }
 0x185   : > { %v927_v28 = vpop.f32.mrf.mxu0 }
 0x186   : > { %v940_v29 = vpop.f32.mrf.mxu1  ;;  %v970_v37 = vadd.f32 %v927_v28, %v874_v21  ;;  %v1172_v28 = vperm.slane %v1575_v18, 0 }
 0x187   : > { %v971_v38 = vadd.f32 %v940_v29, %v875_v35 }
 0x18a   : > { %v966_v30 = vpop.f32.mrf.mxu3 }
 0x18b   : > { %v973_v52 = vadd.f32 %v966_v30, %v877_v47 }
 0x18c   : > { %v953_v31 = vpop.f32.mrf.mxu2 }
 0x18d   : > { %v929_v32 = vpop.f32.mrf.mxu0  ;;  %v972_v56 = vadd.f32 %v953_v31, %v876_v51 }
 0x18e   : > { %v942_v33 = vpop.f32.mrf.mxu1  ;;  %v1173_v32 = vperm.slane %v1575_v18, 1 }
 0x192   : > { %v968_v19 = vpop.f32.mrf.mxu3 }
 0x194   : > { %v955_v20 = vpop.f32.mrf.mxu2 }
 0x195   : > { %v1023_v42 = vpop.f32.mrf.mxu0 }
 0x196   : > { %v1036_v43 = vpop.f32.mrf.mxu1  ;;  %v1066_v44 = vadd.f32 %v1023_v42, %v970_v37 }
 0x197   : > { %v1067_v45 = vadd.f32 %v1036_v43, %v971_v38 }
 0x198   : > { %v1076_v49 = vmul.f32 %v1074_v39, %v1066_v44 }
 0x199   : > { %v1077_v50 = vmul.f32 %v1074_v39, %v1067_v45 }
 0x19a   : > { %v1558_v53 = vadd.f32 %v1084_v48, %v1076_v49  ;;  %v1062_v55 = vpop.f32.mrf.mxu3 }
 0x19b   : > { %v1560_v54 = vadd.f32 %v1084_v48, %v1077_v50  ;;  %v1069_v58 = vadd.f32 %v1062_v55, %v973_v52 }
 0x19c   : > { %v1316_v57 = vmul.f32 -1.442695, %v1558_v53  ;;  %v1049_v60 = vpop.f32.mrf.mxu2 }
 0x19d   : > { %v1317_v59 = vmul.f32 -1.442695, %v1560_v54  ;;  %v1079_v61 = vmul.f32 %v1074_v39, %v1069_v58  ;;  %v1068_v62 = vadd.f32 %v1049_v60, %v972_v56  ;;  %v1025_v63 = vpop.f32.mrf.mxu0 }
 0x19e   : > { %v1038_v0 = vpop.f32.mrf.mxu1  ;;  %1342 = vpow2.f32 %v1316_v57 }
 0x19f   : > { %1344 = vpow2.f32 %v1317_v59  ;;  %v1564_v1 = vadd.f32 %v1084_v48, %v1079_v61  ;;  %v1078_v2 = vmul.f32 %v1074_v39, %v1068_v62 }
 0x1a1   : > { %v1319_v3 = vmul.f32 -1.442695, %v1564_v1  ;;  %v1567_v4 = vadd.f32 %v1084_v48, %v1078_v2  ;;  %v1174_v2 = vperm.slane %v1575_v18, 2 }
 0x1a2   : > { %v1064_v5 = vpop.f32.mrf.mxu3 }
 0x1a3   : > { %1346 = vpow2.f32 %v1319_v3  ;;  %v1318_v6 = vmul.f32 -1.442695, %v1567_v4 }
 0x1a4   : > { %v1343_v7 = vpop.eup %1342  ;;  %v1051_v8 = vpop.f32.mrf.mxu2 }
 0x1a5   : > { %v1345_v9 = vpop.eup %1344  ;;  %v1102_v10 = vadd.f32 1.0, %v1343_v7  ;;  %1348 = vpow2.f32 %v1318_v6 }
 0x1a6   : > { %v1103_v11 = vadd.f32 1.0, %v1345_v9 }
 0x1a7   : > { %1350 = vrcp.f32 %v1102_v10  ;;  %v1115_v26 = vand.u32 2147483647, %v1102_v10  ;;  %v1117_v27 = vand.u32 2147483648, %v1102_v10  ;;  %vm1111_vm12 = vweird.f32 %v1102_v10 }
 0x1a8   : > { %1352 = vrcp.f32 %v1103_v11  ;;  %v1130_v30 = vand.u32 2147483647, %v1103_v11  ;;  %v1132_v22 = vand.u32 2147483648, %v1103_v11  ;;  %vm1126_vm15 = vweird.f32 %v1103_v11 }
 0x1a9   : > { %v1347_v12 = vpop.eup %1346  ;;  %vm1116_vm14 = vcmp.eq.f32.partialorder %v1115_v26, 8.507059e+37  ;;  %v1118_v19 = vor.u32 1.1754944e-38, %v1117_v27 }
 0x1aa   : > { %v1105_v13 = vadd.f32 1.0, %v1347_v12  ;;  %vm1131_vm2 = vcmp.eq.f32.partialorder %v1130_v30, 8.507059e+37  ;;  %v1133_v40 = vor.u32 1.1754944e-38, %v1132_v22 }
 0x1ab   : > { %v1349_v14 = vpop.eup %1348 }
 0x1ac   : > { %1354 = vrcp.f32 %v1105_v13  ;;  %v1570_v16 = vadd.f32 1.0, %v1349_v14  ;;  %v1162_v20 = vand.u32 2147483648, %v1105_v13  ;;  %v1160_v41 = vand.u32 2147483647, %v1105_v13 }
 0x1ad   : > { %v1351_v15 = vpop.eup %1350  ;;  %vm1156_vm5 = vweird.f32 %v1105_v13 }
 0x1ae   : > { %v1353_v17 = vpop.eup %1352  ;;  %v1107_v23 = vmul.f32 %v1351_v15, %v1102_v10  ;;  %1356 = vrcp.f32 %v1570_v16  ;;  %vm1112_vm11 = vweird.f32 %v1351_v15  ;;  %v1163_v51 = vor.u32 1.1754944e-38, %v1162_v20 }
 0x1af   : > { %v1122_v24 = vmul.f32 %v1353_v17, %v1103_v11  ;;  %vm1127_vm13 = vweird.f32 %v1353_v17  ;;  %vm1113_vm0 = vmor %vm1111_vm12, %vm1112_vm11  ;;  %v1147_v52 = vand.u32 2147483648, %v1570_v16  ;;  %v1145_v58 = vand.u32 2147483647, %v1570_v16 }
 0x1b0   : > { %v1108_v25 = vsub.f32 1.0, %v1107_v23  ;;  %vm1128_vm3 = vmor %vm1126_vm15, %vm1127_vm13  ;;  %vm1161_vm8 = vcmp.eq.f32.partialorder %v1160_v41, 8.507059e+37  ;;  %vm1141_vm9 = vweird.f32 %v1570_v16  ;;  %vm1204_vm12 = vcmask 1043458  }
 0x1b1   : > { %v1123_v29 = vsub.f32 1.0, %v1122_v24  ;;  %v1148_v63 = vor.u32 1.1754944e-38, %v1147_v52  ;;  %vm1146_vm11 = vcmp.eq.f32.partialorder %v1145_v58, 8.507059e+37  ;;  %vm1197_vm13 = vcmask 1045508  }
 0x1b2   : > { %v1355_v31 = vpop.eup %1354  ;;  %v1109_v33 = vmul.f32 %v1351_v15, %v1108_v25 }
 0x1b3   : > { %v1124_v34 = vmul.f32 %v1353_v17, %v1123_v29  ;;  %v1152_v21 = vmul.f32 %v1355_v31, %v1105_v13  ;;  %vm1157_vm4 = vweird.f32 %v1355_v31 }
 0x1b4   : > { %v1110_v35 = vadd.f32 %v1351_v15, %v1109_v33  ;;  %v1357_v36 = vpop.eup %1356  ;;  %vm1158_vm6 = vmor %vm1156_vm5, %vm1157_vm4 }
 0x1b5   : > { %v1125_v37 = vadd.f32 %v1353_v17, %v1124_v34  ;;  %v1153_v38 = vsub.f32 1.0, %v1152_v21  ;;  %v1137_v42 = vmul.f32 %v1357_v36, %v1570_v16  ;;  %vm1142_vm7 = vweird.f32 %v1357_v36 }
 0x1b6   : > { %v1114_v39 = vsel %vm1113_vm0, %v1351_v15, %v1110_v35  ;;  %vm1143_vm10 = vmor %vm1141_vm9, %vm1142_vm7  ;;  %vm1207_vm0 = vcmask 130054  }
 0x1b7   : > { %v1119_v43 = vsel %vm1116_vm14, %v1118_v19, %v1114_v39  ;;  %v1129_v44 = vsel %vm1128_vm3, %v1353_v17, %v1125_v37  ;;  %v1154_v45 = vmul.f32 %v1355_v31, %v1153_v38  ;;  %v1138_v48 = vsub.f32 1.0, %v1137_v42  ;;  %vm1205_vm14 = vmor %vm1204_vm12, %vm256_vm1 }
 0x1b8   : > { %v1134_v46 = vsel %vm1131_vm2, %v1133_v40, %v1129_v44  ;;  %v1166_v47 = vmul.f32 %v1119_v43, %v1558_v53  ;;  %v1175_v53 = vperm.slane %v1575_v18, 3  ;;  %vm1206_vm15 = vmor %vm1197_vm13, %vm1205_vm14  ;;  %vm1201_vm2 = vcmask 1043456  }
 0x1b9   : > { %v1167_v49 = vmul.f32 %v1134_v46, %v1560_v54  ;;  %v1155_v50 = vadd.f32 %v1355_v31, %v1154_v45  ;;  %v1139_v56 = vmul.f32 %v1357_v36, %v1138_v48  ;;  %vm1208_vm3 = vmor %vm1207_vm0, %vm1206_vm15 }
 0x1ba   : > { %v1180_v55 = vmul.f32 %v1172_v28, %v1166_v47 }
 0x1bb   : > { %v1181_v57 = vmul.f32 %v1173_v32, %v1167_v49  ;;  %v1159_v59 = vsel %vm1158_vm6, %v1355_v31, %v1155_v50  ;;  %v1140_v61 = vadd.f32 %v1357_v36, %v1139_v56 }
 0x1bc   : > { %v1164_v60 = vsel %vm1161_vm8, %v1163_v51, %v1159_v59 }
 0x1bd   : > { %v1187_v54 = vpack.c.bf16 %v1181_v57, %v1180_v55  ;;  %v1169_v62 = vmul.f32 %v1164_v60, %v1564_v1  ;;  %v1144_v0 = vsel %vm1143_vm10, %v1357_v36, %v1140_v61 }
 0x1be   : > { %v1149_v3 = vsel %vm1146_vm11, %v1148_v63, %v1144_v0 }
 0x1bf   : > { %v1183_v5 = vmul.f32 %v1175_v53, %v1169_v62  ;;  %v1168_v6 = vmul.f32 %v1149_v3, %v1567_v4  ;;  %v1191_v8 = vrot.slane %v1187_v54, 2 }
 0x1c1   : > { %v1182_v7 = vmul.f32 %v1174_v2, %v1168_v6  ;;  %v1196_v11 = vsel %vm256_vm1, %v1187_v54, %v1191_v8 }
 0x1c3   : > { %v1188_v9 = vpack.c.bf16 %v1183_v5, %v1182_v7 }
 0x1c5   : > { %v1192_v1 = vrot.slane %v1188_v9, 4  ;;  %v1193_v10 = vrot.slane %v1188_v9, 6 }
 0x1c7   : > { %v1200_v12 = vsel %vm1197_vm13, %v1192_v1, %v1193_v10 }
 0x1c8   : > { %v1202_v13 = vsel %vm1201_vm2, %v1196_v11, %v1200_v12 }
 0x1c9   : > { %1209 = vst.msk [vmem:[%s1534_s26 + $0x2] sm:$0xff] %vm1208_vm3, %v1202_v13 }
 0x1ca PF: > { %s15_s18 = sadd.s32 1, %s1364_s18  }
 0x1cb   : > { %p12_p4 = scmp.ge.s32.totalorder %s15_s18, 4  }
 0x1cd   :  { %14 = sbr.rel (!%p12_p4) target bundleno = 1 (0x1), region = 79 }

// kernel: c2f_lca3_forward.9
= control target key start
LH: loop header
LB: loop body
LE: loop exit
PB: predicated region body
PF: predicated region fallthrough
CT: control target
= control target key end

     0   :  { %s2018_s29 = smov 0   ;;  %s2251_s0 = inlined_call_operand.vmem [shape: bf16[2,8,640], index: 0, kind: input, shape index: {}]   ;;  %s2252_s1 = inlined_call_operand.vmem [shape: f32[2,8,1], index: 1, kind: input, shape index: {}]   ;;  %s2253_s2 = inlined_call_operand.vmem [shape: f32[4,8,3], index: 2, kind: input, shape index: {}]   ;;  %s2254_s3 = inlined_call_operand.vmem [shape: f32[4,1,8], index: 3, kind: input, shape index: {}]   ;;  %s2255_s4 = inlined_call_operand.vmem [shape: f32[4,8,1], index: 4, kind: input, shape index: {}]   ;;  %s2256_s5 = inlined_call_operand.vmem [shape: f32[1,8], index: 5, kind: input, shape index: {}]   ;;  %s2257_s6 = inlined_call_operand.vmem [shape: f32[2,1], index: 6, kind: input, shape index: {}]   ;;  %s2258_s7 = inlined_call_operand.vmem [shape: f32[2,1], index: 7, kind: input, shape index: {}]   ;;  %s2259_s8 = inlined_call_operand.vmem [shape: f32[2,1], index: 8, kind: input, shape index: {}]   ;;  %s2260_s9 = inlined_call_operand.vmem [shape: f32[1,2], index: 9, kind: input, shape index: {}]   ;;  %s2261_s10 = inlined_call_operand.vmem [shape: f32[8,1], index: 10, kind: input, shape index: {}]   ;;  %s2262_s11 = inlined_call_operand.vmem [shape: f32[8,1], index: 11, kind: input, shape index: {}]   ;;  %s2263_s12 = inlined_call_operand.vmem [shape: f32[8,1], index: 12, kind: input, shape index: {}]   ;;  %s2264_s13 = inlined_call_operand.vmem [shape: f32[1,400], index: 13, kind: input, shape index: {}]   ;;  %s2265_s14 = inlined_call_operand.vmem [shape: f32[2,8,640], index: 14, kind: output, shape index: {}]  }
   0x1 LB: > { %s1794_s30 = sadd.s32 4294967295, %s1927_s29   ;;  %p1798_p0 = scmp.ge.s32.totalorder %s1927_s29, 1  ;;  %s1927_s29 = sphi %s2018_s29, %s24_s29  }
   0x2   : > { %p421_p1 = scmp.lt.s32.totalorder %s1927_s29, 3 }
   0x4   : > { %p422_p2 = pnand %p1798_p0, %p421_p1 }
   0x5   : > { %p471_p3 = scmp.lt.s32.totalorder (!%p422_p2), %s1794_s30, 1  ;;  %s1932_s25 = smov (!%p422_p2), 126  }
   0x6   : > { %425 = sbr.rel (%p422_p2) target bundleno = 1993 (0x7c9), region = 76  ;;  %s1933_s26 = smov (!%p422_p2), 127  }
   0x7   : > { %s1934_s27 = smov (!%p422_p2), 1   ;;  %s1938_s28 = smov (!%p422_p2), 20  }
   0x8   : > { %s1940_s22 = smov (!%p422_p2), 2   ;;  %s1941_s16 = smov (!%p422_p2), 48  }
   0xb   : > { %v518_v0 = vld [vmem:[%s2253_s2] sm:$0xff]  ;;  %v1929_v1 = vmov 2   ;;  %v1930_v2 = vmov 0   ;;  %s2267_s30 = smov (!%p471_p3, %s1794_s30), 1  ;;  %v1931_v4 = vmov 1   ;;  %vm554_vm0 = vcmask 1039360  }
   0xc   : > { %1871 = vset.pattern.permute.xlu1 %v1929_v1  ;;  %1869 = vset.pattern.permute.xlu0 %v1930_v2  ;;  %s1800_s17 = sshll.u32 %s2267_s30, 3  ;;  %s1845_s21 = smul.u32 20, %s2267_s30  ;;  %vm588_vm1 = vcmask 1031168   ;;  %v1806_v61 = vld [vmem:[%s2253_s2 + $0x8] sm:$0xff]  ;;  %vm618_vm2 = vcmask 7168   ;;  %vm627_vm3 = vcmask 64512  }
   0xd   : > { %569 = vperm.xlu1 %1871, %v518_v0   ;;  %1878 = vset.pattern.permute.xlu2 %v1930_v2  ;;  %s479_s20 = scalar_lea.vmem %s2252_s1, %s1800_s17  ;;  %vm515_vm4 = vcmask 1047680   ;;  %vm741_vm5 = vcmask 130048   ;;  %vm782_vm6 = vcmask 883712   ;;  %vm814_vm7 = vcmask 719872  }
   0xe   : > { %v498_v3 = vld [vmem:[%s479_s20] sm:$0xff]  ;;  %s475_s24 = scalar_lea.vmem %s2251_s0, %s1845_s21  ;;  %s1846_s20 = smul.u32 40, %s2267_s30  ;;  %vm840_vm8 = vcmask 162816   ;;  %vm1024_vm9 = vcmask 1014784   ;;  %vm1055_vm10 = vcmask 15360   ;;  %vm1240_vm11 = vcmask 392192  }
   0xf   : > { %501 = vperm.xlu0 %1869, %v498_v3   ;;  %v486_v5 = vld [vmem:[%s475_s24 + $0x8] sm:$0xff]  ;;  %v485_v6 = vld [vmem:[%s475_s24] sm:$0xff]  ;;  %v487_v9 = vld [vmem:[%s475_s24 + $0x10] sm:$0xf]  ;;  %s1936_s30 = smov 108   ;;  %s1939_s21 = smov 124  }
  0x10   : > { %v491_v7 = vunpack.c.h.bf16 %v486_v5  ;;  %v488_v8 = vunpack.c.l.bf16 %v485_v6  ;;  %v489_v12 = vunpack.c.h.bf16 %v485_v6  ;;  %v490_v14 = vunpack.c.l.bf16 %v486_v5  ;;  %v711_v5 = vld [vmem:[%s2255_s4] sm:$0xff]  ;;  %s2093_s23 = scalar_lea.vmem %s2265_s14, %s1846_s20 }
  0x11   : > { %v492_v15 = vunpack.c.l.bf16 %v487_v9  ;;  %vm1266_vm12 = vcmask 326656   ;;  %vm1510_vm13 = vcmask 1041408  }
  0x12   : > { %v496_v10 = vmul.f32 %v491_v7, %v491_v7  ;;  %v493_v11 = vmul.f32 %v488_v8, %v488_v8  ;;  %v494_v19 = vmul.f32 %v489_v12, %v489_v12  ;;  %v495_v21 = vmul.f32 %v490_v14, %v490_v14 }
  0x13   : > { %v497_v22 = vmul.f32 %v492_v15, %v492_v15 }
  0x15   : > { %1872 = vset.pattern.permute.xlu1 %v1930_v2 }
  0x16   : > { %526 = vperm.xlu1 %1872, %v518_v0  }
  0x17   : > { %1870 = vset.pattern.permute.xlu0 %v1931_v4 }
  0x18   : > { %535 = vperm.xlu0 %1870, %v518_v0  }
  0x1e   : > { %1879 = vset.pattern.permute.xlu1 %v1929_v1 }
  0x7f   : > { %v570_v17 = vpop.permute.xlu1 %569 }
  0x81   : > { %v502_v13 = vpop.permute.xlu0 %501 }
  0x82   : > { %v2045_v16 = vmul.f32 %v502_v13, %v496_v10  ;;  %v504_v18 = vmul.f32 %v502_v13, %v493_v11  ;;  %v2049_v23 = vmul.f32 %v502_v13, %v494_v19  ;;  %v2051_v24 = vmul.f32 %v502_v13, %v495_v21  ;;  %v602_v11 = vld [vmem:[%s2254_s3] sm:$0x1] }
  0x83   : > { %v2053_v25 = vmul.f32 %v502_v13, %v497_v22  ;;  %v517_v19 = vld [vmem:[%s2264_s13] sm:$0xf] }
  0x84   : > { %v574_v20 = vmul.f32 %v570_v17, %v2045_v16  ;;  %v572_v29 = vmul.f32 %v570_v17, %v2049_v23  ;;  %v573_v32 = vmul.f32 %v570_v17, %v2051_v24  ;;  %v2100_v22 = vperm.slane %v517_v19, 1 }
  0x85   : > { %v575_v30 = vmul.f32 %v570_v17, %v2053_v25 }
  0x86   : > { %584 = vrot.lane.b32.xlu0 %v574_v20, %s1932_s25 }
  0x88   : > { %v527_v36 = vpop.permute.xlu1 %526 }
  0x89   : > { %v530_v41 = vmul.f32 %v527_v36, %v2049_v23  ;;  %v533_v48 = vmul.f32 %v527_v36, %v2053_v25  ;;  %v531_v50 = vmul.f32 %v527_v36, %v2051_v24  ;;  %v532_v51 = vmul.f32 %v527_v36, %v2045_v16 }
  0x8a   : > { %v536_v26 = vpop.permute.xlu0 %535  ;;  %v529_v63 = vmul.f32 %v527_v36, %v504_v18  ;;  %v1935_v18 = vmov 0.0   ;;  %v2105_v36 = vperm.slane %v517_v19, 3 }
  0x8b   : > { %v541_v27 = vmul.f32 %v536_v26, %v2053_v25  ;;  %v539_v28 = vmul.f32 %v536_v26, %v2051_v24  ;;  %v540_v31 = vmul.f32 %v536_v26, %v2045_v16  ;;  %v538_v33 = vmul.f32 %v536_v26, %v2049_v23  ;;  %1721 = vst [vmem:[%s2093_s23] sm:$0xff] %v1935_v18 }
  0x8c   : > { %516 = vst.msk [vmem:[#allocation3 + $0x20] sm:$0xff] %vm515_vm4, %v1935_v18 }
  0x8d   : > { %552 = vrot.lane.b32.xlu1 %v541_v27, %s1933_s26  ;;  %548 = vrot.lane.b32.xlu2 %v539_v28, %s1933_s26  ;;  %1722 = vst.msk [vmem:[%s2093_s23 + $0x20] sm:$0xff] %vm515_vm4, %v1935_v18 }
  0x8e   : > { %580 = vrot.lane.b32.xlu0 %v572_v29, %s1932_s25 }
  0x95   : > { %586 = vrot.lane.b32.xlu1 %v575_v30, %s1932_s25  ;;  %550 = vrot.lane.b32.xlu2 %v540_v31, %s1933_s26 }
  0x9d   : > { %582 = vrot.lane.b32.xlu2 %v573_v32, %s1932_s25 }
  0xa5   : > { %546 = vrot.lane.b32.xlu2 %v538_v33, %s1933_s26 }
  0xe7   : > { %v549_v34 = vpop.permute.xlu2 %548 }
  0xef   : > { %v551_v35 = vpop.permute.xlu2 %550 }
  0xf0   : > { %v556_v47 = vsel %vm554_vm0, %v549_v34, %v551_v35 }
  0xf1   : > { %v565_v54 = vadd.f32 %v556_v47, %v531_v50 }
  0xf7   : > { %v583_v37 = vpop.permute.xlu2 %582 }
  0xf8   : > { %v585_v38 = vpop.permute.xlu0 %584 }
  0xf9   : > { %v590_v52 = vsel %vm588_vm1, %v583_v37, %v585_v38 }
  0xfa   : > { %v599_v59 = vadd.f32 %v590_v52, %v565_v54 }
  0xff   : > { %v553_v39 = vpop.permute.xlu1 %552  ;;  %v547_v40 = vpop.permute.xlu2 %546 }
 0x100   : > { %v555_v42 = vsel %vm554_vm0, %v547_v40, %v549_v34  ;;  %v581_v43 = vpop.permute.xlu0 %580  ;;  %v557_v49 = vsel %vm554_vm0, %v551_v35, %v553_v39  ;;  %v567_v53 = vadd.f32 %v553_v39, %v533_v48  ;;  %v563_v0 = vadd.f32 %v547_v40, %v529_v63 }
 0x101   : > { %v564_v44 = vadd.f32 %v555_v42, %v530_v41  ;;  %v589_v45 = vsel %vm588_vm1, %v581_v43, %v583_v37  ;;  %v566_v55 = vadd.f32 %v557_v49, %v532_v51  ;;  %v2103_v34 = vperm.slane %v517_v19, 2 }
 0x102   : > { %v597_v3 = vadd.f32 %v581_v43, %v563_v0 }
 0x103   : > { %v598_v46 = vadd.f32 %v589_v45, %v564_v44 }
 0x105   : > { %610 = vrot.lane.b32.xlu0 %v598_v46, %s1934_s27  ;;  %v2110_v46 = vperm.slane %v517_v19, 0 }
 0x107   : > { %v587_v56 = vpop.permute.xlu1 %586 }
 0x108   : > { %v591_v57 = vsel %vm588_vm1, %v585_v38, %v587_v56  ;;  %v601_v58 = vadd.f32 %v587_v56, %v567_v53 }
 0x109   : > { %v600_v60 = vadd.f32 %v591_v57, %v566_v55 }
 0x10a   : > { %616 = vrot.lane.b32.xlu2 %v601_v58, %s1934_s27 }
 0x10b   : > { %v1873_v62 = vpack.i.bf16 %v600_v60, %v599_v59 }
 0x10d   : > { %1874 = vrot.lane.b32.xlu1 %v1873_v62, %s1934_s27  ;;  %763 = vperm.xlu0 %1870, %v1806_v61  }
 0x112   : > { %714 = vperm.xlu2 %1878, %v711_v5  }
 0x115   : > { %608 = vrot.lane.b32.xlu1 %v597_v3, %s1934_s27  ;;  %s1937_s27 = smov 88  }
 0x11a   : > { %751 = vperm.xlu2 %1878, %v1806_v61  }
 0x11d   : > { %795 = vperm.xlu1 %1879, %v1806_v61  }
 0x164   : > { %v617_v9 = vpop.permute.xlu2 %616 }
 0x16c   : > { %v715_v26 = vpop.permute.xlu2 %714 }
 0x174   : > { %v752_v55 = vpop.permute.xlu2 %751 }
 0x177   : > { %v611_v10 = vpop.permute.xlu0 %610 }
 0x17f   : > { %v1875_v6 = vpop.permute.xlu1 %1874  ;;  %v764_v29 = vpop.permute.xlu0 %763 }
 0x180   : > { %v1877_v7 = vunpack.i.h.bf16 %v1875_v6  ;;  %v1876_v8 = vunpack.i.l.bf16 %v1875_v6 }
 0x182   : > { %v620_v12 = vsel %vm618_vm2, %v611_v10, %v1876_v8  ;;  %v621_v13 = vsel %vm618_vm2, %v1876_v8, %v1877_v7  ;;  %v622_v14 = vsel %vm618_vm2, %v1877_v7, %v617_v9 }
 0x183   : > { %666 = vmatpush.msra.mxu1 %v620_v12  ;;  %686 = vmatpush.msra.mxu2 %v621_v13  ;;  %v754_v13 = vmul.f32 0.0, %v752_v55 }
 0x184   : > { %706 = vmatpush.msra.mxu3 %v622_v14  ;;  %1803 = vmatmul.msk.f32.vlgmr.msra.gmra.mxu1 %vm627_vm3, %v602_v11 }
 0x185   : > { %1804 = vmatmul.msk.f32.vlgmr.msra.gmra.mxu2 %vm627_vm3, %v602_v11  ;;  %1805 = vmatmul.msk.f32.vlgmr.msra.gmra.mxu3 %vm627_vm3, %v602_v11 }
 0x187   : > { %v609_v15 = vpop.permute.xlu1 %608 }
 0x188   : > { %v619_v17 = vsel %vm618_vm2, %v609_v15, %v611_v10 }
 0x189   : > { %646 = vmatpush.msra.mxu0 %v619_v17 }
 0x18a   : > { %1802 = vmatmul.msk.f32.vlgmr.msra.gmra.mxu0 %vm627_vm3, %v602_v11 }
 0x18f   : > { %v796_v43 = vpop.permute.xlu1 %795 }
 0x201   : > { %v668_v20 = vpop.f32.mrf.mxu1 }
 0x202   : > { %v718_v21 = vperm.slane %v668_v20, 0 }
 0x204   : > { %v722_v27 = vmul.f32 %v718_v21, %v715_v26 }
 0x206   : > { %v735_v28 = vmul.f32 %v2100_v22, %v722_v27  ;;  %v1812_v27 = vld [vmem:[%s2255_s4 + $0x8] sm:$0xff] }
 0x207   : > { %v648_v37 = vpop.f32.mrf.mxu0 }
 0x208   : > { %v688_v30 = vpop.f32.mrf.mxu2  ;;  %v708_v31 = vpop.f32.mrf.mxu3  ;;  %v767_v32 = vmul.f32 %v764_v29, %v735_v28  ;;  %v717_v40 = vperm.slane %v648_v37, 0  ;;  %v799_v47 = vmul.f32 %v796_v43, %v735_v28  ;;  %v756_v62 = vmul.f32 %v752_v55, %v735_v28  ;;  %v1813_v28 = vld [vmem:[%s2253_s2 + $0x10] sm:$0xff] }
 0x209   : > { %v719_v33 = vperm.slane %v688_v30, 0  ;;  %v720_v35 = vperm.slane %v708_v31, 0 }
 0x20a   : > { %776 = vrot.lane.b32.xlu0 %v767_v32, %s1936_s30  ;;  %v721_v45 = vmul.f32 %v717_v40, %v715_v26  ;;  %v1807_v32 = vld [vmem:[%s2254_s3 + $0x1] sm:$0x1] }
 0x20b   : > { %v723_v38 = vmul.f32 %v719_v33, %v715_v26  ;;  %v724_v39 = vmul.f32 %v720_v35, %v715_v26 }
 0x20c   : > { %v734_v48 = vmul.f32 %v2110_v46, %v721_v45 }
 0x20d   : > { %v736_v41 = vmul.f32 %v2103_v34, %v723_v38  ;;  %v737_v42 = vmul.f32 %v2105_v36, %v724_v39 }
 0x20e   : > { %v766_v52 = vmul.f32 %v764_v29, %v734_v48  ;;  %v798_v54 = vmul.f32 %v796_v43, %v734_v48  ;;  %v755_v15 = vmul.f32 %v752_v55, %v734_v48 }
 0x20f   : > { %742 = vst.msk [vmem:[#allocation3 + $0x20] sm:$0xff] %vm741_vm5, %v737_v42  ;;  %v768_v44 = vmul.f32 %v764_v29, %v736_v41  ;;  %v800_v51 = vmul.f32 %v796_v43, %v736_v41  ;;  %v757_v63 = vmul.f32 %v752_v55, %v736_v41 }
 0x211   : > { %778 = vrot.lane.b32.xlu1 %v768_v44, %s1936_s30 }
 0x212   : > { %808 = vrot.lane.b32.xlu0 %v799_v47, %s1937_s27 }
 0x216   : > { %v761_v49 = vld [vmem:[#allocation3 + $0x20] sm:$0xff] }
 0x217   : > { %v769_v50 = vmul.f32 %v764_v29, %v761_v49  ;;  %v801_v53 = vmul.f32 %v796_v43, %v761_v49 }
 0x219   : > { %780 = vrot.lane.b32.xlu2 %v769_v50, %s1936_s30  ;;  %810 = vrot.lane.b32.xlu1 %v800_v51, %s1937_s27 }
 0x21a   : > { %774 = vrot.lane.b32.xlu0 %v766_v52, %s1936_s30 }
 0x221   : > { %812 = vrot.lane.b32.xlu2 %v801_v53, %s1937_s27  ;;  %806 = vrot.lane.b32.xlu1 %v798_v54, %s1937_s27 }
 0x273   : > { %v781_v57 = vpop.permute.xlu2 %780 }
 0x27b   : > { %v813_v0 = vpop.permute.xlu2 %812 }
 0x27c   : > { %v777_v56 = vpop.permute.xlu0 %776 }
 0x283   : > { %v779_v58 = vpop.permute.xlu1 %778 }
 0x284   : > { %v809_v59 = vpop.permute.xlu0 %808  ;;  %v784_v60 = vsel %vm782_vm6, %v777_v56, %v779_v58  ;;  %v785_v61 = vsel %vm782_vm6, %v779_v58, %v781_v57 }
 0x285   : > { %v792_v3 = vadd.f32 %v784_v60, %v756_v62  ;;  %v793_v5 = vadd.f32 %v785_v61, %v757_v63 }
 0x28b   : > { %v811_v6 = vpop.permute.xlu1 %810 }
 0x28c   : > { %v816_v7 = vsel %vm814_vm7, %v809_v59, %v811_v6  ;;  %v817_v8 = vsel %vm814_vm7, %v811_v6, %v813_v0  ;;  %v775_v11 = vpop.permute.xlu0 %774 }
 0x28d   : > { %v824_v9 = vadd.f32 %v816_v7, %v792_v3  ;;  %v825_v10 = vadd.f32 %v817_v8, %v793_v5  ;;  %v783_v14 = vsel %vm782_vm6, %v775_v11, %v777_v56  ;;  %v790_v17 = vadd.f32 %v775_v11, %v754_v13 }
 0x28e   : > { %v791_v18 = vadd.f32 %v783_v14, %v755_v15 }
 0x28f   : > { %v1880_v12 = vpack.i.bf16 %v825_v10, %v824_v9 }
 0x291   : > { %1881 = vrot.lane.b32.xlu2 %v1880_v12, %s1938_s28 }
 0x293   : > { %v807_v19 = vpop.permute.xlu1 %806 }
 0x294   : > { %v815_v20 = vsel %vm814_vm7, %v807_v19, %v809_v59  ;;  %v822_v21 = vadd.f32 %v807_v19, %v790_v17 }
 0x295   : > { %v823_v26 = vadd.f32 %v815_v20, %v791_v18 }
 0x296   : > { %832 = vrot.lane.b32.xlu1 %v822_v21, %s1938_s28 }
 0x297   : > { %834 = vrot.lane.b32.xlu0 %v823_v26, %s1938_s28 }
 0x299   : > { %935 = vperm.xlu2 %1878, %v1812_v27  }
 0x29e   : > { %1005 = vperm.xlu1 %1879, %v1813_v28  }
 0x29f   : > { %972 = vperm.xlu0 %1870, %v1813_v28  }
 0x2a1   : > { %963 = vperm.xlu2 %1878, %v1813_v28  }
 0x2a6   : > { %1891 = vset.pattern.permute.xlu1 %v1931_v4 }
 0x2a7   : > { %1890 = vset.pattern.permute.xlu0 %v1930_v2 }
 0x2a9   : > { %1892 = vset.pattern.permute.xlu2 %v1929_v1 }
 0x2eb   : > { %v1882_v29 = vpop.permute.xlu2 %1881 }
 0x2ec   : > { %v1883_v30 = vunpack.i.l.bf16 %v1882_v29  ;;  %v1884_v31 = vunpack.i.h.bf16 %v1882_v29 }
 0x2ee   : > { %926 = vmatpush.msrb.mxu3 %v1884_v31  ;;  %v843_v33 = vsel %vm840_vm8, %v1883_v30, %v1884_v31 }
 0x2ef   : > { %906 = vmatpush.msrb.mxu2 %v843_v33  ;;  %1811 = vmatmul.msk.f32.vlgmr.msrb.gmra.mxu3 %vm627_vm3, %v1807_v32 }
 0x2f0   : > { %1810 = vmatmul.msk.f32.vlgmr.msrb.gmra.mxu2 %vm627_vm3, %v1807_v32 }
 0x2f3   : > { %v936_v41 = vpop.permute.xlu2 %935 }
 0x2fb   : > { %v964_v6 = vpop.permute.xlu2 %963 }
 0x308   : > { %v833_v4 = vpop.permute.xlu1 %832 }
 0x309   : > { %v835_v35 = vpop.permute.xlu0 %834 }
 0x30a   : > { %v841_v37 = vsel %vm840_vm8, %v833_v4, %v835_v35  ;;  %v842_v38 = vsel %vm840_vm8, %v835_v35, %v1883_v30 }
 0x30b   : > { %866 = vmatpush.msrb.mxu0 %v841_v37  ;;  %886 = vmatpush.msrb.mxu1 %v842_v38 }
 0x30c   : > { %1808 = vmatmul.msk.f32.vlgmr.msrb.gmra.mxu0 %vm627_vm3, %v1807_v32  ;;  %1809 = vmatmul.msk.f32.vlgmr.msrb.gmra.mxu1 %vm627_vm3, %v1807_v32  ;;  %v966_v32 = vmul.f32 0.0, %v964_v6 }
 0x310   : > { %v1006_v51 = vpop.permute.xlu1 %1005 }
 0x311   : > { %v973_v48 = vpop.permute.xlu0 %972 }
 0x372   : > { %v928_v1 = vpop.f32.mrf.mxu3 }
 0x373   : > { %v941_v39 = vperm.slane %v928_v1, 0  ;;  %v908_v40 = vpop.f32.mrf.mxu2 }
 0x374   : > { %v940_v42 = vperm.slane %v908_v40, 0 }
 0x375   : > { %v945_v43 = vmul.f32 %v941_v39, %v936_v41 }
 0x376   : > { %v944_v44 = vmul.f32 %v940_v42, %v936_v41  ;;  %v1819_v42 = vld [vmem:[%s2255_s4 + $0x10] sm:$0xff] }
 0x377   : > { %v949_v45 = vmul.f32 %v945_v43, %v2105_v36  ;;  %v1820_v43 = vld [vmem:[%s2253_s2 + $0x18] sm:$0xff] }
 0x378   : > { %v948_v47 = vmul.f32 %v944_v44, %v2103_v34 }
 0x379   : > { %953 = vst.msk [vmem:[#allocation3 + $0x20] sm:$0xff] %vm741_vm5, %v949_v45 }
 0x37a   : > { %v977_v49 = vmul.f32 %v973_v48, %v948_v47  ;;  %v1010_v53 = vmul.f32 %v1006_v51, %v948_v47  ;;  %v969_v18 = vmul.f32 %v964_v6, %v948_v47 }
 0x37c   : > { %987 = vrot.lane.b32.xlu1 %v977_v49, %s1932_s25  ;;  %v1814_v49 = vld [vmem:[%s2254_s3 + $0x2] sm:$0x1] }
 0x380   : > { %v960_v50 = vld [vmem:[#allocation3 + $0x20] sm:$0xff] }
 0x381   : > { %v978_v52 = vmul.f32 %v973_v48, %v960_v50  ;;  %v1011_v56 = vmul.f32 %v1006_v51, %v960_v50  ;;  %v970_v8 = vmul.f32 %v964_v6, %v960_v50 }
 0x383   : > { %989 = vrot.lane.b32.xlu2 %v978_v52, %s1932_s25 }
 0x384   : > { %1020 = vrot.lane.b32.xlu1 %v1010_v53, %s1939_s21 }
 0x389   : > { %v868_v54 = vpop.f32.mrf.mxu0  ;;  %v888_v55 = vpop.f32.mrf.mxu1 }
 0x38a   : > { %v938_v57 = vperm.slane %v868_v54, 0  ;;  %v939_v58 = vperm.slane %v888_v55, 0 }
 0x38b   : > { %1022 = vrot.lane.b32.xlu2 %v1011_v56, %s1939_s21 }
 0x38c   : > { %v942_v59 = vmul.f32 %v938_v57, %v936_v41  ;;  %v943_v60 = vmul.f32 %v939_v58, %v936_v41 }
 0x38e   : > { %v946_v61 = vmul.f32 %v942_v59, %v2110_v46  ;;  %v947_v62 = vmul.f32 %v943_v60, %v2100_v22 }
 0x390   : > { %v1008_v63 = vmul.f32 %v1006_v51, %v946_v61  ;;  %v976_v0 = vmul.f32 %v973_v48, %v947_v62  ;;  %v1009_v3 = vmul.f32 %v1006_v51, %v947_v62  ;;  %v975_v5 = vmul.f32 %v973_v48, %v946_v61 }
 0x391   : > { %v968_v19 = vmul.f32 %v964_v6, %v947_v62  ;;  %v967_v33 = vmul.f32 %v964_v6, %v946_v61 }
 0x392   : > { %1016 = vrot.lane.b32.xlu1 %v1008_v63, %s1939_s21  ;;  %985 = vrot.lane.b32.xlu0 %v976_v0, %s1932_s25 }
 0x39a   : > { %1018 = vrot.lane.b32.xlu0 %v1009_v3, %s1939_s21 }
 0x3a2   : > { %983 = vrot.lane.b32.xlu0 %v975_v5, %s1932_s25 }
 0x3dd   : > { %v990_v7 = vpop.permute.xlu2 %989 }
 0x3de   : > { %v1003_v9 = vadd.f32 %v990_v7, %v970_v8 }
 0x3e5   : > { %v1023_v10 = vpop.permute.xlu2 %1022 }
 0x3e6   : > { %v1037_v11 = vadd.f32 %v1023_v10, %v1003_v9 }
 0x3e8   : > { %1053 = vrot.lane.b32.xlu0 %v1037_v11, %s1940_s22 }
 0x3ee   : > { %v988_v12 = vpop.permute.xlu1 %987 }
 0x3ef   : > { %v993_v15 = vsel %vm588_vm1, %v988_v12, %v990_v7 }
 0x3f0   : > { %v1002_v21 = vadd.f32 %v993_v15, %v969_v18  ;;  %1151 = vperm.xlu0 %1890, %v1819_v42  }
 0x3f6   : > { %v1021_v14 = vpop.permute.xlu1 %1020 }
 0x3f7   : > { %v1027_v20 = vsel %vm1024_vm9, %v1021_v14, %v1023_v10 }
 0x3f8   : > { %v1036_v29 = vadd.f32 %v1027_v20, %v1002_v21  ;;  %v1826_v21 = vld [vmem:[%s2255_s4 + $0x18] sm:$0xff] }
 0x404   : > { %v986_v13 = vpop.permute.xlu0 %985  ;;  %v1017_v38 = vpop.permute.xlu1 %1016 }
 0x405   : > { %v992_v17 = vsel %vm588_vm1, %v986_v13, %v988_v12 }
 0x406   : > { %v1001_v26 = vadd.f32 %v992_v17, %v968_v19 }
 0x40c   : > { %v1019_v27 = vpop.permute.xlu0 %1018 }
 0x40d   : > { %v1026_v28 = vsel %vm1024_vm9, %v1019_v27, %v1021_v14  ;;  %v1025_v39 = vsel %vm1024_vm9, %v1017_v38, %v1019_v27  ;;  %v1492_v27 = vld [vmem:[%s2259_s8] sm:$0x3] }
 0x40e   : > { %v1035_v30 = vadd.f32 %v1026_v28, %v1001_v26 }
 0x410   : > { %v1885_v31 = vpack.i.bf16 %v1036_v29, %v1035_v30  ;;  %v1627_v29 = vld [vmem:[%s2263_s12] sm:$0xff] }
 0x412   : > { %1886 = vrot.lane.b32.xlu2 %v1885_v31, %s1940_s22 }
 0x414   : > { %v984_v4 = vpop.permute.xlu0 %983 }
 0x415   : > { %v991_v35 = vsel %vm588_vm1, %v984_v4, %v986_v13  ;;  %v999_v37 = vadd.f32 %v984_v4, %v966_v32 }
 0x416   : > { %v1000_v1 = vadd.f32 %v991_v35, %v967_v33 }
 0x417   : > { %v1033_v40 = vadd.f32 %v1017_v38, %v999_v37 }
 0x418   : > { %v1034_v41 = vadd.f32 %v1025_v39, %v1000_v1 }
 0x41a   : > { %1045 = vrot.lane.b32.xlu2 %v1033_v40, %s1940_s22  ;;  %1047 = vrot.lane.b32.xlu1 %v1034_v41, %s1940_s22 }
 0x422   : > { %1190 = vperm.xlu1 %1891, %v1820_v43   ;;  %1221 = vperm.xlu2 %1892, %v1820_v43  }
 0x42a   : > { %1893 = vset.pattern.permute.xlu1 %v1930_v2  ;;  %1904 = vset.pattern.permute.xlu2 %v1930_v2 }
 0x42b   : > { %1178 = vperm.xlu1 %1893, %v1820_v43  }
 0x45a   : > { %v1054_v48 = vpop.permute.xlu0 %1053 }
 0x462   : > { %v1152_v55 = vpop.permute.xlu0 %1151 }
 0x46c   : > { %v1887_v44 = vpop.permute.xlu2 %1886 }
 0x46d   : > { %v1889_v45 = vunpack.i.h.bf16 %v1887_v44  ;;  %v1888_v47 = vunpack.i.l.bf16 %v1887_v44 }
 0x46f   : > { %v1058_v50 = vsel %vm1055_vm10, %v1888_v47, %v1889_v45  ;;  %v1059_v51 = vsel %vm1055_vm10, %v1889_v45, %v1054_v48 }
 0x470   : > { %1122 = vmatpush.msra.mxu2 %v1058_v50  ;;  %1142 = vmatpush.msra.mxu3 %v1059_v51 }
 0x471   : > { %1817 = vmatmul.msk.f32.vlgmr.msra.gmra.mxu2 %vm627_vm3, %v1814_v49  ;;  %1818 = vmatmul.msk.f32.vlgmr.msra.gmra.mxu3 %vm627_vm3, %v1814_v49 }
 0x474   : > { %v1046_v2 = vpop.permute.xlu2 %1045 }
 0x47c   : > { %v1222_v5 = vpop.permute.xlu2 %1221 }
 0x48c   : > { %v1048_v52 = vpop.permute.xlu1 %1047 }
 0x48d   : > { %v1056_v53 = vsel %vm1055_vm10, %v1046_v2, %v1048_v52  ;;  %v1057_v54 = vsel %vm1055_vm10, %v1048_v52, %v1888_v47 }
 0x48e   : > { %1082 = vmatpush.msra.mxu0 %v1056_v53  ;;  %1102 = vmatpush.msra.mxu1 %v1057_v54 }
 0x48f   : > { %1815 = vmatmul.msk.f32.vlgmr.msra.gmra.mxu0 %vm627_vm3, %v1814_v49  ;;  %1816 = vmatmul.msk.f32.vlgmr.msra.gmra.mxu1 %vm627_vm3, %v1814_v49 }
 0x494   : > { %v1191_v0 = vpop.permute.xlu1 %1190 }
 0x49d   : > { %v1179_v30 = vpop.permute.xlu1 %1178 }
 0x49e   : > { %v1181_v50 = vmul.f32 0.0, %v1179_v30 }
 0x4f4   : > { %v1124_v56 = vpop.f32.mrf.mxu2  ;;  %v1144_v57 = vpop.f32.mrf.mxu3 }
 0x4f5   : > { %v1156_v58 = vperm.slane %v1124_v56, 0  ;;  %v1157_v59 = vperm.slane %v1144_v57, 0 }
 0x4f7   : > { %v1160_v60 = vmul.f32 %v1156_v58, %v1152_v55  ;;  %v1161_v61 = vmul.f32 %v1157_v59, %v1152_v55  ;;  %v1468_v58 = vld [vmem:[%s2257_s6] sm:$0x3] }
 0x4f9   : > { %v1164_v62 = vmul.f32 %v1160_v60, %v2103_v34  ;;  %v1165_v63 = vmul.f32 %v1161_v61, %v2105_v36  ;;  %v1603_v60 = vld [vmem:[%s2261_s10] sm:$0xff] }
 0x4fb   : > { %1169 = vst.msk [vmem:[#allocation3 + $0x20] sm:$0xff] %vm741_vm5, %v1165_v63  ;;  %v1195_v3 = vmul.f32 %v1191_v0, %v1164_v62  ;;  %v1226_v8 = vmul.f32 %v1222_v5, %v1164_v62  ;;  %v1184_v1 = vmul.f32 %v1179_v30, %v1164_v62 }
 0x4fd   : > { %1205 = vrot.lane.b32.xlu0 %v1195_v3, %s1937_s27 }
 0x502   : > { %v1188_v6 = vld [vmem:[#allocation3 + $0x20] sm:$0xff] }
 0x503   : > { %v1196_v7 = vmul.f32 %v1191_v0, %v1188_v6  ;;  %v1227_v9 = vmul.f32 %v1222_v5, %v1188_v6 }
 0x505   : > { %1207 = vrot.lane.b32.xlu1 %v1196_v7, %s1937_s27  ;;  %1236 = vrot.lane.b32.xlu0 %v1226_v8, %s1941_s16 }
 0x50c   : > { %v1084_v10 = vpop.f32.mrf.mxu0  ;;  %v1104_v11 = vpop.f32.mrf.mxu1 }
 0x50d   : > { %v1154_v12 = vperm.slane %v1084_v10, 0  ;;  %v1155_v13 = vperm.slane %v1104_v11, 0  ;;  %1238 = vrot.lane.b32.xlu1 %v1227_v9, %s1941_s16 }
 0x50f   : > { %v1158_v14 = vmul.f32 %v1154_v12, %v1152_v55  ;;  %v1159_v15 = vmul.f32 %v1155_v13, %v1152_v55 }
 0x511   : > { %v1162_v17 = vmul.f32 %v1158_v14, %v2110_v46  ;;  %v1163_v18 = vmul.f32 %v1159_v15, %v2100_v22  ;;  %v1384_v15 = vld [vmem:[%s2256_s5] sm:$0x1] }
 0x513   : > { %v1194_v19 = vmul.f32 %v1191_v0, %v1163_v18  ;;  %v1224_v20 = vmul.f32 %v1222_v5, %v1162_v17  ;;  %v1225_v26 = vmul.f32 %v1222_v5, %v1163_v18  ;;  %v1193_v28 = vmul.f32 %v1191_v0, %v1162_v17  ;;  %v1821_v0 = vld [vmem:[%s2254_s3 + $0x3] sm:$0x1] }
 0x514   : > { %v1183_v39 = vmul.f32 %v1179_v30, %v1163_v18  ;;  %v1182_v2 = vmul.f32 %v1179_v30, %v1162_v17  ;;  %v1482_v17 = vld [vmem:[%s2258_s7] sm:$0x3] }
 0x515   : > { %1203 = vrot.lane.b32.xlu2 %v1194_v19, %s1937_s27  ;;  %1232 = vrot.lane.b32.xlu0 %v1224_v20, %s1941_s16  ;;  %v1617_v18 = vld [vmem:[%s2262_s11] sm:$0xff] }
 0x51d   : > { %1234 = vrot.lane.b32.xlu2 %v1225_v26, %s1941_s16  ;;  %1361 = vperm.xlu0 %1890, %v1826_v21  }
 0x525   : > { %1495 = vperm.xlu0 %1890, %v1492_v27   ;;  %1201 = vrot.lane.b32.xlu2 %v1193_v28, %s1937_s27  ;;  %s1942_s27 = smov 40  }
 0x52d   : > { %1630 = vperm.xlu0 %1890, %v1627_v29  }
 0x56f   : > { %v1204_v31 = vpop.permute.xlu2 %1203  ;;  %v1206_v32 = vpop.permute.xlu0 %1205 }
 0x570   : > { %v1210_v38 = vsel %vm814_vm7, %v1204_v31, %v1206_v32 }
 0x571   : > { %v1218_v42 = vadd.f32 %v1210_v38, %v1183_v39 }
 0x577   : > { %v1208_v33 = vpop.permute.xlu1 %1207  ;;  %v1235_v4 = vpop.permute.xlu2 %1234 }
 0x578   : > { %v1237_v35 = vpop.permute.xlu0 %1236  ;;  %v1211_v37 = vsel %vm814_vm7, %v1206_v32, %v1208_v33 }
 0x579   : > { %v1242_v40 = vsel %vm1240_vm11, %v1235_v4, %v1237_v35  ;;  %v1219_v41 = vadd.f32 %v1211_v37, %v1184_v1 }
 0x57a   : > { %v1250_v47 = vadd.f32 %v1242_v40, %v1218_v42 }
 0x57f   : > { %v1239_v43 = vpop.permute.xlu1 %1238  ;;  %v1202_v48 = vpop.permute.xlu2 %1201 }
 0x580   : > { %v1243_v44 = vsel %vm1240_vm11, %v1237_v35, %v1239_v43  ;;  %v1209_v51 = vsel %vm814_vm7, %v1202_v48, %v1204_v31  ;;  %v1216_v52 = vadd.f32 %v1202_v48, %v1181_v50 }
 0x581   : > { %v1251_v45 = vadd.f32 %v1243_v44, %v1219_v41  ;;  %v1217_v53 = vadd.f32 %v1209_v51, %v1182_v2 }
 0x583   : > { %v1894_v49 = vpack.i.bf16 %v1251_v45, %v1250_v47 }
 0x585   : > { %1895 = vrot.lane.b32.xlu1 %v1894_v49, %s1942_s27 }
 0x587   : > { %v1233_v54 = vpop.permute.xlu0 %1232 }
 0x588   : > { %v1241_v55 = vsel %vm1240_vm11, %v1233_v54, %v1235_v4  ;;  %v1248_v56 = vadd.f32 %v1233_v54, %v1216_v52 }
 0x589   : > { %v1249_v57 = vadd.f32 %v1241_v55, %v1217_v53 }
 0x58b   : > { %v1899_v59 = vpack.i.bf16 %v1249_v57, %v1248_v56 }
 0x58d   : > { %1471 = vperm.xlu1 %1893, %v1468_v58   ;;  %1900 = vrot.lane.b32.xlu2 %v1899_v59, %s1942_s27 }
 0x58f   : > { %v1362_v12 = vpop.permute.xlu0 %1361 }
 0x595   : > { %1606 = vperm.xlu1 %1893, %v1603_v60   ;;  %1485 = vperm.xlu2 %1904, %v1482_v17  }
 0x597   : > { %v1496_v40 = vpop.permute.xlu0 %1495 }
 0x59d   : > { %1620 = vperm.xlu2 %1904, %v1617_v18  }
 0x5e7   : > { %v1901_v61 = vpop.permute.xlu2 %1900 }
 0x5e8   : > { %v1903_v62 = vunpack.i.h.bf16 %v1901_v61  ;;  %v1902_v63 = vunpack.i.l.bf16 %v1901_v61 }
 0x5ea   : > { %v1267_v3 = vsel %vm1266_vm12, %v1902_v63, %v1903_v62 }
 0x5eb   : > { %1292 = vmatpush.msrb.mxu0 %v1267_v3 }
 0x5ec   : > { %1822 = vmatmul.msk.f32.vlgmr.msrb.gmra.mxu0 %vm627_vm3, %v1821_v0 }
 0x5ef   : > { %v1486_v38 = vpop.permute.xlu2 %1485 }
 0x5f7   : > { %v1896_v5 = vpop.permute.xlu1 %1895 }
 0x5f8   : > { %v1898_v6 = vunpack.i.h.bf16 %v1896_v5  ;;  %v1897_v7 = vunpack.i.l.bf16 %v1896_v5  ;;  %v1631_v5 = vpop.permute.xlu0 %1630 }
 0x5fa   : > { %1352 = vmatpush.msrb.mxu3 %v1898_v6  ;;  %v1268_v8 = vsel %vm1266_vm12, %v1903_v62, %v1897_v7  ;;  %v1269_v9 = vsel %vm1266_vm12, %v1897_v7, %v1898_v6 }
 0x5fb   : > { %1312 = vmatpush.msrb.mxu1 %v1268_v8  ;;  %1332 = vmatpush.msrb.mxu2 %v1269_v9 }
 0x5fc   : > { %1825 = vmatmul.msk.f32.vlgmr.msrb.gmra.mxu3 %vm627_vm3, %v1821_v0  ;;  %1823 = vmatmul.msk.f32.vlgmr.msrb.gmra.mxu1 %vm627_vm3, %v1821_v0 }
 0x5fd   : > { %1824 = vmatmul.msk.f32.vlgmr.msrb.gmra.mxu2 %vm627_vm3, %v1821_v0  ;;  %v1621_v0 = vpop.permute.xlu2 %1620 }
 0x5ff   : > { %v1472_v37 = vpop.permute.xlu1 %1471 }
 0x607   : > { %v1607_v62 = vpop.permute.xlu1 %1606 }
 0x669   : > { %v1294_v10 = vpop.f32.mrf.mxu0 }
 0x66a   : > { %v1364_v11 = vperm.slane %v1294_v10, 0 }
 0x66c   : > { %v1368_v13 = vmul.f32 %v1364_v11, %v1362_v12 }
 0x66e   : > { %v1372_v14 = vmul.f32 %v1368_v13, %v2110_v46 }
 0x670   : > { %1403 = vmatpush.msra.mxu0 %v1372_v14 }
 0x671   : > { %1827 = vmatmul.msk.f32.vlgmr.msra.gmra.mxu0 %vm627_vm3, %v1384_v15 }
 0x679   : > { %v1314_v19 = vpop.f32.mrf.mxu1 }
 0x67a   : > { %v1365_v20 = vperm.slane %v1314_v19, 0 }
 0x67c   : > { %v1369_v46 = vmul.f32 %v1365_v20, %v1362_v12 }
 0x67e   : > { %v1373_v21 = vmul.f32 %v1369_v46, %v2100_v22 }
 0x67f   : > { %v1354_v26 = vpop.f32.mrf.mxu3 }
 0x680   : > { %v1367_v27 = vperm.slane %v1354_v26, 0  ;;  %v1334_v28 = vpop.f32.mrf.mxu2  ;;  %1423 = vmatpush.msra.mxu1 %v1373_v21 }
 0x681   : > { %v1366_v29 = vperm.slane %v1334_v28, 0  ;;  %1828 = vmatmul.msk.f32.vlgmr.msra.gmra.mxu1 %vm627_vm3, %v1384_v15 }
 0x682   : > { %v1371_v30 = vmul.f32 %v1367_v27, %v1362_v12 }
 0x683   : > { %v1370_v31 = vmul.f32 %v1366_v29, %v1362_v12 }
 0x684   : > { %v1375_v32 = vmul.f32 %v1371_v30, %v2105_v36 }
 0x685   : > { %v1374_v33 = vmul.f32 %v1370_v31, %v2103_v34  ;;  %v1506_v34 = vld [vmem:[%s2260_s9] sm:$0x1] }
 0x686   : > { %1379 = vst.msk [vmem:[#allocation3 + $0x20] sm:$0xff] %vm741_vm5, %v1375_v32 }
 0x687   : > { %1443 = vmatpush.msra.mxu2 %v1374_v33 }
 0x688   : > { %1829 = vmatmul.msk.f32.vlgmr.msra.gmra.mxu2 %vm627_vm3, %v1384_v15 }
 0x68d   : > { %v1383_v4 = vld [vmem:[#allocation3 + $0x20] sm:$0xff] }
 0x68e   : > { %1463 = vmatpush.msra.mxu3 %v1383_v4 }
 0x68f   : > { %1830 = vmatmul.msk.f32.vlgmr.msra.gmra.mxu3 %vm627_vm3, %v1384_v15 }
 0x6ee   : > { %v1405_v22 = vpop.f32.mrf.mxu0 }
 0x6ef   : > { %v1474_v35 = vperm.slane %v1405_v22, 0 }
 0x6f1   : > { %v1478_v1 = vmul.f32 %v1474_v35, %v1472_v37 }
 0x6f3   : > { %v1488_v39 = vmul.f32 %v1486_v38, %v1478_v1 }
 0x6f5   : > { %v1498_v41 = vadd.f32 %v1496_v40, %v1488_v39 }
 0x6f7   : > { %v1502_v36 = vmax.f32 %v1498_v41, 0.0 }
 0x6f9   : > { %1831 = vmatpush.msk.msrb.mxu0 %vm1510_vm13, %v1502_v36 }
 0x6fa   : > { %1832 = vmatmul.msk.f32.vlgmr.msrb.gmra.mxu0 %vm1055_vm10, %v1506_v34 }
 0x6fe   : > { %v1425_v42 = vpop.f32.mrf.mxu1 }
 0x6ff   : > { %v1475_v43 = vperm.slane %v1425_v42, 0 }
 0x701   : > { %v1479_v44 = vmul.f32 %v1475_v43, %v1472_v37 }
 0x703   : > { %v1489_v45 = vmul.f32 %v1486_v38, %v1479_v44 }
 0x705   : > { %v1499_v47 = vadd.f32 %v1496_v40, %v1489_v45 }
 0x707   : > { %v1503_v48 = vmax.f32 %v1499_v47, 0.0 }
 0x709   : > { %1833 = vmatpush.msk.msrb.mxu1 %vm1510_vm13, %v1503_v48 }
 0x70a   : > { %1834 = vmatmul.msk.f32.vlgmr.msrb.gmra.mxu1 %vm1055_vm10, %v1506_v34 }
 0x70b   : > { %v1445_v49 = vpop.f32.mrf.mxu2 }
 0x70c   : > { %v1476_v50 = vperm.slane %v1445_v49, 0 }
 0x70e   : > { %v1480_v51 = vmul.f32 %v1476_v50, %v1472_v37 }
 0x710   : > { %v1490_v2 = vmul.f32 %v1486_v38, %v1480_v51 }
 0x712   : > { %v1465_v52 = vpop.f32.mrf.mxu3  ;;  %v1500_v53 = vadd.f32 %v1496_v40, %v1490_v2 }
 0x713   : > { %v1477_v54 = vperm.slane %v1465_v52, 0 }
 0x714   : > { %v1504_v55 = vmax.f32 %v1500_v53, 0.0 }
 0x715   : > { %v1481_v56 = vmul.f32 %v1477_v54, %v1472_v37 }
 0x716   : > { %1835 = vmatpush.msk.msrb.mxu2 %vm1510_vm13, %v1504_v55 }
 0x717   : > { %v1491_v57 = vmul.f32 %v1486_v38, %v1481_v56  ;;  %1836 = vmatmul.msk.f32.vlgmr.msrb.gmra.mxu2 %vm1055_vm10, %v1506_v34 }
 0x719   : > { %v1501_v58 = vadd.f32 %v1496_v40, %v1491_v57 }
 0x71b   : > { %v1505_v59 = vmax.f32 %v1501_v58, 0.0 }
 0x71d   : > { %1837 = vmatpush.msk.msrb.mxu3 %vm1510_vm13, %v1505_v59 }
 0x71e   : > { %1838 = vmatmul.msk.f32.vlgmr.msrb.gmra.mxu3 %vm1055_vm10, %v1506_v34 }
 0x777   : > { %v1540_v60 = vpop.f32.mrf.mxu0 }
 0x778   : > { %v1609_v61 = vperm.slane %v1540_v60, 0 }
 0x77a   : > { %v1613_v63 = vmul.f32 %v1609_v61, %v1607_v62 }
 0x77c   : > { %v1623_v3 = vmul.f32 %v1621_v0, %v1613_v63 }
 0x77e   : > { %v1633_v6 = vadd.f32 %v1631_v5, %v1623_v3 }
 0x780   : > { %v1839_v7 = vmul.f32 -1.442695, %v1633_v6 }
 0x782   : > { %1905 = vpow2.f32 %v1839_v7 }
 0x787   : > { %v1560_v8 = vpop.f32.mrf.mxu1 }
 0x788   : > { %v1906_v9 = vpop.eup %1905  ;;  %v1610_v10 = vperm.slane %v1560_v8, 0 }
 0x789   : > { %v1649_v11 = vadd.f32 1.0, %v1906_v9 }
 0x78a   : > { %v1614_v12 = vmul.f32 %v1610_v10, %v1607_v62 }
 0x78b   : > { %1907 = vrcp.f32 %v1649_v11  ;;  %v1664_v20 = vand.u32 2147483648, %v1649_v11  ;;  %v1662_v21 = vand.u32 2147483647, %v1649_v11  ;;  %vm1658_vm15 = vweird.f32 %v1649_v11 }
 0x78c   : > { %v1624_v13 = vmul.f32 %v1621_v0, %v1614_v12 }
 0x78d   : > { %v1665_v28 = vor.u32 1.1754944e-38, %v1664_v20  ;;  %vm1663_vm1 = vcmp.eq.f32.partialorder %v1662_v21, 8.507059e+37 }
 0x78e   : > { %v1634_v14 = vadd.f32 %v1631_v5, %v1624_v13 }
 0x790   : > { %v1840_v15 = vmul.f32 -1.442695, %v1634_v14 }
 0x791   : > { %v1908_v17 = vpop.eup %1907 }
 0x792   : > { %v1654_v18 = vmul.f32 %v1908_v17, %v1649_v11  ;;  %1909 = vpow2.f32 %v1840_v15  ;;  %vm1659_vm14 = vweird.f32 %v1908_v17 }
 0x793   : > { %vm1660_vm0 = vmor %vm1658_vm15, %vm1659_vm14 }
 0x794   : > { %v1655_v19 = vsub.f32 1.0, %v1654_v18 }
 0x796   : > { %v1656_v46 = vmul.f32 %v1908_v17, %v1655_v19 }
 0x798   : > { %v1910_v26 = vpop.eup %1909  ;;  %v1657_v27 = vadd.f32 %v1908_v17, %v1656_v46 }
 0x799   : > { %v1650_v29 = vadd.f32 1.0, %v1910_v26 }
 0x79a   : > { %v1661_v30 = vsel %vm1660_vm0, %v1908_v17, %v1657_v27  ;;  %v1580_v31 = vpop.f32.mrf.mxu2 }
 0x79b   : > { %v1666_v32 = vsel %vm1663_vm1, %v1665_v28, %v1661_v30  ;;  %1911 = vrcp.f32 %v1650_v29  ;;  %v1611_v4 = vperm.slane %v1580_v31, 0  ;;  %v1677_v42 = vand.u32 2147483647, %v1650_v29 }
 0x79c   : > { %v1717_v33 = vmul.f32 %v1666_v32, %v2049_v23  ;;  %v1679_v43 = vand.u32 2147483648, %v1650_v29  ;;  %vm1673_vm3 = vweird.f32 %v1650_v29 }
 0x79d   : > { %v1615_v22 = vmul.f32 %v1611_v4, %v1607_v62  ;;  %vm1678_vm6 = vcmp.eq.f32.partialorder %v1677_v42, 8.507059e+37 }
 0x79e   : > { %1723 = vst [vmem:[%s2093_s23 + $0x8] sm:$0xff] %v1717_v33  ;;  %v1680_v48 = vor.u32 1.1754944e-38, %v1679_v43 }
 0x79f   : > { %v1625_v35 = vmul.f32 %v1621_v0, %v1615_v22 }
 0x7a1   : > { %v1912_v37 = vpop.eup %1911  ;;  %v1600_v38 = vpop.f32.mrf.mxu3  ;;  %v1635_v40 = vadd.f32 %v1631_v5, %v1625_v35 }
 0x7a2   : > { %v1669_v1 = vmul.f32 %v1912_v37, %v1650_v29  ;;  %v1612_v39 = vperm.slane %v1600_v38, 0  ;;  %vm1674_vm2 = vweird.f32 %v1912_v37 }
 0x7a3   : > { %v1841_v34 = vmul.f32 -1.442695, %v1635_v40  ;;  %vm1675_vm4 = vmor %vm1673_vm3, %vm1674_vm2 }
 0x7a4   : > { %v1670_v41 = vsub.f32 1.0, %v1669_v1  ;;  %v1616_v36 = vmul.f32 %v1612_v39, %v1607_v62 }
 0x7a5   : > { %1913 = vpow2.f32 %v1841_v34 }
 0x7a6   : > { %v1671_v44 = vmul.f32 %v1912_v37, %v1670_v41  ;;  %v1626_v45 = vmul.f32 %v1621_v0, %v1616_v36 }
 0x7a8   : > { %v1672_v23 = vadd.f32 %v1912_v37, %v1671_v44  ;;  %v1636_v47 = vadd.f32 %v1631_v5, %v1626_v45 }
 0x7aa   : > { %v1676_v49 = vsel %vm1675_vm4, %v1912_v37, %v1672_v23  ;;  %v1842_v50 = vmul.f32 -1.442695, %v1636_v47 }
 0x7ab   : > { %v1681_v51 = vsel %vm1678_vm6, %v1680_v48, %v1676_v49  ;;  %v1914_v2 = vpop.eup %1913 }
 0x7ac   : > { %v1718_v52 = vmul.f32 %v1681_v51, %v2051_v24  ;;  %1915 = vpow2.f32 %v1842_v50  ;;  %v1651_v53 = vadd.f32 1.0, %v1914_v2 }
 0x7ae   : > { %1724 = vst [vmem:[%s2093_s23 + $0x10] sm:$0xff] %v1718_v52  ;;  %1917 = vrcp.f32 %v1651_v53  ;;  %v1694_v59 = vand.u32 2147483648, %v1651_v53  ;;  %v1692_v61 = vand.u32 2147483647, %v1651_v53  ;;  %vm1688_vm8 = vweird.f32 %v1651_v53 }
 0x7b0   : > { %v1695_v24 = vor.u32 1.1754944e-38, %v1694_v59  ;;  %vm1693_vm10 = vcmp.eq.f32.partialorder %v1692_v61, 8.507059e+37 }
 0x7b2   : > { %v1916_v54 = vpop.eup %1915 }
 0x7b3   : > { %v1652_v55 = vadd.f32 1.0, %v1916_v54 }
 0x7b4   : > { %v1918_v56 = vpop.eup %1917 }
 0x7b5   : > { %1919 = vrcp.f32 %v1652_v55  ;;  %v1684_v57 = vmul.f32 %v1918_v56, %v1651_v53  ;;  %vm1689_vm7 = vweird.f32 %v1918_v56  ;;  %v1709_v6 = vand.u32 2147483648, %v1652_v55 }
 0x7b6   : > { %vm1690_vm9 = vmor %vm1688_vm8, %vm1689_vm7  ;;  %v1707_v9 = vand.u32 2147483647, %v1652_v55  ;;  %vm1703_vm12 = vweird.f32 %v1652_v55 }
 0x7b7   : > { %v1685_v58 = vsub.f32 1.0, %v1684_v57  ;;  %v1710_v12 = vor.u32 1.1754944e-38, %v1709_v6 }
 0x7b8   : > { %vm1708_vm14 = vcmp.eq.f32.partialorder %v1707_v9, 8.507059e+37 }
 0x7b9   : > { %v1686_v60 = vmul.f32 %v1918_v56, %v1685_v58 }
 0x7bb   : > { %v1920_v62 = vpop.eup %1919  ;;  %v1687_v0 = vadd.f32 %v1918_v56, %v1686_v60 }
 0x7bc   : > { %v1699_v63 = vmul.f32 %v1920_v62, %v1652_v55  ;;  %vm1704_vm11 = vweird.f32 %v1920_v62 }
 0x7bd   : > { %v1691_v5 = vsel %vm1690_vm9, %v1918_v56, %v1687_v0  ;;  %vm1705_vm13 = vmor %vm1703_vm12, %vm1704_vm11 }
 0x7be   : > { %v1700_v3 = vsub.f32 1.0, %v1699_v63  ;;  %v1696_v7 = vsel %vm1693_vm10, %v1695_v24, %v1691_v5 }
 0x7bf   : > { %v1719_v10 = vmul.f32 %v1696_v7, %v2045_v16 }
 0x7c0   : > { %v1701_v8 = vmul.f32 %v1920_v62, %v1700_v3 }
 0x7c1   : > { %1725 = vst [vmem:[%s2093_s23 + $0x18] sm:$0xff] %v1719_v10 }
 0x7c2   : > { %v1702_v11 = vadd.f32 %v1920_v62, %v1701_v8 }
 0x7c4   : > { %v1706_v13 = vsel %vm1705_vm13, %v1920_v62, %v1702_v11 }
 0x7c5   : > { %v1711_v14 = vsel %vm1708_vm14, %v1710_v12, %v1706_v13 }
 0x7c6   : > { %v1720_v15 = vmul.f32 %v1711_v14, %v2053_v25 }
 0x7c8   : > { %1726 = vst.msk [vmem:[%s2093_s23 + $0x20] sm:$0xff] %vm741_vm5, %v1720_v15 }
 0x7c9 PF: > { %s24_s29 = sadd.s32 1, %s1927_s29  }
 0x7ca   : > { %p21_p4 = scmp.ge.s32.totalorder %s24_s29, 4  }
 0x7cc   :  { %23 = sbr.rel (!%p21_p4) target bundleno = 1 (0x1), region = 118 }

</bundles_post_ra>
